<compile_context>
chip_gen: v7x
topology: tpu7x:2x2x1
jax: 0.10.0
libtpu: 0.0.40
codegen_flags: <defaults>
</compile_context>

<pallas_src>
import math

import jax
import jax.numpy as jnp
import numpy as np
from jax.experimental import pallas as pl
from jax.experimental.pallas import tpu as pltpu


def _layernorm(x, g, b, eps=1e-5):
    mu = jnp.mean(x, axis=-1, keepdims=True)
    var = jnp.mean(jnp.square(x - mu), axis=-1, keepdims=True)
    return (x - mu) * jax.lax.rsqrt(var + eps) * g + b


def _make_kernel(*, n_layers, n_heads, d_model, d_in, mlp_dims, output_dim,
                 bt, seq, compute_dtype):
    head_dim = d_model // n_heads
    scale = 1.0 / math.sqrt(head_dim)
    M = bt * seq
    D = d_model
    cdt = compute_dtype

    def kernel(x_ref, pe_ref, pool_ref, vec_ref, *rest):
        out_ref = rest[-1]
        wit = iter(rest[:-1])

        def nw():
            return next(wit)[...]

        vecs = vec_ref[...]                       # packed biases / LN params (n_vec, maxw)
        row = [0]

        def nv(width):
            r = row[0]
            row[0] += 1
            return vecs[r:r + 1, :width]          # (1, width) static slice, f32

        # ---- embedding + positional encoding (dropout = identity in eval mode) ----
        x = x_ref[...].reshape(M, d_in).astype(cdt)                             # (M, D_in)
        h = jnp.dot(x, nw(), preferred_element_type=jnp.float32) + nv(D)        # (M, D) f32
        h = (h.reshape(bt, seq, D) + pe_ref[...]).reshape(M, D)

        # ---- transformer encoder layers (post-LN, ReLU FFN) ----
        for _ in range(n_layers):
            Wqkv, Wo, W1, W2 = nw(), nw(), nw(), nw()
            bqkv = nv(3 * D)
            bo, g1, be1 = nv(D), nv(D), nv(D)
            b1 = nv(4 * D)
            b2, g2, be2 = nv(D), nv(D), nv(D)

            qkv = jnp.dot(h.astype(cdt), Wqkv,
                          preferred_element_type=jnp.float32) + bqkv            # (M, 3D) f32
            qkv3 = qkv.reshape(bt, seq, 3 * D)

            # Per-head attention with single-batch-dim einsums (documented-supported
            # Mosaic pattern); head outputs are assembled lane-contiguously and fed
            # through ONE full-depth (K = D) Wo matmul.
            # TODO(synk): fold heads into a 2-batch-dim einsum ('bqhd,bkhd->bqhk')
            # once Mosaic batched dot_general makes that a clear win, and pack the
            # softmax lane-dense for tiny S (<128).
            heads = []
            for hh in range(n_heads):                                           # static loop
                lo = hh * head_dim
                q = qkv3[:, :, lo:lo + head_dim].astype(cdt)                    # (bt, S, hd)
                k = qkv3[:, :, D + lo:D + lo + head_dim].astype(cdt)
                v = qkv3[:, :, 2 * D + lo:2 * D + lo + head_dim].astype(cdt)
                s = jnp.einsum("bqd,bkd->bqk", q, k,
                               preferred_element_type=jnp.float32) * scale      # (bt, S, S)
                s = s - jnp.max(s, axis=-1, keepdims=True)
                e = jnp.exp(s)
                p = e * pl.reciprocal(jnp.sum(e, axis=-1, keepdims=True), approx=True)
                heads.append(jnp.einsum("bqk,bkd->bqd", p.astype(cdt), v,
                                        preferred_element_type=jnp.float32).astype(cdt))
            attn_in = jnp.concatenate(heads, axis=-1).reshape(M, D)             # (M, D) bf16
            attn = jnp.dot(attn_in, Wo, preferred_element_type=jnp.float32) + bo

            h = _layernorm(h + attn, g1, be1)
            ff = jnp.maximum(jnp.dot(h.astype(cdt), W1,
                                     preferred_element_type=jnp.float32) + b1, 0.0)
            ff = jnp.dot(ff.astype(cdt), W2, preferred_element_type=jnp.float32) + b2
            h = _layernorm(h + ff, g2, be2)

        # ---- mean pool over sequence via the hoisted (bt, M) pooling matrix ----
        pooled = jnp.dot(pool_ref[...], h, preferred_element_type=jnp.float32)  # (bt, D)

        # ---- MLP head ----
        for hd_i in mlp_dims:
            pooled = jnp.maximum(
                jnp.dot(pooled.astype(cdt), nw(),
                        preferred_element_type=jnp.float32) + nv(hd_i), 0.0)
        out = jnp.dot(pooled.astype(cdt), nw(),
                      preferred_element_type=jnp.float32) + nv(output_dim)
        out_ref[...] = out.reshape(1, bt, output_dim)

    return kernel


def _pack_params(params, *, n_layers, mlp_dims, param_dtype=jnp.bfloat16):
    """Fuse QKV, cast matmul weights to bf16, pack all small vectors into one array."""
    it = iter(params)
    nxt = lambda: next(it)
    weights, vecs = [], []

    W, b = nxt(), nxt()                      # embedding
    weights.append(W)
    vecs.append(b)
    for _ in range(n_layers):
        Wq, Wk, Wv, Wo = nxt(), nxt(), nxt(), nxt()
        bq, bk, bv, bo = nxt(), nxt(), nxt(), nxt()
        g1, be1 = nxt(), nxt()
        W1, b1 = nxt(), nxt()
        W2, b2 = nxt(), nxt()
        g2, be2 = nxt(), nxt()
        weights += [jnp.concatenate([Wq, Wk, Wv], axis=1), Wo, W1, W2]
        vecs += [jnp.concatenate([bq, bk, bv], axis=1), bo, g1, be1, b1, b2, g2, be2]
    for _ in mlp_dims:
        W, b = nxt(), nxt()
        weights.append(W)
        vecs.append(b)
    W, b = nxt(), nxt()                      # final linear
    weights.append(W)
    vecs.append(b)

    weights = [w.astype(param_dtype) for w in weights]          # bf16 MXU inputs
    maxw = max(int(v.shape[-1]) for v in vecs)
    maxw = ((maxw + 127) // 128) * 128       # lane-align the packed width
    vec_pack = jnp.concatenate(
        [jnp.pad(v.reshape(1, -1).astype(jnp.float32),
                 ((0, 0), (0, maxw - int(v.shape[-1])))) for v in vecs], axis=0)
    return weights, vec_pack


def transformer_estimator_forward(x, pe, params, *, n_layers, n_heads, hidden_dims,
                                  output_dim, compute_dtype=jnp.bfloat16):
    B, S, D_in = x.shape
    d_model = hidden_dims[0]
    assert d_model % n_heads == 0, "d_model must be divisible by n_heads"
    mlp_dims = list(hidden_dims[1:])

    # Generation-aware VMEM capacity (64 MiB on v7x, 128 MiB on v5e/v6e).
    try:
        vmem_cap = int(pltpu.get_tpu_info().vmem_capacity_bytes)
    except Exception:
        vmem_cap = 64 * 2 ** 20   # conservative (v7x) fallback

    # Batch tile: fold bt sequences into the matmul M dimension. Target 256-512 rows
    # per grid step, but keep grid >= 2 whenever B permits so both v7x TensorCores
    # get work under dimension_semantics=("parallel",).
    target_m = 512 if vmem_cap >= 96 * 2 ** 20 else 256
    bt = max(1, min(B, max(1, target_m // S)))
    if B >= 2:
        bt = min(bt, -(-B // 2))
    Bpad = -(-B // bt) * bt
    if Bpad != B:
        x = jnp.concatenate([x, jnp.zeros((Bpad - B, S, D_in), x.dtype)], axis=0)
    grid = Bpad // bt
    M = bt * S

    weights, vec_pack = _pack_params(params, n_layers=n_layers, mlp_dims=mlp_dims,
                                     param_dtype=compute_dtype)
    # Grid-invariant block-diagonal mean-pool matrix, hoisted out of the kernel.
    pool_mat = jnp.asarray(np.kron(np.eye(bt, dtype=np.float32),
                                   np.full((1, S), 1.0 / S, dtype=np.float32)))   # (bt, M)

    kernel = _make_kernel(n_layers=n_layers, n_heads=n_heads, d_model=d_model,
                          d_in=D_in, mlp_dims=mlp_dims, output_dim=output_dim,
                          bt=bt, seq=S, compute_dtype=compute_dtype)

    # TODO(synk): when weight bytes exceed ~vmem_cap/4 (large d_model / many layers,
    # esp. v7x 64 MiB), stack per-layer weights along a trailing "arbitrary" grid axis
    # and stream them (carry h in VMEM scratch, gate embed/pool/head with pl.when)
    # instead of keeping all layers VMEM-resident; keep the resident scheme on v5e.

    # ---- bookkeeping (flops / bytes / VMEM, no double-counted buffer factors) ----
    d = d_model
    hd = d // n_heads
    M_tot = Bpad * S
    flops = 2 * M_tot * D_in * d
    flops += n_layers * (2 * M_tot * d * (3 * d)               # fused QKV
                         + 4 * Bpad * n_heads * S * S * hd     # scores + p@v
                         + 2 * M_tot * d * d                   # out proj
                         + 4 * M_tot * d * (4 * d))            # FFN
    prev = d
    for hd_i in mlp_dims:
        flops += 2 * Bpad * prev * hd_i
        prev = hd_i
    flops += 2 * Bpad * prev * output_dim
    transc = n_layers * Bpad * n_heads * S * S + 4 * n_layers * M_tot

    wbytes = sum(int(w.size) * w.dtype.itemsize for w in weights)
    invariant_bytes = (wbytes + int(vec_pack.size) * 4 + int(pe.size) * 4
                       + int(pool_mat.size) * 4)
    io_block_bytes = 2 * (bt * S * D_in * 4 + bt * output_dim * 4)   # double-buffered x/out
    act_bytes = 6 * M * max(4 * d, 512) * 4                          # activation temporaries
    bytes_accessed = (int(x.size) * 4 + Bpad * output_dim * 4 + invariant_bytes)

    def run(single_buffer_invariants):
        def inv_spec(shape):
            nd = len(shape)
            idx = lambda b, _nd=nd: (0,) * _nd
            if single_buffer_invariants:
                return pl.BlockSpec(shape, idx, pipeline_mode=pl.Buffered(1))
            return pl.BlockSpec(shape, idx)

        in_specs = [
            pl.BlockSpec((bt, S, D_in), lambda b: (b, 0, 0)),
            inv_spec(pe.shape),
            inv_spec(pool_mat.shape),
            inv_spec(vec_pack.shape),
        ] + [inv_spec(w.shape) for w in weights]

        buf_factor = 1 if single_buffer_invariants else 2
        resident = buf_factor * invariant_bytes + io_block_bytes
        vmem_limit = int(min(vmem_cap - 16 * 2 ** 20,
                             max(32 * 2 ** 20, resident + act_bytes + (8 << 20))))
        vmem_limit = max(vmem_limit, 16 * 2 ** 20)

        fn = pl.pallas_call(
            kernel,
            out_shape=jax.ShapeDtypeStruct((grid, bt, output_dim), jnp.float32),
            grid_spec=pltpu.PrefetchScalarGridSpec(
                num_scalar_prefetch=0,
                grid=(grid,),
                in_specs=in_specs,
                out_specs=pl.BlockSpec((1, bt, output_dim), lambda b: (b, 0, 0)),
            ),
            compiler_params=pltpu.CompilerParams(
                dimension_semantics=("parallel",),
                vmem_limit_bytes=vmem_limit,
            ),
            cost_estimate=pl.CostEstimate(
                flops=int(flops),
                transcendentals=int(transc),
                bytes_accessed=int(bytes_accessed),
            ),
        )
        return fn(x, pe, pool_mat, vec_pack, *weights)

    try:
        out = jax.block_until_ready(run(True))
    except Exception:
        # pl.Buffered(1) not accepted by this jax build -> default (double) buffering.
        out = jax.block_until_ready(run(False))
    return out.reshape(Bpad, output_dim)[:B]


def positional_encoding(seq_len, d_model):
    position = jnp.arange(seq_len, dtype=jnp.float32)[:, None]
    div_term = jnp.exp(jnp.arange(0, d_model, 2, dtype=jnp.float32)
                       * (-math.log(10000.0) / d_model))
    pe = jnp.zeros((seq_len, d_model), jnp.float32)
    pe = pe.at[:, 0::2].set(jnp.sin(position * div_term))
    pe = pe.at[:, 1::2].set(jnp.cos(position * div_term))
    return pe


def init_params(key, input_dim, hidden_dims, output_dim, n_layers):
    d_model = hidden_dims[0]

    def lin(k, din, dout):
        k1, k2 = jax.random.split(k)
        W = jax.random.normal(k1, (din, dout), jnp.float32) * (1.0 / math.sqrt(din))
        b = jax.random.normal(k2, (1, dout), jnp.float32) * 0.01
        return W, b

    keys = iter(jax.random.split(key, 128))
    params = []
    W, b = lin(next(keys), input_dim, d_model); params += [W, b]          # embedding
    for _ in range(n_layers):
        Wq, bq = lin(next(keys), d_model, d_model)
        Wk, bk = lin(next(keys), d_model, d_model)
        Wv, bv = lin(next(keys), d_model, d_model)
        Wo, bo = lin(next(keys), d_model, d_model)
        params += [Wq, Wk, Wv, Wo, bq, bk, bv, bo]
        params += [jnp.ones((1, d_model), jnp.float32), jnp.zeros((1, d_model), jnp.float32)]
        W1, b1 = lin(next(keys), d_model, 4 * d_model)
        W2, b2 = lin(next(keys), 4 * d_model, d_model)
        params += [W1, b1, W2, b2]
        params += [jnp.ones((1, d_model), jnp.float32), jnp.zeros((1, d_model), jnp.float32)]
    prev = d_model
    for hd in hidden_dims[1:]:
        W, b = lin(next(keys), prev, hd); params += [W, b]; prev = hd
    W, b = lin(next(keys), prev, output_dim); params += [W, b]
    return params


def _ref_single(x, pe, params, n_layers, n_heads, n_mlp_hidden):
    """Pure-JAX f32 reference for one batch element (PyTorch semantics, eval mode)."""
    d_model = pe.shape[-1]
    head_dim = d_model // n_heads
    it = iter(params)
    nxt = lambda: next(it)
    h = x @ nxt() + nxt()
    h = h + pe
    for _ in range(n_layers):
        Wq, Wk, Wv, Wo = nxt(), nxt(), nxt(), nxt()
        bq, bk, bv, bo = nxt(), nxt(), nxt(), nxt()
        g1, be1 = nxt(), nxt()
        W1, b1 = nxt(), nxt()
        W2, b2 = nxt(), nxt()
        g2, be2 = nxt(), nxt()
        q = h @ Wq + bq; k = h @ Wk + bk; v = h @ Wv + bv
        heads = []
        for hh in range(n_heads):
            sl = slice(hh * head_dim, (hh + 1) * head_dim)
            s = (q[:, sl] @ k[:, sl].T) / math.sqrt(head_dim)
            a = jax.nn.softmax(s, axis=-1)
            heads.append(a @ v[:, sl])
        attn = jnp.concatenate(heads, -1) @ Wo + bo
        h = _layernorm(h + attn, g1, be1)
        ff = jnp.maximum(h @ W1 + b1, 0.0) @ W2 + b2
        h = _layernorm(h + ff, g2, be2)
    pooled = jnp.mean(h, axis=0, keepdims=True)
    for _ in range(n_mlp_hidden):
        pooled = jnp.maximum(pooled @ nxt() + nxt(), 0.0)
    return (pooled @ nxt() + nxt())[0]


if __name__ == "__main__":
    B, S, D_in = 2, 8, 4
    hidden_dims = [32, 32]
    output_dim = 3
    n_heads, n_layers = 4, 2
    n_mlp_hidden = len(hidden_dims) - 1

    key = jax.random.PRNGKey(0)
    kx, kp = jax.random.split(key)
    x = jax.random.normal(kx, (B, S, D_in), jnp.float32)
    params = init_params(kp, D_in, hidden_dims, output_dim, n_layers)
    pe = positional_encoding(S, hidden_dims[0])

    out = transformer_estimator_forward(
        x, pe, params,
        n_layers=n_layers, n_heads=n_heads,
        hidden_dims=hidden_dims, output_dim=output_dim)
    out = jax.block_until_ready(out)
    assert out.shape == (B, output_dim)

    ref = jnp.stack([_ref_single(x[b], pe, params, n_layers, n_heads, n_mlp_hidden)
                     for b in range(B)])
    # Kernel uses bf16 MXU inputs (f32 accumulation) + approx softmax reciprocal;
    # reference is pure f32, so tolerance is set for bf16-level error.
    np.testing.assert_allclose(np.asarray(out), np.asarray(ref), atol=5e-2, rtol=5e-2)

    print("KERNEL_OK")
</pallas_src>

<mosaic_0001>
module attributes {stable_mosaic.version = 11 : i64} {
  func.func @kernel(%arg0: i32, %arg1: memref<1x8x4xf32, #tpu.memory_space<vmem>>, %arg2: memref<8x32xf32, #tpu.memory_space<vmem>>, %arg3: memref<1x8xf32, #tpu.memory_space<vmem>>, %arg4: memref<19x128xf32, #tpu.memory_space<vmem>>, %arg5: memref<4x32xbf16, #tpu.memory_space<vmem>>, %arg6: memref<32x96xbf16, #tpu.memory_space<vmem>>, %arg7: memref<32x32xbf16, #tpu.memory_space<vmem>>, %arg8: memref<32x128xbf16, #tpu.memory_space<vmem>>, %arg9: memref<128x32xbf16, #tpu.memory_space<vmem>>, %arg10: memref<32x96xbf16, #tpu.memory_space<vmem>>, %arg11: memref<32x32xbf16, #tpu.memory_space<vmem>>, %arg12: memref<32x128xbf16, #tpu.memory_space<vmem>>, %arg13: memref<128x32xbf16, #tpu.memory_space<vmem>>, %arg14: memref<32x32xbf16, #tpu.memory_space<vmem>>, %arg15: memref<32x3xbf16, #tpu.memory_space<vmem>>, %arg16: memref<1x1x3xf32, #tpu.memory_space<vmem>>) attributes {dimension_semantics = [#tpu.dimension_semantics<parallel>], iteration_bounds = array<i64: 2>, scalar_prefetch = 0 : i64, scratch_operands = 0 : i64, tpu.core_type = #tpu.core_type<tc>, window_params = [{transform_indices = @transform_0, window_bounds = array<i64: 1, 8, 4>}, {pipeline_mode = #tpu.pipeline_mode<synchronous>, transform_indices = @transform_1, window_bounds = array<i64: 8, 32>}, {pipeline_mode = #tpu.pipeline_mode<synchronous>, transform_indices = @transform_2, window_bounds = array<i64: 1, 8>}, {pipeline_mode = #tpu.pipeline_mode<synchronous>, transform_indices = @transform_3, window_bounds = array<i64: 19, 128>}, {pipeline_mode = #tpu.pipeline_mode<synchronous>, transform_indices = @transform_4, window_bounds = array<i64: 4, 32>}, {pipeline_mode = #tpu.pipeline_mode<synchronous>, transform_indices = @transform_5, window_bounds = array<i64: 32, 96>}, {pipeline_mode = #tpu.pipeline_mode<synchronous>, transform_indices = @transform_6, window_bounds = array<i64: 32, 32>}, {pipeline_mode = #tpu.pipeline_mode<synchronous>, transform_indices = @transform_7, window_bounds = array<i64: 32, 128>}, {pipeline_mode = #tpu.pipeline_mode<synchronous>, transform_indices = @transform_8, window_bounds = array<i64: 128, 32>}, {pipeline_mode = #tpu.pipeline_mode<synchronous>, transform_indices = @transform_9, window_bounds = array<i64: 32, 96>}, {pipeline_mode = #tpu.pipeline_mode<synchronous>, transform_indices = @transform_10, window_bounds = array<i64: 32, 32>}, {pipeline_mode = #tpu.pipeline_mode<synchronous>, transform_indices = @transform_11, window_bounds = array<i64: 32, 128>}, {pipeline_mode = #tpu.pipeline_mode<synchronous>, transform_indices = @transform_12, window_bounds = array<i64: 128, 32>}, {pipeline_mode = #tpu.pipeline_mode<synchronous>, transform_indices = @transform_13, window_bounds = array<i64: 32, 32>}, {pipeline_mode = #tpu.pipeline_mode<synchronous>, transform_indices = @transform_14, window_bounds = array<i64: 32, 3>}, {transform_indices = @transform_15, window_bounds = array<i64: 1, 1, 3>}]} {
    %c0 = arith.constant 0 : index
    %c0_0 = arith.constant 0 : index
    %0 = vector.load %arg4[%c0, %c0_0] : memref<19x128xf32, #tpu.memory_space<vmem>>, vector<19x128xf32>
    %c0_1 = arith.constant 0 : index
    %c0_2 = arith.constant 0 : index
    %c0_3 = arith.constant 0 : index
    %1 = vector.load %arg1[%c0_1, %c0_2, %c0_3] : memref<1x8x4xf32, #tpu.memory_space<vmem>>, vector<1x8x4xf32>
    %2 = vector.shape_cast %1 : vector<1x8x4xf32> to vector<8x4xf32>
    %3 = arith.truncf %2 : vector<8x4xf32> to vector<8x4xbf16>
    %c0_4 = arith.constant 0 : index
    %c0_5 = arith.constant 0 : index
    %4 = vector.load %arg5[%c0_4, %c0_5] : memref<4x32xbf16, #tpu.memory_space<vmem>>, vector<4x32xbf16>
    %cst = arith.constant dense<0.000000e+00> : vector<8x32xf32>
    %5 = tpu.matmul %3, %4, %cst {dimension_numbers = #tpu.dot_dimension_numbers<[1], [0], [0], [1], [0, 0, 1, 1], [], []>} : vector<8x4xbf16>, vector<4x32xbf16>, vector<8x32xf32> -> vector<8x32xf32>
    %6 = vector.extract_strided_slice %0 {offsets = [0, 0], sizes = [1, 32], strides = [1, 1]} : vector<19x128xf32> to vector<1x32xf32>
    %7 = vector.broadcast %6 : vector<1x32xf32> to vector<8x32xf32>
    %8 = arith.addf %5, %7 : vector<8x32xf32>
    %9 = vector.shape_cast %8 : vector<8x32xf32> to vector<1x8x32xf32>
    %c0_6 = arith.constant 0 : index
    %c0_7 = arith.constant 0 : index
    %10 = vector.load %arg2[%c0_6, %c0_7] : memref<8x32xf32, #tpu.memory_space<vmem>>, vector<8x32xf32>
    %11 = vector.shape_cast %10 : vector<8x32xf32> to vector<1x8x32xf32>
    %12 = arith.addf %9, %11 : vector<1x8x32xf32>
    %13 = vector.shape_cast %12 : vector<1x8x32xf32> to vector<8x32xf32>
    %c0_8 = arith.constant 0 : index
    %c0_9 = arith.constant 0 : index
    %14 = vector.load %arg6[%c0_8, %c0_9] : memref<32x96xbf16, #tpu.memory_space<vmem>>, vector<32x96xbf16>
    %c0_10 = arith.constant 0 : index
    %c0_11 = arith.constant 0 : index
    %15 = vector.load %arg7[%c0_10, %c0_11] : memref<32x32xbf16, #tpu.memory_space<vmem>>, vector<32x32xbf16>
    %c0_12 = arith.constant 0 : index
    %c0_13 = arith.constant 0 : index
    %16 = vector.load %arg8[%c0_12, %c0_13] : memref<32x128xbf16, #tpu.memory_space<vmem>>, vector<32x128xbf16>
    %c0_14 = arith.constant 0 : index
    %c0_15 = arith.constant 0 : index
    %17 = vector.load %arg9[%c0_14, %c0_15] : memref<128x32xbf16, #tpu.memory_space<vmem>>, vector<128x32xbf16>
    %18 = vector.extract_strided_slice %0 {offsets = [1, 0], sizes = [1, 96], strides = [1, 1]} : vector<19x128xf32> to vector<1x96xf32>
    %19 = vector.extract_strided_slice %0 {offsets = [2, 0], sizes = [1, 32], strides = [1, 1]} : vector<19x128xf32> to vector<1x32xf32>
    %20 = vector.extract_strided_slice %0 {offsets = [3, 0], sizes = [1, 32], strides = [1, 1]} : vector<19x128xf32> to vector<1x32xf32>
    %21 = vector.extract_strided_slice %0 {offsets = [4, 0], sizes = [1, 32], strides = [1, 1]} : vector<19x128xf32> to vector<1x32xf32>
    %22 = vector.extract_strided_slice %0 {offsets = [5, 0], sizes = [1, 128], strides = [1, 1]} : vector<19x128xf32> to vector<1x128xf32>
    %23 = vector.extract_strided_slice %0 {offsets = [6, 0], sizes = [1, 32], strides = [1, 1]} : vector<19x128xf32> to vector<1x32xf32>
    %24 = vector.extract_strided_slice %0 {offsets = [7, 0], sizes = [1, 32], strides = [1, 1]} : vector<19x128xf32> to vector<1x32xf32>
    %25 = vector.extract_strided_slice %0 {offsets = [8, 0], sizes = [1, 32], strides = [1, 1]} : vector<19x128xf32> to vector<1x32xf32>
    %26 = arith.truncf %13 : vector<8x32xf32> to vector<8x32xbf16>
    %cst_16 = arith.constant dense<0.000000e+00> : vector<8x96xf32>
    %27 = tpu.matmul %26, %14, %cst_16 {dimension_numbers = #tpu.dot_dimension_numbers<[1], [0], [0], [1], [0, 0, 1, 1], [], []>} : vector<8x32xbf16>, vector<32x96xbf16>, vector<8x96xf32> -> vector<8x96xf32>
    %28 = vector.broadcast %18 : vector<1x96xf32> to vector<8x96xf32>
    %29 = arith.addf %27, %28 : vector<8x96xf32>
    %30 = vector.shape_cast %29 : vector<8x96xf32> to vector<1x8x96xf32>
    %31 = vector.extract_strided_slice %30 {offsets = [0, 0, 0], sizes = [1, 8, 8], strides = [1, 1, 1]} : vector<1x8x96xf32> to vector<1x8x8xf32>
    %32 = arith.truncf %31 : vector<1x8x8xf32> to vector<1x8x8xbf16>
    %33 = vector.extract_strided_slice %30 {offsets = [0, 0, 32], sizes = [1, 8, 8], strides = [1, 1, 1]} : vector<1x8x96xf32> to vector<1x8x8xf32>
    %34 = arith.truncf %33 : vector<1x8x8xf32> to vector<1x8x8xbf16>
    %35 = vector.extract_strided_slice %30 {offsets = [0, 0, 64], sizes = [1, 8, 8], strides = [1, 1, 1]} : vector<1x8x96xf32> to vector<1x8x8xf32>
    %36 = arith.truncf %35 : vector<1x8x8xf32> to vector<1x8x8xbf16>
    "tpu.trace_start"() <{level = 10 : i32, message = "bqd,bkd->bqk"}> : () -> ()
    %cst_17 = arith.constant dense<0.000000e+00> : vector<1x8x8xf32>
    %37 = tpu.matmul %32, %34, %cst_17 {dimension_numbers = #tpu.dot_dimension_numbers<[2], [2], [1], [1], [0, 0, 0, 1, 1, 1], [0], [0]>} : vector<1x8x8xbf16>, vector<1x8x8xbf16>, vector<1x8x8xf32> -> vector<1x8x8xf32>
    "tpu.trace_stop"() : () -> ()
    %cst_18 = arith.constant 0.353553385 : f32
    %38 = vector.broadcast %cst_18 : f32 to vector<1x8x8xf32>
    %39 = arith.mulf %37, %38 : vector<1x8x8xf32>
    %cst_19 = arith.constant dense<0xFF800000> : vector<1x8xf32>
    %40 = vector.multi_reduction <maximumf>, %39, %cst_19 [2] : vector<1x8x8xf32> to vector<1x8xf32>
    %41 = vector.shape_cast %40 : vector<1x8xf32> to vector<1x8x1xf32>
    %42 = vector.broadcast %41 : vector<1x8x1xf32> to vector<1x8x8xf32>
    %43 = arith.subf %39, %42 : vector<1x8x8xf32>
    %44 = math.exp %43 : vector<1x8x8xf32>
    %cst_20 = arith.constant dense<0.000000e+00> : vector<1x8xf32>
    %45 = vector.multi_reduction <add>, %44, %cst_20 [2] : vector<1x8x8xf32> to vector<1x8xf32>
    %46 = vector.shape_cast %45 : vector<1x8xf32> to vector<1x8x1xf32>
    %47 = tpu.reciprocal %46 {approx = true} : vector<1x8x1xf32> -> vector<1x8x1xf32>
    %48 = vector.broadcast %47 : vector<1x8x1xf32> to vector<1x8x8xf32>
    %49 = arith.mulf %44, %48 : vector<1x8x8xf32>
    %50 = arith.truncf %49 : vector<1x8x8xf32> to vector<1x8x8xbf16>
    "tpu.trace_start"() <{level = 10 : i32, message = "bqk,bkd->bqd"}> : () -> ()
    %cst_21 = arith.constant dense<0.000000e+00> : vector<1x8x8xf32>
    %51 = tpu.matmul %50, %36, %cst_21 {dimension_numbers = #tpu.dot_dimension_numbers<[2], [1], [1], [2], [0, 0, 0, 1, 1, 2], [0], [0]>} : vector<1x8x8xbf16>, vector<1x8x8xbf16>, vector<1x8x8xf32> -> vector<1x8x8xf32>
    "tpu.trace_stop"() : () -> ()
    %52 = arith.truncf %51 : vector<1x8x8xf32> to vector<1x8x8xbf16>
    %53 = vector.extract_strided_slice %30 {offsets = [0, 0, 8], sizes = [1, 8, 8], strides = [1, 1, 1]} : vector<1x8x96xf32> to vector<1x8x8xf32>
    %54 = arith.truncf %53 : vector<1x8x8xf32> to vector<1x8x8xbf16>
    %55 = vector.extract_strided_slice %30 {offsets = [0, 0, 40], sizes = [1, 8, 8], strides = [1, 1, 1]} : vector<1x8x96xf32> to vector<1x8x8xf32>
    %56 = arith.truncf %55 : vector<1x8x8xf32> to vector<1x8x8xbf16>
    %57 = vector.extract_strided_slice %30 {offsets = [0, 0, 72], sizes = [1, 8, 8], strides = [1, 1, 1]} : vector<1x8x96xf32> to vector<1x8x8xf32>
    %58 = arith.truncf %57 : vector<1x8x8xf32> to vector<1x8x8xbf16>
    "tpu.trace_start"() <{level = 10 : i32, message = "bqd,bkd->bqk"}> : () -> ()
    %cst_22 = arith.constant dense<0.000000e+00> : vector<1x8x8xf32>
    %59 = tpu.matmul %54, %56, %cst_22 {dimension_numbers = #tpu.dot_dimension_numbers<[2], [2], [1], [1], [0, 0, 0, 1, 1, 1], [0], [0]>} : vector<1x8x8xbf16>, vector<1x8x8xbf16>, vector<1x8x8xf32> -> vector<1x8x8xf32>
    "tpu.trace_stop"() : () -> ()
    %cst_23 = arith.constant 0.353553385 : f32
    %60 = vector.broadcast %cst_23 : f32 to vector<1x8x8xf32>
    %61 = arith.mulf %59, %60 : vector<1x8x8xf32>
    %cst_24 = arith.constant dense<0xFF800000> : vector<1x8xf32>
    %62 = vector.multi_reduction <maximumf>, %61, %cst_24 [2] : vector<1x8x8xf32> to vector<1x8xf32>
    %63 = vector.shape_cast %62 : vector<1x8xf32> to vector<1x8x1xf32>
    %64 = vector.broadcast %63 : vector<1x8x1xf32> to vector<1x8x8xf32>
    %65 = arith.subf %61, %64 : vector<1x8x8xf32>
    %66 = math.exp %65 : vector<1x8x8xf32>
    %cst_25 = arith.constant dense<0.000000e+00> : vector<1x8xf32>
    %67 = vector.multi_reduction <add>, %66, %cst_25 [2] : vector<1x8x8xf32> to vector<1x8xf32>
    %68 = vector.shape_cast %67 : vector<1x8xf32> to vector<1x8x1xf32>
    %69 = tpu.reciprocal %68 {approx = true} : vector<1x8x1xf32> -> vector<1x8x1xf32>
    %70 = vector.broadcast %69 : vector<1x8x1xf32> to vector<1x8x8xf32>
    %71 = arith.mulf %66, %70 : vector<1x8x8xf32>
    %72 = arith.truncf %71 : vector<1x8x8xf32> to vector<1x8x8xbf16>
    "tpu.trace_start"() <{level = 10 : i32, message = "bqk,bkd->bqd"}> : () -> ()
    %cst_26 = arith.constant dense<0.000000e+00> : vector<1x8x8xf32>
    %73 = tpu.matmul %72, %58, %cst_26 {dimension_numbers = #tpu.dot_dimension_numbers<[2], [1], [1], [2], [0, 0, 0, 1, 1, 2], [0], [0]>} : vector<1x8x8xbf16>, vector<1x8x8xbf16>, vector<1x8x8xf32> -> vector<1x8x8xf32>
    "tpu.trace_stop"() : () -> ()
    %74 = arith.truncf %73 : vector<1x8x8xf32> to vector<1x8x8xbf16>
    %75 = vector.extract_strided_slice %30 {offsets = [0, 0, 16], sizes = [1, 8, 8], strides = [1, 1, 1]} : vector<1x8x96xf32> to vector<1x8x8xf32>
    %76 = arith.truncf %75 : vector<1x8x8xf32> to vector<1x8x8xbf16>
    %77 = vector.extract_strided_slice %30 {offsets = [0, 0, 48], sizes = [1, 8, 8], strides = [1, 1, 1]} : vector<1x8x96xf32> to vector<1x8x8xf32>
    %78 = arith.truncf %77 : vector<1x8x8xf32> to vector<1x8x8xbf16>
    %79 = vector.extract_strided_slice %30 {offsets = [0, 0, 80], sizes = [1, 8, 8], strides = [1, 1, 1]} : vector<1x8x96xf32> to vector<1x8x8xf32>
    %80 = arith.truncf %79 : vector<1x8x8xf32> to vector<1x8x8xbf16>
    "tpu.trace_start"() <{level = 10 : i32, message = "bqd,bkd->bqk"}> : () -> ()
    %cst_27 = arith.constant dense<0.000000e+00> : vector<1x8x8xf32>
    %81 = tpu.matmul %76, %78, %cst_27 {dimension_numbers = #tpu.dot_dimension_numbers<[2], [2], [1], [1], [0, 0, 0, 1, 1, 1], [0], [0]>} : vector<1x8x8xbf16>, vector<1x8x8xbf16>, vector<1x8x8xf32> -> vector<1x8x8xf32>
    "tpu.trace_stop"() : () -> ()
    %cst_28 = arith.constant 0.353553385 : f32
    %82 = vector.broadcast %cst_28 : f32 to vector<1x8x8xf32>
    %83 = arith.mulf %81, %82 : vector<1x8x8xf32>
    %cst_29 = arith.constant dense<0xFF800000> : vector<1x8xf32>
    %84 = vector.multi_reduction <maximumf>, %83, %cst_29 [2] : vector<1x8x8xf32> to vector<1x8xf32>
    %85 = vector.shape_cast %84 : vector<1x8xf32> to vector<1x8x1xf32>
    %86 = vector.broadcast %85 : vector<1x8x1xf32> to vector<1x8x8xf32>
    %87 = arith.subf %83, %86 : vector<1x8x8xf32>
    %88 = math.exp %87 : vector<1x8x8xf32>
    %cst_30 = arith.constant dense<0.000000e+00> : vector<1x8xf32>
    %89 = vector.multi_reduction <add>, %88, %cst_30 [2] : vector<1x8x8xf32> to vector<1x8xf32>
    %90 = vector.shape_cast %89 : vector<1x8xf32> to vector<1x8x1xf32>
    %91 = tpu.reciprocal %90 {approx = true} : vector<1x8x1xf32> -> vector<1x8x1xf32>
    %92 = vector.broadcast %91 : vector<1x8x1xf32> to vector<1x8x8xf32>
    %93 = arith.mulf %88, %92 : vector<1x8x8xf32>
    %94 = arith.truncf %93 : vector<1x8x8xf32> to vector<1x8x8xbf16>
    "tpu.trace_start"() <{level = 10 : i32, message = "bqk,bkd->bqd"}> : () -> ()
    %cst_31 = arith.constant dense<0.000000e+00> : vector<1x8x8xf32>
    %95 = tpu.matmul %94, %80, %cst_31 {dimension_numbers = #tpu.dot_dimension_numbers<[2], [1], [1], [2], [0, 0, 0, 1, 1, 2], [0], [0]>} : vector<1x8x8xbf16>, vector<1x8x8xbf16>, vector<1x8x8xf32> -> vector<1x8x8xf32>
    "tpu.trace_stop"() : () -> ()
    %96 = arith.truncf %95 : vector<1x8x8xf32> to vector<1x8x8xbf16>
    %97 = vector.extract_strided_slice %30 {offsets = [0, 0, 24], sizes = [1, 8, 8], strides = [1, 1, 1]} : vector<1x8x96xf32> to vector<1x8x8xf32>
    %98 = arith.truncf %97 : vector<1x8x8xf32> to vector<1x8x8xbf16>
    %99 = vector.extract_strided_slice %30 {offsets = [0, 0, 56], sizes = [1, 8, 8], strides = [1, 1, 1]} : vector<1x8x96xf32> to vector<1x8x8xf32>
    %100 = arith.truncf %99 : vector<1x8x8xf32> to vector<1x8x8xbf16>
    %101 = vector.extract_strided_slice %30 {offsets = [0, 0, 88], sizes = [1, 8, 8], strides = [1, 1, 1]} : vector<1x8x96xf32> to vector<1x8x8xf32>
    %102 = arith.truncf %101 : vector<1x8x8xf32> to vector<1x8x8xbf16>
    "tpu.trace_start"() <{level = 10 : i32, message = "bqd,bkd->bqk"}> : () -> ()
    %cst_32 = arith.constant dense<0.000000e+00> : vector<1x8x8xf32>
    %103 = tpu.matmul %98, %100, %cst_32 {dimension_numbers = #tpu.dot_dimension_numbers<[2], [2], [1], [1], [0, 0, 0, 1, 1, 1], [0], [0]>} : vector<1x8x8xbf16>, vector<1x8x8xbf16>, vector<1x8x8xf32> -> vector<1x8x8xf32>
    "tpu.trace_stop"() : () -> ()
    %cst_33 = arith.constant 0.353553385 : f32
    %104 = vector.broadcast %cst_33 : f32 to vector<1x8x8xf32>
    %105 = arith.mulf %103, %104 : vector<1x8x8xf32>
    %cst_34 = arith.constant dense<0xFF800000> : vector<1x8xf32>
    %106 = vector.multi_reduction <maximumf>, %105, %cst_34 [2] : vector<1x8x8xf32> to vector<1x8xf32>
    %107 = vector.shape_cast %106 : vector<1x8xf32> to vector<1x8x1xf32>
    %108 = vector.broadcast %107 : vector<1x8x1xf32> to vector<1x8x8xf32>
    %109 = arith.subf %105, %108 : vector<1x8x8xf32>
    %110 = math.exp %109 : vector<1x8x8xf32>
    %cst_35 = arith.constant dense<0.000000e+00> : vector<1x8xf32>
    %111 = vector.multi_reduction <add>, %110, %cst_35 [2] : vector<1x8x8xf32> to vector<1x8xf32>
    %112 = vector.shape_cast %111 : vector<1x8xf32> to vector<1x8x1xf32>
    %113 = tpu.reciprocal %112 {approx = true} : vector<1x8x1xf32> -> vector<1x8x1xf32>
    %114 = vector.broadcast %113 : vector<1x8x1xf32> to vector<1x8x8xf32>
    %115 = arith.mulf %110, %114 : vector<1x8x8xf32>
    %116 = arith.truncf %115 : vector<1x8x8xf32> to vector<1x8x8xbf16>
    "tpu.trace_start"() <{level = 10 : i32, message = "bqk,bkd->bqd"}> : () -> ()
    %cst_36 = arith.constant dense<0.000000e+00> : vector<1x8x8xf32>
    %117 = tpu.matmul %116, %102, %cst_36 {dimension_numbers = #tpu.dot_dimension_numbers<[2], [1], [1], [2], [0, 0, 0, 1, 1, 2], [0], [0]>} : vector<1x8x8xbf16>, vector<1x8x8xbf16>, vector<1x8x8xf32> -> vector<1x8x8xf32>
    "tpu.trace_stop"() : () -> ()
    %118 = arith.truncf %117 : vector<1x8x8xf32> to vector<1x8x8xbf16>
    %119 = tpu.concatenate %52, %74, %96, %118 in 2 : vector<1x8x8xbf16>, vector<1x8x8xbf16>, vector<1x8x8xbf16>, vector<1x8x8xbf16> -> vector<1x8x32xbf16>
    %120 = vector.shape_cast %119 : vector<1x8x32xbf16> to vector<8x32xbf16>
    %cst_37 = arith.constant dense<0.000000e+00> : vector<8x32xf32>
    %121 = tpu.matmul %120, %15, %cst_37 {dimension_numbers = #tpu.dot_dimension_numbers<[1], [0], [0], [1], [0, 0, 1, 1], [], []>} : vector<8x32xbf16>, vector<32x32xbf16>, vector<8x32xf32> -> vector<8x32xf32>
    %122 = vector.broadcast %19 : vector<1x32xf32> to vector<8x32xf32>
    %123 = arith.addf %121, %122 : vector<8x32xf32>
    %124 = arith.addf %13, %123 : vector<8x32xf32>
    %cst_38 = arith.constant dense<0.000000e+00> : vector<8xf32>
    %125 = vector.multi_reduction <add>, %124, %cst_38 [1] : vector<8x32xf32> to vector<8xf32>
    %126 = vector.shape_cast %125 : vector<8xf32> to vector<8x1xf32>
    %cst_39 = arith.constant 3.200000e+01 : f32
    %127 = vector.broadcast %cst_39 : f32 to vector<8x1xf32>
    %128 = arith.divf %126, %127 : vector<8x1xf32>
    %129 = vector.broadcast %128 : vector<8x1xf32> to vector<8x32xf32>
    %130 = arith.subf %124, %129 : vector<8x32xf32>
    %131 = arith.mulf %130, %130 : vector<8x32xf32>
    %cst_40 = arith.constant dense<0.000000e+00> : vector<8xf32>
    %132 = vector.multi_reduction <add>, %131, %cst_40 [1] : vector<8x32xf32> to vector<8xf32>
    %133 = vector.shape_cast %132 : vector<8xf32> to vector<8x1xf32>
    %cst_41 = arith.constant 3.200000e+01 : f32
    %134 = vector.broadcast %cst_41 : f32 to vector<8x1xf32>
    %135 = arith.divf %133, %134 : vector<8x1xf32>
    %136 = vector.broadcast %128 : vector<8x1xf32> to vector<8x32xf32>
    %137 = arith.subf %124, %136 : vector<8x32xf32>
    %cst_42 = arith.constant 9.99999974E-6 : f32
    %138 = vector.broadcast %cst_42 : f32 to vector<8x1xf32>
    %139 = arith.addf %135, %138 : vector<8x1xf32>
    %140 = math.rsqrt %139 : vector<8x1xf32>
    %141 = vector.broadcast %140 : vector<8x1xf32> to vector<8x32xf32>
    %142 = arith.mulf %137, %141 : vector<8x32xf32>
    %143 = vector.broadcast %20 : vector<1x32xf32> to vector<8x32xf32>
    %144 = arith.mulf %142, %143 : vector<8x32xf32>
    %145 = vector.broadcast %21 : vector<1x32xf32> to vector<8x32xf32>
    %146 = arith.addf %144, %145 : vector<8x32xf32>
    %147 = arith.truncf %146 : vector<8x32xf32> to vector<8x32xbf16>
    %cst_43 = arith.constant dense<0.000000e+00> : vector<8x128xf32>
    %148 = tpu.matmul %147, %16, %cst_43 {dimension_numbers = #tpu.dot_dimension_numbers<[1], [0], [0], [1], [0, 0, 1, 1], [], []>} : vector<8x32xbf16>, vector<32x128xbf16>, vector<8x128xf32> -> vector<8x128xf32>
    %149 = vector.broadcast %22 : vector<1x128xf32> to vector<8x128xf32>
    %150 = arith.addf %148, %149 : vector<8x128xf32>
    %cst_44 = arith.constant 0.000000e+00 : f32
    %151 = vector.broadcast %cst_44 : f32 to vector<8x128xf32>
    %152 = arith.maximumf %150, %151 : vector<8x128xf32>
    %153 = arith.truncf %152 : vector<8x128xf32> to vector<8x128xbf16>
    %cst_45 = arith.constant dense<0.000000e+00> : vector<8x32xf32>
    %154 = tpu.matmul %153, %17, %cst_45 {dimension_numbers = #tpu.dot_dimension_numbers<[1], [0], [0], [1], [0, 0, 1, 1], [], []>} : vector<8x128xbf16>, vector<128x32xbf16>, vector<8x32xf32> -> vector<8x32xf32>
    %155 = vector.broadcast %23 : vector<1x32xf32> to vector<8x32xf32>
    %156 = arith.addf %154, %155 : vector<8x32xf32>
    %157 = arith.addf %146, %156 : vector<8x32xf32>
    %cst_46 = arith.constant dense<0.000000e+00> : vector<8xf32>
    %158 = vector.multi_reduction <add>, %157, %cst_46 [1] : vector<8x32xf32> to vector<8xf32>
    %159 = vector.shape_cast %158 : vector<8xf32> to vector<8x1xf32>
    %cst_47 = arith.constant 3.200000e+01 : f32
    %160 = vector.broadcast %cst_47 : f32 to vector<8x1xf32>
    %161 = arith.divf %159, %160 : vector<8x1xf32>
    %162 = vector.broadcast %161 : vector<8x1xf32> to vector<8x32xf32>
    %163 = arith.subf %157, %162 : vector<8x32xf32>
    %164 = arith.mulf %163, %163 : vector<8x32xf32>
    %cst_48 = arith.constant dense<0.000000e+00> : vector<8xf32>
    %165 = vector.multi_reduction <add>, %164, %cst_48 [1] : vector<8x32xf32> to vector<8xf32>
    %166 = vector.shape_cast %165 : vector<8xf32> to vector<8x1xf32>
    %cst_49 = arith.constant 3.200000e+01 : f32
    %167 = vector.broadcast %cst_49 : f32 to vector<8x1xf32>
    %168 = arith.divf %166, %167 : vector<8x1xf32>
    %169 = vector.broadcast %161 : vector<8x1xf32> to vector<8x32xf32>
    %170 = arith.subf %157, %169 : vector<8x32xf32>
    %cst_50 = arith.constant 9.99999974E-6 : f32
    %171 = vector.broadcast %cst_50 : f32 to vector<8x1xf32>
    %172 = arith.addf %168, %171 : vector<8x1xf32>
    %173 = math.rsqrt %172 : vector<8x1xf32>
    %174 = vector.broadcast %173 : vector<8x1xf32> to vector<8x32xf32>
    %175 = arith.mulf %170, %174 : vector<8x32xf32>
    %176 = vector.broadcast %24 : vector<1x32xf32> to vector<8x32xf32>
    %177 = arith.mulf %175, %176 : vector<8x32xf32>
    %178 = vector.broadcast %25 : vector<1x32xf32> to vector<8x32xf32>
    %179 = arith.addf %177, %178 : vector<8x32xf32>
    %c0_51 = arith.constant 0 : index
    %c0_52 = arith.constant 0 : index
    %180 = vector.load %arg10[%c0_51, %c0_52] : memref<32x96xbf16, #tpu.memory_space<vmem>>, vector<32x96xbf16>
    %c0_53 = arith.constant 0 : index
    %c0_54 = arith.constant 0 : index
    %181 = vector.load %arg11[%c0_53, %c0_54] : memref<32x32xbf16, #tpu.memory_space<vmem>>, vector<32x32xbf16>
    %c0_55 = arith.constant 0 : index
    %c0_56 = arith.constant 0 : index
    %182 = vector.load %arg12[%c0_55, %c0_56] : memref<32x128xbf16, #tpu.memory_space<vmem>>, vector<32x128xbf16>
    %c0_57 = arith.constant 0 : index
    %c0_58 = arith.constant 0 : index
    %183 = vector.load %arg13[%c0_57, %c0_58] : memref<128x32xbf16, #tpu.memory_space<vmem>>, vector<128x32xbf16>
    %184 = vector.extract_strided_slice %0 {offsets = [9, 0], sizes = [1, 96], strides = [1, 1]} : vector<19x128xf32> to vector<1x96xf32>
    %185 = vector.extract_strided_slice %0 {offsets = [10, 0], sizes = [1, 32], strides = [1, 1]} : vector<19x128xf32> to vector<1x32xf32>
    %186 = vector.extract_strided_slice %0 {offsets = [11, 0], sizes = [1, 32], strides = [1, 1]} : vector<19x128xf32> to vector<1x32xf32>
    %187 = vector.extract_strided_slice %0 {offsets = [12, 0], sizes = [1, 32], strides = [1, 1]} : vector<19x128xf32> to vector<1x32xf32>
    %188 = vector.extract_strided_slice %0 {offsets = [13, 0], sizes = [1, 128], strides = [1, 1]} : vector<19x128xf32> to vector<1x128xf32>
    %189 = vector.extract_strided_slice %0 {offsets = [14, 0], sizes = [1, 32], strides = [1, 1]} : vector<19x128xf32> to vector<1x32xf32>
    %190 = vector.extract_strided_slice %0 {offsets = [15, 0], sizes = [1, 32], strides = [1, 1]} : vector<19x128xf32> to vector<1x32xf32>
    %191 = vector.extract_strided_slice %0 {offsets = [16, 0], sizes = [1, 32], strides = [1, 1]} : vector<19x128xf32> to vector<1x32xf32>
    %192 = arith.truncf %179 : vector<8x32xf32> to vector<8x32xbf16>
    %cst_59 = arith.constant dense<0.000000e+00> : vector<8x96xf32>
    %193 = tpu.matmul %192, %180, %cst_59 {dimension_numbers = #tpu.dot_dimension_numbers<[1], [0], [0], [1], [0, 0, 1, 1], [], []>} : vector<8x32xbf16>, vector<32x96xbf16>, vector<8x96xf32> -> vector<8x96xf32>
    %194 = vector.broadcast %184 : vector<1x96xf32> to vector<8x96xf32>
    %195 = arith.addf %193, %194 : vector<8x96xf32>
    %196 = vector.shape_cast %195 : vector<8x96xf32> to vector<1x8x96xf32>
    %197 = vector.extract_strided_slice %196 {offsets = [0, 0, 0], sizes = [1, 8, 8], strides = [1, 1, 1]} : vector<1x8x96xf32> to vector<1x8x8xf32>
    %198 = arith.truncf %197 : vector<1x8x8xf32> to vector<1x8x8xbf16>
    %199 = vector.extract_strided_slice %196 {offsets = [0, 0, 32], sizes = [1, 8, 8], strides = [1, 1, 1]} : vector<1x8x96xf32> to vector<1x8x8xf32>
    %200 = arith.truncf %199 : vector<1x8x8xf32> to vector<1x8x8xbf16>
    %201 = vector.extract_strided_slice %196 {offsets = [0, 0, 64], sizes = [1, 8, 8], strides = [1, 1, 1]} : vector<1x8x96xf32> to vector<1x8x8xf32>
    %202 = arith.truncf %201 : vector<1x8x8xf32> to vector<1x8x8xbf16>
    "tpu.trace_start"() <{level = 10 : i32, message = "bqd,bkd->bqk"}> : () -> ()
    %cst_60 = arith.constant dense<0.000000e+00> : vector<1x8x8xf32>
    %203 = tpu.matmul %198, %200, %cst_60 {dimension_numbers = #tpu.dot_dimension_numbers<[2], [2], [1], [1], [0, 0, 0, 1, 1, 1], [0], [0]>} : vector<1x8x8xbf16>, vector<1x8x8xbf16>, vector<1x8x8xf32> -> vector<1x8x8xf32>
    "tpu.trace_stop"() : () -> ()
    %cst_61 = arith.constant 0.353553385 : f32
    %204 = vector.broadcast %cst_61 : f32 to vector<1x8x8xf32>
    %205 = arith.mulf %203, %204 : vector<1x8x8xf32>
    %cst_62 = arith.constant dense<0xFF800000> : vector<1x8xf32>
    %206 = vector.multi_reduction <maximumf>, %205, %cst_62 [2] : vector<1x8x8xf32> to vector<1x8xf32>
    %207 = vector.shape_cast %206 : vector<1x8xf32> to vector<1x8x1xf32>
    %208 = vector.broadcast %207 : vector<1x8x1xf32> to vector<1x8x8xf32>
    %209 = arith.subf %205, %208 : vector<1x8x8xf32>
    %210 = math.exp %209 : vector<1x8x8xf32>
    %cst_63 = arith.constant dense<0.000000e+00> : vector<1x8xf32>
    %211 = vector.multi_reduction <add>, %210, %cst_63 [2] : vector<1x8x8xf32> to vector<1x8xf32>
    %212 = vector.shape_cast %211 : vector<1x8xf32> to vector<1x8x1xf32>
    %213 = tpu.reciprocal %212 {approx = true} : vector<1x8x1xf32> -> vector<1x8x1xf32>
    %214 = vector.broadcast %213 : vector<1x8x1xf32> to vector<1x8x8xf32>
    %215 = arith.mulf %210, %214 : vector<1x8x8xf32>
    %216 = arith.truncf %215 : vector<1x8x8xf32> to vector<1x8x8xbf16>
    "tpu.trace_start"() <{level = 10 : i32, message = "bqk,bkd->bqd"}> : () -> ()
    %cst_64 = arith.constant dense<0.000000e+00> : vector<1x8x8xf32>
    %217 = tpu.matmul %216, %202, %cst_64 {dimension_numbers = #tpu.dot_dimension_numbers<[2], [1], [1], [2], [0, 0, 0, 1, 1, 2], [0], [0]>} : vector<1x8x8xbf16>, vector<1x8x8xbf16>, vector<1x8x8xf32> -> vector<1x8x8xf32>
    "tpu.trace_stop"() : () -> ()
    %218 = arith.truncf %217 : vector<1x8x8xf32> to vector<1x8x8xbf16>
    %219 = vector.extract_strided_slice %196 {offsets = [0, 0, 8], sizes = [1, 8, 8], strides = [1, 1, 1]} : vector<1x8x96xf32> to vector<1x8x8xf32>
    %220 = arith.truncf %219 : vector<1x8x8xf32> to vector<1x8x8xbf16>
    %221 = vector.extract_strided_slice %196 {offsets = [0, 0, 40], sizes = [1, 8, 8], strides = [1, 1, 1]} : vector<1x8x96xf32> to vector<1x8x8xf32>
    %222 = arith.truncf %221 : vector<1x8x8xf32> to vector<1x8x8xbf16>
    %223 = vector.extract_strided_slice %196 {offsets = [0, 0, 72], sizes = [1, 8, 8], strides = [1, 1, 1]} : vector<1x8x96xf32> to vector<1x8x8xf32>
    %224 = arith.truncf %223 : vector<1x8x8xf32> to vector<1x8x8xbf16>
    "tpu.trace_start"() <{level = 10 : i32, message = "bqd,bkd->bqk"}> : () -> ()
    %cst_65 = arith.constant dense<0.000000e+00> : vector<1x8x8xf32>
    %225 = tpu.matmul %220, %222, %cst_65 {dimension_numbers = #tpu.dot_dimension_numbers<[2], [2], [1], [1], [0, 0, 0, 1, 1, 1], [0], [0]>} : vector<1x8x8xbf16>, vector<1x8x8xbf16>, vector<1x8x8xf32> -> vector<1x8x8xf32>
    "tpu.trace_stop"() : () -> ()
    %cst_66 = arith.constant 0.353553385 : f32
    %226 = vector.broadcast %cst_66 : f32 to vector<1x8x8xf32>
    %227 = arith.mulf %225, %226 : vector<1x8x8xf32>
    %cst_67 = arith.constant dense<0xFF800000> : vector<1x8xf32>
    %228 = vector.multi_reduction <maximumf>, %227, %cst_67 [2] : vector<1x8x8xf32> to vector<1x8xf32>
    %229 = vector.shape_cast %228 : vector<1x8xf32> to vector<1x8x1xf32>
    %230 = vector.broadcast %229 : vector<1x8x1xf32> to vector<1x8x8xf32>
    %231 = arith.subf %227, %230 : vector<1x8x8xf32>
    %232 = math.exp %231 : vector<1x8x8xf32>
    %cst_68 = arith.constant dense<0.000000e+00> : vector<1x8xf32>
    %233 = vector.multi_reduction <add>, %232, %cst_68 [2] : vector<1x8x8xf32> to vector<1x8xf32>
    %234 = vector.shape_cast %233 : vector<1x8xf32> to vector<1x8x1xf32>
    %235 = tpu.reciprocal %234 {approx = true} : vector<1x8x1xf32> -> vector<1x8x1xf32>
    %236 = vector.broadcast %235 : vector<1x8x1xf32> to vector<1x8x8xf32>
    %237 = arith.mulf %232, %236 : vector<1x8x8xf32>
    %238 = arith.truncf %237 : vector<1x8x8xf32> to vector<1x8x8xbf16>
    "tpu.trace_start"() <{level = 10 : i32, message = "bqk,bkd->bqd"}> : () -> ()
    %cst_69 = arith.constant dense<0.000000e+00> : vector<1x8x8xf32>
    %239 = tpu.matmul %238, %224, %cst_69 {dimension_numbers = #tpu.dot_dimension_numbers<[2], [1], [1], [2], [0, 0, 0, 1, 1, 2], [0], [0]>} : vector<1x8x8xbf16>, vector<1x8x8xbf16>, vector<1x8x8xf32> -> vector<1x8x8xf32>
    "tpu.trace_stop"() : () -> ()
    %240 = arith.truncf %239 : vector<1x8x8xf32> to vector<1x8x8xbf16>
    %241 = vector.extract_strided_slice %196 {offsets = [0, 0, 16], sizes = [1, 8, 8], strides = [1, 1, 1]} : vector<1x8x96xf32> to vector<1x8x8xf32>
    %242 = arith.truncf %241 : vector<1x8x8xf32> to vector<1x8x8xbf16>
    %243 = vector.extract_strided_slice %196 {offsets = [0, 0, 48], sizes = [1, 8, 8], strides = [1, 1, 1]} : vector<1x8x96xf32> to vector<1x8x8xf32>
    %244 = arith.truncf %243 : vector<1x8x8xf32> to vector<1x8x8xbf16>
    %245 = vector.extract_strided_slice %196 {offsets = [0, 0, 80], sizes = [1, 8, 8], strides = [1, 1, 1]} : vector<1x8x96xf32> to vector<1x8x8xf32>
    %246 = arith.truncf %245 : vector<1x8x8xf32> to vector<1x8x8xbf16>
    "tpu.trace_start"() <{level = 10 : i32, message = "bqd,bkd->bqk"}> : () -> ()
    %cst_70 = arith.constant dense<0.000000e+00> : vector<1x8x8xf32>
    %247 = tpu.matmul %242, %244, %cst_70 {dimension_numbers = #tpu.dot_dimension_numbers<[2], [2], [1], [1], [0, 0, 0, 1, 1, 1], [0], [0]>} : vector<1x8x8xbf16>, vector<1x8x8xbf16>, vector<1x8x8xf32> -> vector<1x8x8xf32>
    "tpu.trace_stop"() : () -> ()
    %cst_71 = arith.constant 0.353553385 : f32
    %248 = vector.broadcast %cst_71 : f32 to vector<1x8x8xf32>
    %249 = arith.mulf %247, %248 : vector<1x8x8xf32>
    %cst_72 = arith.constant dense<0xFF800000> : vector<1x8xf32>
    %250 = vector.multi_reduction <maximumf>, %249, %cst_72 [2] : vector<1x8x8xf32> to vector<1x8xf32>
    %251 = vector.shape_cast %250 : vector<1x8xf32> to vector<1x8x1xf32>
    %252 = vector.broadcast %251 : vector<1x8x1xf32> to vector<1x8x8xf32>
    %253 = arith.subf %249, %252 : vector<1x8x8xf32>
    %254 = math.exp %253 : vector<1x8x8xf32>
    %cst_73 = arith.constant dense<0.000000e+00> : vector<1x8xf32>
    %255 = vector.multi_reduction <add>, %254, %cst_73 [2] : vector<1x8x8xf32> to vector<1x8xf32>
    %256 = vector.shape_cast %255 : vector<1x8xf32> to vector<1x8x1xf32>
    %257 = tpu.reciprocal %256 {approx = true} : vector<1x8x1xf32> -> vector<1x8x1xf32>
    %258 = vector.broadcast %257 : vector<1x8x1xf32> to vector<1x8x8xf32>
    %259 = arith.mulf %254, %258 : vector<1x8x8xf32>
    %260 = arith.truncf %259 : vector<1x8x8xf32> to vector<1x8x8xbf16>
    "tpu.trace_start"() <{level = 10 : i32, message = "bqk,bkd->bqd"}> : () -> ()
    %cst_74 = arith.constant dense<0.000000e+00> : vector<1x8x8xf32>
    %261 = tpu.matmul %260, %246, %cst_74 {dimension_numbers = #tpu.dot_dimension_numbers<[2], [1], [1], [2], [0, 0, 0, 1, 1, 2], [0], [0]>} : vector<1x8x8xbf16>, vector<1x8x8xbf16>, vector<1x8x8xf32> -> vector<1x8x8xf32>
    "tpu.trace_stop"() : () -> ()
    %262 = arith.truncf %261 : vector<1x8x8xf32> to vector<1x8x8xbf16>
    %263 = vector.extract_strided_slice %196 {offsets = [0, 0, 24], sizes = [1, 8, 8], strides = [1, 1, 1]} : vector<1x8x96xf32> to vector<1x8x8xf32>
    %264 = arith.truncf %263 : vector<1x8x8xf32> to vector<1x8x8xbf16>
    %265 = vector.extract_strided_slice %196 {offsets = [0, 0, 56], sizes = [1, 8, 8], strides = [1, 1, 1]} : vector<1x8x96xf32> to vector<1x8x8xf32>
    %266 = arith.truncf %265 : vector<1x8x8xf32> to vector<1x8x8xbf16>
    %267 = vector.extract_strided_slice %196 {offsets = [0, 0, 88], sizes = [1, 8, 8], strides = [1, 1, 1]} : vector<1x8x96xf32> to vector<1x8x8xf32>
    %268 = arith.truncf %267 : vector<1x8x8xf32> to vector<1x8x8xbf16>
    "tpu.trace_start"() <{level = 10 : i32, message = "bqd,bkd->bqk"}> : () -> ()
    %cst_75 = arith.constant dense<0.000000e+00> : vector<1x8x8xf32>
    %269 = tpu.matmul %264, %266, %cst_75 {dimension_numbers = #tpu.dot_dimension_numbers<[2], [2], [1], [1], [0, 0, 0, 1, 1, 1], [0], [0]>} : vector<1x8x8xbf16>, vector<1x8x8xbf16>, vector<1x8x8xf32> -> vector<1x8x8xf32>
    "tpu.trace_stop"() : () -> ()
    %cst_76 = arith.constant 0.353553385 : f32
    %270 = vector.broadcast %cst_76 : f32 to vector<1x8x8xf32>
    %271 = arith.mulf %269, %270 : vector<1x8x8xf32>
    %cst_77 = arith.constant dense<0xFF800000> : vector<1x8xf32>
    %272 = vector.multi_reduction <maximumf>, %271, %cst_77 [2] : vector<1x8x8xf32> to vector<1x8xf32>
    %273 = vector.shape_cast %272 : vector<1x8xf32> to vector<1x8x1xf32>
    %274 = vector.broadcast %273 : vector<1x8x1xf32> to vector<1x8x8xf32>
    %275 = arith.subf %271, %274 : vector<1x8x8xf32>
    %276 = math.exp %275 : vector<1x8x8xf32>
    %cst_78 = arith.constant dense<0.000000e+00> : vector<1x8xf32>
    %277 = vector.multi_reduction <add>, %276, %cst_78 [2] : vector<1x8x8xf32> to vector<1x8xf32>
    %278 = vector.shape_cast %277 : vector<1x8xf32> to vector<1x8x1xf32>
    %279 = tpu.reciprocal %278 {approx = true} : vector<1x8x1xf32> -> vector<1x8x1xf32>
    %280 = vector.broadcast %279 : vector<1x8x1xf32> to vector<1x8x8xf32>
    %281 = arith.mulf %276, %280 : vector<1x8x8xf32>
    %282 = arith.truncf %281 : vector<1x8x8xf32> to vector<1x8x8xbf16>
    "tpu.trace_start"() <{level = 10 : i32, message = "bqk,bkd->bqd"}> : () -> ()
    %cst_79 = arith.constant dense<0.000000e+00> : vector<1x8x8xf32>
    %283 = tpu.matmul %282, %268, %cst_79 {dimension_numbers = #tpu.dot_dimension_numbers<[2], [1], [1], [2], [0, 0, 0, 1, 1, 2], [0], [0]>} : vector<1x8x8xbf16>, vector<1x8x8xbf16>, vector<1x8x8xf32> -> vector<1x8x8xf32>
    "tpu.trace_stop"() : () -> ()
    %284 = arith.truncf %283 : vector<1x8x8xf32> to vector<1x8x8xbf16>
    %285 = tpu.concatenate %218, %240, %262, %284 in 2 : vector<1x8x8xbf16>, vector<1x8x8xbf16>, vector<1x8x8xbf16>, vector<1x8x8xbf16> -> vector<1x8x32xbf16>
    %286 = vector.shape_cast %285 : vector<1x8x32xbf16> to vector<8x32xbf16>
    %cst_80 = arith.constant dense<0.000000e+00> : vector<8x32xf32>
    %287 = tpu.matmul %286, %181, %cst_80 {dimension_numbers = #tpu.dot_dimension_numbers<[1], [0], [0], [1], [0, 0, 1, 1], [], []>} : vector<8x32xbf16>, vector<32x32xbf16>, vector<8x32xf32> -> vector<8x32xf32>
    %288 = vector.broadcast %185 : vector<1x32xf32> to vector<8x32xf32>
    %289 = arith.addf %287, %288 : vector<8x32xf32>
    %290 = arith.addf %179, %289 : vector<8x32xf32>
    %cst_81 = arith.constant dense<0.000000e+00> : vector<8xf32>
    %291 = vector.multi_reduction <add>, %290, %cst_81 [1] : vector<8x32xf32> to vector<8xf32>
    %292 = vector.shape_cast %291 : vector<8xf32> to vector<8x1xf32>
    %cst_82 = arith.constant 3.200000e+01 : f32
    %293 = vector.broadcast %cst_82 : f32 to vector<8x1xf32>
    %294 = arith.divf %292, %293 : vector<8x1xf32>
    %295 = vector.broadcast %294 : vector<8x1xf32> to vector<8x32xf32>
    %296 = arith.subf %290, %295 : vector<8x32xf32>
    %297 = arith.mulf %296, %296 : vector<8x32xf32>
    %cst_83 = arith.constant dense<0.000000e+00> : vector<8xf32>
    %298 = vector.multi_reduction <add>, %297, %cst_83 [1] : vector<8x32xf32> to vector<8xf32>
    %299 = vector.shape_cast %298 : vector<8xf32> to vector<8x1xf32>
    %cst_84 = arith.constant 3.200000e+01 : f32
    %300 = vector.broadcast %cst_84 : f32 to vector<8x1xf32>
    %301 = arith.divf %299, %300 : vector<8x1xf32>
    %302 = vector.broadcast %294 : vector<8x1xf32> to vector<8x32xf32>
    %303 = arith.subf %290, %302 : vector<8x32xf32>
    %cst_85 = arith.constant 9.99999974E-6 : f32
    %304 = vector.broadcast %cst_85 : f32 to vector<8x1xf32>
    %305 = arith.addf %301, %304 : vector<8x1xf32>
    %306 = math.rsqrt %305 : vector<8x1xf32>
    %307 = vector.broadcast %306 : vector<8x1xf32> to vector<8x32xf32>
    %308 = arith.mulf %303, %307 : vector<8x32xf32>
    %309 = vector.broadcast %186 : vector<1x32xf32> to vector<8x32xf32>
    %310 = arith.mulf %308, %309 : vector<8x32xf32>
    %311 = vector.broadcast %187 : vector<1x32xf32> to vector<8x32xf32>
    %312 = arith.addf %310, %311 : vector<8x32xf32>
    %313 = arith.truncf %312 : vector<8x32xf32> to vector<8x32xbf16>
    %cst_86 = arith.constant dense<0.000000e+00> : vector<8x128xf32>
    %314 = tpu.matmul %313, %182, %cst_86 {dimension_numbers = #tpu.dot_dimension_numbers<[1], [0], [0], [1], [0, 0, 1, 1], [], []>} : vector<8x32xbf16>, vector<32x128xbf16>, vector<8x128xf32> -> vector<8x128xf32>
    %315 = vector.broadcast %188 : vector<1x128xf32> to vector<8x128xf32>
    %316 = arith.addf %314, %315 : vector<8x128xf32>
    %cst_87 = arith.constant 0.000000e+00 : f32
    %317 = vector.broadcast %cst_87 : f32 to vector<8x128xf32>
    %318 = arith.maximumf %316, %317 : vector<8x128xf32>
    %319 = arith.truncf %318 : vector<8x128xf32> to vector<8x128xbf16>
    %cst_88 = arith.constant dense<0.000000e+00> : vector<8x32xf32>
    %320 = tpu.matmul %319, %183, %cst_88 {dimension_numbers = #tpu.dot_dimension_numbers<[1], [0], [0], [1], [0, 0, 1, 1], [], []>} : vector<8x128xbf16>, vector<128x32xbf16>, vector<8x32xf32> -> vector<8x32xf32>
    %321 = vector.broadcast %189 : vector<1x32xf32> to vector<8x32xf32>
    %322 = arith.addf %320, %321 : vector<8x32xf32>
    %323 = arith.addf %312, %322 : vector<8x32xf32>
    %cst_89 = arith.constant dense<0.000000e+00> : vector<8xf32>
    %324 = vector.multi_reduction <add>, %323, %cst_89 [1] : vector<8x32xf32> to vector<8xf32>
    %325 = vector.shape_cast %324 : vector<8xf32> to vector<8x1xf32>
    %cst_90 = arith.constant 3.200000e+01 : f32
    %326 = vector.broadcast %cst_90 : f32 to vector<8x1xf32>
    %327 = arith.divf %325, %326 : vector<8x1xf32>
    %328 = vector.broadcast %327 : vector<8x1xf32> to vector<8x32xf32>
    %329 = arith.subf %323, %328 : vector<8x32xf32>
    %330 = arith.mulf %329, %329 : vector<8x32xf32>
    %cst_91 = arith.constant dense<0.000000e+00> : vector<8xf32>
    %331 = vector.multi_reduction <add>, %330, %cst_91 [1] : vector<8x32xf32> to vector<8xf32>
    %332 = vector.shape_cast %331 : vector<8xf32> to vector<8x1xf32>
    %cst_92 = arith.constant 3.200000e+01 : f32
    %333 = vector.broadcast %cst_92 : f32 to vector<8x1xf32>
    %334 = arith.divf %332, %333 : vector<8x1xf32>
    %335 = vector.broadcast %327 : vector<8x1xf32> to vector<8x32xf32>
    %336 = arith.subf %323, %335 : vector<8x32xf32>
    %cst_93 = arith.constant 9.99999974E-6 : f32
    %337 = vector.broadcast %cst_93 : f32 to vector<8x1xf32>
    %338 = arith.addf %334, %337 : vector<8x1xf32>
    %339 = math.rsqrt %338 : vector<8x1xf32>
    %340 = vector.broadcast %339 : vector<8x1xf32> to vector<8x32xf32>
    %341 = arith.mulf %336, %340 : vector<8x32xf32>
    %342 = vector.broadcast %190 : vector<1x32xf32> to vector<8x32xf32>
    %343 = arith.mulf %341, %342 : vector<8x32xf32>
    %344 = vector.broadcast %191 : vector<1x32xf32> to vector<8x32xf32>
    %345 = arith.addf %343, %344 : vector<8x32xf32>
    %c0_94 = arith.constant 0 : index
    %c0_95 = arith.constant 0 : index
    %346 = vector.load %arg3[%c0_94, %c0_95] : memref<1x8xf32, #tpu.memory_space<vmem>>, vector<1x8xf32>
    %cst_96 = arith.constant dense<0.000000e+00> : vector<1x32xf32>
    %347 = tpu.matmul %346, %345, %cst_96 {dimension_numbers = #tpu.dot_dimension_numbers<[1], [0], [0], [1], [0, 0, 1, 1], [], []>} : vector<1x8xf32>, vector<8x32xf32>, vector<1x32xf32> -> vector<1x32xf32>
    %348 = arith.truncf %347 : vector<1x32xf32> to vector<1x32xbf16>
    %c0_97 = arith.constant 0 : index
    %c0_98 = arith.constant 0 : index
    %349 = vector.load %arg14[%c0_97, %c0_98] : memref<32x32xbf16, #tpu.memory_space<vmem>>, vector<32x32xbf16>
    %cst_99 = arith.constant dense<0.000000e+00> : vector<1x32xf32>
    %350 = tpu.matmul %348, %349, %cst_99 {dimension_numbers = #tpu.dot_dimension_numbers<[1], [0], [0], [1], [0, 0, 1, 1], [], []>} : vector<1x32xbf16>, vector<32x32xbf16>, vector<1x32xf32> -> vector<1x32xf32>
    %351 = vector.extract_strided_slice %0 {offsets = [17, 0], sizes = [1, 32], strides = [1, 1]} : vector<19x128xf32> to vector<1x32xf32>
    %352 = arith.addf %350, %351 : vector<1x32xf32>
    %cst_100 = arith.constant 0.000000e+00 : f32
    %353 = vector.broadcast %cst_100 : f32 to vector<1x32xf32>
    %354 = arith.maximumf %352, %353 : vector<1x32xf32>
    %355 = arith.truncf %354 : vector<1x32xf32> to vector<1x32xbf16>
    %c0_101 = arith.constant 0 : index
    %c0_102 = arith.constant 0 : index
    %356 = vector.load %arg15[%c0_101, %c0_102] : memref<32x3xbf16, #tpu.memory_space<vmem>>, vector<32x3xbf16>
    %cst_103 = arith.constant dense<0.000000e+00> : vector<1x3xf32>
    %357 = tpu.matmul %355, %356, %cst_103 {dimension_numbers = #tpu.dot_dimension_numbers<[1], [0], [0], [1], [0, 0, 1, 1], [], []>} : vector<1x32xbf16>, vector<32x3xbf16>, vector<1x3xf32> -> vector<1x3xf32>
    %358 = vector.extract_strided_slice %0 {offsets = [18, 0], sizes = [1, 3], strides = [1, 1]} : vector<19x128xf32> to vector<1x3xf32>
    %359 = arith.addf %357, %358 : vector<1x3xf32>
    %360 = vector.shape_cast %359 : vector<1x3xf32> to vector<1x1x3xf32>
    %c0_104 = arith.constant 0 : index
    %c0_105 = arith.constant 0 : index
    %c0_106 = arith.constant 0 : index
    %361 = vector.load %arg16[%c0_104, %c0_105, %c0_106] : memref<1x1x3xf32, #tpu.memory_space<vmem>>, vector<1x1x3xf32>
    tpu.vector_store %arg16[%c0_104, %c0_105, %c0_106], %360 {strides = array<i32>} : memref<1x1x3xf32, #tpu.memory_space<vmem>>, vector<1x1x3xf32>,
    return
  }
  func.func @transform_0(%arg0: i32) -> (i32, i32, i32) {
    %c0_i32 = arith.constant 0 : i32
    %c0_i32_0 = arith.constant 0 : i32
    %c0_i32_1 = arith.constant 0 : i32
    return %arg0, %c0_i32, %c0_i32_0 : i32, i32, i32
  }
  func.func @transform_1(%arg0: i32) -> (i32, i32) {
    %c0_i32 = arith.constant 0 : i32
    %c0_i32_0 = arith.constant 0 : i32
    %c0_i32_1 = arith.constant 0 : i32
    return %c0_i32, %c0_i32_0 : i32, i32
  }
  func.func @transform_2(%arg0: i32) -> (i32, i32) {
    %c0_i32 = arith.constant 0 : i32
    %c0_i32_0 = arith.constant 0 : i32
    %c0_i32_1 = arith.constant 0 : i32
    return %c0_i32, %c0_i32_0 : i32, i32
  }
  func.func @transform_3(%arg0: i32) -> (i32, i32) {
    %c0_i32 = arith.constant 0 : i32
    %c0_i32_0 = arith.constant 0 : i32
    %c0_i32_1 = arith.constant 0 : i32
    return %c0_i32, %c0_i32_0 : i32, i32
  }
  func.func @transform_4(%arg0: i32) -> (i32, i32) {
    %c0_i32 = arith.constant 0 : i32
    %c0_i32_0 = arith.constant 0 : i32
    %c0_i32_1 = arith.constant 0 : i32
    return %c0_i32, %c0_i32_0 : i32, i32
  }
  func.func @transform_5(%arg0: i32) -> (i32, i32) {
    %c0_i32 = arith.constant 0 : i32
    %c0_i32_0 = arith.constant 0 : i32
    %c0_i32_1 = arith.constant 0 : i32
    return %c0_i32, %c0_i32_0 : i32, i32
  }
  func.func @transform_6(%arg0: i32) -> (i32, i32) {
    %c0_i32 = arith.constant 0 : i32
    %c0_i32_0 = arith.constant 0 : i32
    %c0_i32_1 = arith.constant 0 : i32
    return %c0_i32, %c0_i32_0 : i32, i32
  }
  func.func @transform_7(%arg0: i32) -> (i32, i32) {
    %c0_i32 = arith.constant 0 : i32
    %c0_i32_0 = arith.constant 0 : i32
    %c0_i32_1 = arith.constant 0 : i32
    return %c0_i32, %c0_i32_0 : i32, i32
  }
  func.func @transform_8(%arg0: i32) -> (i32, i32) {
    %c0_i32 = arith.constant 0 : i32
    %c0_i32_0 = arith.constant 0 : i32
    %c0_i32_1 = arith.constant 0 : i32
    return %c0_i32, %c0_i32_0 : i32, i32
  }
  func.func @transform_9(%arg0: i32) -> (i32, i32) {
    %c0_i32 = arith.constant 0 : i32
    %c0_i32_0 = arith.constant 0 : i32
    %c0_i32_1 = arith.constant 0 : i32
    return %c0_i32, %c0_i32_0 : i32, i32
  }
  func.func @transform_10(%arg0: i32) -> (i32, i32) {
    %c0_i32 = arith.constant 0 : i32
    %c0_i32_0 = arith.constant 0 : i32
    %c0_i32_1 = arith.constant 0 : i32
    return %c0_i32, %c0_i32_0 : i32, i32
  }
  func.func @transform_11(%arg0: i32) -> (i32, i32) {
    %c0_i32 = arith.constant 0 : i32
    %c0_i32_0 = arith.constant 0 : i32
    %c0_i32_1 = arith.constant 0 : i32
    return %c0_i32, %c0_i32_0 : i32, i32
  }
  func.func @transform_12(%arg0: i32) -> (i32, i32) {
    %c0_i32 = arith.constant 0 : i32
    %c0_i32_0 = arith.constant 0 : i32
    %c0_i32_1 = arith.constant 0 : i32
    return %c0_i32, %c0_i32_0 : i32, i32
  }
  func.func @transform_13(%arg0: i32) -> (i32, i32) {
    %c0_i32 = arith.constant 0 : i32
    %c0_i32_0 = arith.constant 0 : i32
    %c0_i32_1 = arith.constant 0 : i32
    return %c0_i32, %c0_i32_0 : i32, i32
  }
  func.func @transform_14(%arg0: i32) -> (i32, i32) {
    %c0_i32 = arith.constant 0 : i32
    %c0_i32_0 = arith.constant 0 : i32
    %c0_i32_1 = arith.constant 0 : i32
    return %c0_i32, %c0_i32_0 : i32, i32
  }
  func.func @transform_15(%arg0: i32) -> (i32, i32, i32) {
    %c0_i32 = arith.constant 0 : i32
    %c0_i32_0 = arith.constant 0 : i32
    %c0_i32_1 = arith.constant 0 : i32
    return %arg0, %c0_i32, %c0_i32_0 : i32, i32, i32
  }
}

module attributes {stable_mosaic.version = 11 : i64} {
  func.func @kernel(%arg0: i32, %arg1: memref<1x8x4xf32, #tpu.memory_space<vmem>>, %arg2: memref<8x32xf32, #tpu.memory_space<vmem>>, %arg3: memref<1x8xf32, #tpu.memory_space<vmem>>, %arg4: memref<19x128xf32, #tpu.memory_space<vmem>>, %arg5: memref<4x32xbf16, #tpu.memory_space<vmem>>, %arg6: memref<32x96xbf16, #tpu.memory_space<vmem>>, %arg7: memref<32x32xbf16, #tpu.memory_space<vmem>>, %arg8: memref<32x128xbf16, #tpu.memory_space<vmem>>, %arg9: memref<128x32xbf16, #tpu.memory_space<vmem>>, %arg10: memref<32x96xbf16, #tpu.memory_space<vmem>>, %arg11: memref<32x32xbf16, #tpu.memory_space<vmem>>, %arg12: memref<32x128xbf16, #tpu.memory_space<vmem>>, %arg13: memref<128x32xbf16, #tpu.memory_space<vmem>>, %arg14: memref<32x32xbf16, #tpu.memory_space<vmem>>, %arg15: memref<32x3xbf16, #tpu.memory_space<vmem>>, %arg16: memref<1x1x3xf32, #tpu.memory_space<vmem>>) attributes {dimension_semantics = [#tpu.dimension_semantics<parallel>], iteration_bounds = array<i64: 2>, scalar_prefetch = 0 : i64, scratch_operands = 0 : i64, tpu.core_type = #tpu.core_type<tc>, window_params = [{transform_indices = @transform_0, window_bounds = array<i64: 1, 8, 4>}, {pipeline_mode = #tpu.pipeline_mode<synchronous>, transform_indices = @transform_1, window_bounds = array<i64: 8, 32>}, {pipeline_mode = #tpu.pipeline_mode<synchronous>, transform_indices = @transform_2, window_bounds = array<i64: 1, 8>}, {pipeline_mode = #tpu.pipeline_mode<synchronous>, transform_indices = @transform_3, window_bounds = array<i64: 19, 128>}, {pipeline_mode = #tpu.pipeline_mode<synchronous>, transform_indices = @transform_4, window_bounds = array<i64: 4, 32>}, {pipeline_mode = #tpu.pipeline_mode<synchronous>, transform_indices = @transform_5, window_bounds = array<i64: 32, 96>}, {pipeline_mode = #tpu.pipeline_mode<synchronous>, transform_indices = @transform_6, window_bounds = array<i64: 32, 32>}, {pipeline_mode = #tpu.pipeline_mode<synchronous>, transform_indices = @transform_7, window_bounds = array<i64: 32, 128>}, {pipeline_mode = #tpu.pipeline_mode<synchronous>, transform_indices = @transform_8, window_bounds = array<i64: 128, 32>}, {pipeline_mode = #tpu.pipeline_mode<synchronous>, transform_indices = @transform_9, window_bounds = array<i64: 32, 96>}, {pipeline_mode = #tpu.pipeline_mode<synchronous>, transform_indices = @transform_10, window_bounds = array<i64: 32, 32>}, {pipeline_mode = #tpu.pipeline_mode<synchronous>, transform_indices = @transform_11, window_bounds = array<i64: 32, 128>}, {pipeline_mode = #tpu.pipeline_mode<synchronous>, transform_indices = @transform_12, window_bounds = array<i64: 128, 32>}, {pipeline_mode = #tpu.pipeline_mode<synchronous>, transform_indices = @transform_13, window_bounds = array<i64: 32, 32>}, {pipeline_mode = #tpu.pipeline_mode<synchronous>, transform_indices = @transform_14, window_bounds = array<i64: 32, 3>}, {transform_indices = @transform_15, window_bounds = array<i64: 1, 1, 3>}]} {
    %c0 = arith.constant 0 : index
    %c0_0 = arith.constant 0 : index
    %0 = vector.load %arg4[%c0, %c0_0] : memref<19x128xf32, #tpu.memory_space<vmem>>, vector<19x128xf32>
    %c0_1 = arith.constant 0 : index
    %c0_2 = arith.constant 0 : index
    %c0_3 = arith.constant 0 : index
    %1 = vector.load %arg1[%c0_1, %c0_2, %c0_3] : memref<1x8x4xf32, #tpu.memory_space<vmem>>, vector<1x8x4xf32>
    %2 = vector.shape_cast %1 : vector<1x8x4xf32> to vector<8x4xf32>
    %3 = arith.truncf %2 : vector<8x4xf32> to vector<8x4xbf16>
    %c0_4 = arith.constant 0 : index
    %c0_5 = arith.constant 0 : index
    %4 = vector.load %arg5[%c0_4, %c0_5] : memref<4x32xbf16, #tpu.memory_space<vmem>>, vector<4x32xbf16>
    %cst = arith.constant dense<0.000000e+00> : vector<8x32xf32>
    %5 = tpu.matmul %3, %4, %cst {dimension_numbers = #tpu.dot_dimension_numbers<[1], [0], [0], [1], [0, 0, 1, 1], [], []>} : vector<8x4xbf16>, vector<4x32xbf16>, vector<8x32xf32> -> vector<8x32xf32>
    %6 = vector.extract_strided_slice %0 {offsets = [0, 0], sizes = [1, 32], strides = [1, 1]} : vector<19x128xf32> to vector<1x32xf32>
    %7 = vector.broadcast %6 : vector<1x32xf32> to vector<8x32xf32>
    %8 = arith.addf %5, %7 : vector<8x32xf32>
    %9 = vector.shape_cast %8 : vector<8x32xf32> to vector<1x8x32xf32>
    %c0_6 = arith.constant 0 : index
    %c0_7 = arith.constant 0 : index
    %10 = vector.load %arg2[%c0_6, %c0_7] : memref<8x32xf32, #tpu.memory_space<vmem>>, vector<8x32xf32>
    %11 = vector.shape_cast %10 : vector<8x32xf32> to vector<1x8x32xf32>
    %12 = arith.addf %9, %11 : vector<1x8x32xf32>
    %13 = vector.shape_cast %12 : vector<1x8x32xf32> to vector<8x32xf32>
    %c0_8 = arith.constant 0 : index
    %c0_9 = arith.constant 0 : index
    %14 = vector.load %arg6[%c0_8, %c0_9] : memref<32x96xbf16, #tpu.memory_space<vmem>>, vector<32x96xbf16>
    %c0_10 = arith.constant 0 : index
    %c0_11 = arith.constant 0 : index
    %15 = vector.load %arg7[%c0_10, %c0_11] : memref<32x32xbf16, #tpu.memory_space<vmem>>, vector<32x32xbf16>
    %c0_12 = arith.constant 0 : index
    %c0_13 = arith.constant 0 : index
    %16 = vector.load %arg8[%c0_12, %c0_13] : memref<32x128xbf16, #tpu.memory_space<vmem>>, vector<32x128xbf16>
    %c0_14 = arith.constant 0 : index
    %c0_15 = arith.constant 0 : index
    %17 = vector.load %arg9[%c0_14, %c0_15] : memref<128x32xbf16, #tpu.memory_space<vmem>>, vector<128x32xbf16>
    %18 = vector.extract_strided_slice %0 {offsets = [1, 0], sizes = [1, 96], strides = [1, 1]} : vector<19x128xf32> to vector<1x96xf32>
    %19 = vector.extract_strided_slice %0 {offsets = [2, 0], sizes = [1, 32], strides = [1, 1]} : vector<19x128xf32> to vector<1x32xf32>
    %20 = vector.extract_strided_slice %0 {offsets = [3, 0], sizes = [1, 32], strides = [1, 1]} : vector<19x128xf32> to vector<1x32xf32>
    %21 = vector.extract_strided_slice %0 {offsets = [4, 0], sizes = [1, 32], strides = [1, 1]} : vector<19x128xf32> to vector<1x32xf32>
    %22 = vector.extract_strided_slice %0 {offsets = [5, 0], sizes = [1, 128], strides = [1, 1]} : vector<19x128xf32> to vector<1x128xf32>
    %23 = vector.extract_strided_slice %0 {offsets = [6, 0], sizes = [1, 32], strides = [1, 1]} : vector<19x128xf32> to vector<1x32xf32>
    %24 = vector.extract_strided_slice %0 {offsets = [7, 0], sizes = [1, 32], strides = [1, 1]} : vector<19x128xf32> to vector<1x32xf32>
    %25 = vector.extract_strided_slice %0 {offsets = [8, 0], sizes = [1, 32], strides = [1, 1]} : vector<19x128xf32> to vector<1x32xf32>
    %26 = arith.truncf %13 : vector<8x32xf32> to vector<8x32xbf16>
    %cst_16 = arith.constant dense<0.000000e+00> : vector<8x96xf32>
    %27 = tpu.matmul %26, %14, %cst_16 {dimension_numbers = #tpu.dot_dimension_numbers<[1], [0], [0], [1], [0, 0, 1, 1], [], []>} : vector<8x32xbf16>, vector<32x96xbf16>, vector<8x96xf32> -> vector<8x96xf32>
    %28 = vector.broadcast %18 : vector<1x96xf32> to vector<8x96xf32>
    %29 = arith.addf %27, %28 : vector<8x96xf32>
    %30 = vector.shape_cast %29 : vector<8x96xf32> to vector<1x8x96xf32>
    %31 = vector.extract_strided_slice %30 {offsets = [0, 0, 0], sizes = [1, 8, 8], strides = [1, 1, 1]} : vector<1x8x96xf32> to vector<1x8x8xf32>
    %32 = arith.truncf %31 : vector<1x8x8xf32> to vector<1x8x8xbf16>
    %33 = vector.extract_strided_slice %30 {offsets = [0, 0, 32], sizes = [1, 8, 8], strides = [1, 1, 1]} : vector<1x8x96xf32> to vector<1x8x8xf32>
    %34 = arith.truncf %33 : vector<1x8x8xf32> to vector<1x8x8xbf16>
    %35 = vector.extract_strided_slice %30 {offsets = [0, 0, 64], sizes = [1, 8, 8], strides = [1, 1, 1]} : vector<1x8x96xf32> to vector<1x8x8xf32>
    %36 = arith.truncf %35 : vector<1x8x8xf32> to vector<1x8x8xbf16>
    "tpu.trace_start"() <{level = 10 : i32, message = "bqd,bkd->bqk"}> : () -> ()
    %cst_17 = arith.constant dense<0.000000e+00> : vector<1x8x8xf32>
    %37 = tpu.matmul %32, %34, %cst_17 {dimension_numbers = #tpu.dot_dimension_numbers<[2], [2], [1], [1], [0, 0, 0, 1, 1, 1], [0], [0]>} : vector<1x8x8xbf16>, vector<1x8x8xbf16>, vector<1x8x8xf32> -> vector<1x8x8xf32>
    "tpu.trace_stop"() : () -> ()
    %cst_18 = arith.constant 0.353553385 : f32
    %38 = vector.broadcast %cst_18 : f32 to vector<1x8x8xf32>
    %39 = arith.mulf %37, %38 : vector<1x8x8xf32>
    %cst_19 = arith.constant dense<0xFF800000> : vector<1x8xf32>
    %40 = vector.multi_reduction <maximumf>, %39, %cst_19 [2] : vector<1x8x8xf32> to vector<1x8xf32>
    %41 = vector.shape_cast %40 : vector<1x8xf32> to vector<1x8x1xf32>
    %42 = vector.broadcast %41 : vector<1x8x1xf32> to vector<1x8x8xf32>
    %43 = arith.subf %39, %42 : vector<1x8x8xf32>
    %44 = math.exp %43 : vector<1x8x8xf32>
    %cst_20 = arith.constant dense<0.000000e+00> : vector<1x8xf32>
    %45 = vector.multi_reduction <add>, %44, %cst_20 [2] : vector<1x8x8xf32> to vector<1x8xf32>
    %46 = vector.shape_cast %45 : vector<1x8xf32> to vector<1x8x1xf32>
    %47 = tpu.reciprocal %46 {approx = true} : vector<1x8x1xf32> -> vector<1x8x1xf32>
    %48 = vector.broadcast %47 : vector<1x8x1xf32> to vector<1x8x8xf32>
    %49 = arith.mulf %44, %48 : vector<1x8x8xf32>
    %50 = arith.truncf %49 : vector<1x8x8xf32> to vector<1x8x8xbf16>
    "tpu.trace_start"() <{level = 10 : i32, message = "bqk,bkd->bqd"}> : () -> ()
    %cst_21 = arith.constant dense<0.000000e+00> : vector<1x8x8xf32>
    %51 = tpu.matmul %50, %36, %cst_21 {dimension_numbers = #tpu.dot_dimension_numbers<[2], [1], [1], [2], [0, 0, 0, 1, 1, 2], [0], [0]>} : vector<1x8x8xbf16>, vector<1x8x8xbf16>, vector<1x8x8xf32> -> vector<1x8x8xf32>
    "tpu.trace_stop"() : () -> ()
    %52 = arith.truncf %51 : vector<1x8x8xf32> to vector<1x8x8xbf16>
    %53 = vector.extract_strided_slice %30 {offsets = [0, 0, 8], sizes = [1, 8, 8], strides = [1, 1, 1]} : vector<1x8x96xf32> to vector<1x8x8xf32>
    %54 = arith.truncf %53 : vector<1x8x8xf32> to vector<1x8x8xbf16>
    %55 = vector.extract_strided_slice %30 {offsets = [0, 0, 40], sizes = [1, 8, 8], strides = [1, 1, 1]} : vector<1x8x96xf32> to vector<1x8x8xf32>
    %56 = arith.truncf %55 : vector<1x8x8xf32> to vector<1x8x8xbf16>
    %57 = vector.extract_strided_slice %30 {offsets = [0, 0, 72], sizes = [1, 8, 8], strides = [1, 1, 1]} : vector<1x8x96xf32> to vector<1x8x8xf32>
    %58 = arith.truncf %57 : vector<1x8x8xf32> to vector<1x8x8xbf16>
    "tpu.trace_start"() <{level = 10 : i32, message = "bqd,bkd->bqk"}> : () -> ()
    %cst_22 = arith.constant dense<0.000000e+00> : vector<1x8x8xf32>
    %59 = tpu.matmul %54, %56, %cst_22 {dimension_numbers = #tpu.dot_dimension_numbers<[2], [2], [1], [1], [0, 0, 0, 1, 1, 1], [0], [0]>} : vector<1x8x8xbf16>, vector<1x8x8xbf16>, vector<1x8x8xf32> -> vector<1x8x8xf32>
    "tpu.trace_stop"() : () -> ()
    %cst_23 = arith.constant 0.353553385 : f32
    %60 = vector.broadcast %cst_23 : f32 to vector<1x8x8xf32>
    %61 = arith.mulf %59, %60 : vector<1x8x8xf32>
    %cst_24 = arith.constant dense<0xFF800000> : vector<1x8xf32>
    %62 = vector.multi_reduction <maximumf>, %61, %cst_24 [2] : vector<1x8x8xf32> to vector<1x8xf32>
    %63 = vector.shape_cast %62 : vector<1x8xf32> to vector<1x8x1xf32>
    %64 = vector.broadcast %63 : vector<1x8x1xf32> to vector<1x8x8xf32>
    %65 = arith.subf %61, %64 : vector<1x8x8xf32>
    %66 = math.exp %65 : vector<1x8x8xf32>
    %cst_25 = arith.constant dense<0.000000e+00> : vector<1x8xf32>
    %67 = vector.multi_reduction <add>, %66, %cst_25 [2] : vector<1x8x8xf32> to vector<1x8xf32>
    %68 = vector.shape_cast %67 : vector<1x8xf32> to vector<1x8x1xf32>
    %69 = tpu.reciprocal %68 {approx = true} : vector<1x8x1xf32> -> vector<1x8x1xf32>
    %70 = vector.broadcast %69 : vector<1x8x1xf32> to vector<1x8x8xf32>
    %71 = arith.mulf %66, %70 : vector<1x8x8xf32>
    %72 = arith.truncf %71 : vector<1x8x8xf32> to vector<1x8x8xbf16>
    "tpu.trace_start"() <{level = 10 : i32, message = "bqk,bkd->bqd"}> : () -> ()
    %cst_26 = arith.constant dense<0.000000e+00> : vector<1x8x8xf32>
    %73 = tpu.matmul %72, %58, %cst_26 {dimension_numbers = #tpu.dot_dimension_numbers<[2], [1], [1], [2], [0, 0, 0, 1, 1, 2], [0], [0]>} : vector<1x8x8xbf16>, vector<1x8x8xbf16>, vector<1x8x8xf32> -> vector<1x8x8xf32>
    "tpu.trace_stop"() : () -> ()
    %74 = arith.truncf %73 : vector<1x8x8xf32> to vector<1x8x8xbf16>
    %75 = vector.extract_strided_slice %30 {offsets = [0, 0, 16], sizes = [1, 8, 8], strides = [1, 1, 1]} : vector<1x8x96xf32> to vector<1x8x8xf32>
    %76 = arith.truncf %75 : vector<1x8x8xf32> to vector<1x8x8xbf16>
    %77 = vector.extract_strided_slice %30 {offsets = [0, 0, 48], sizes = [1, 8, 8], strides = [1, 1, 1]} : vector<1x8x96xf32> to vector<1x8x8xf32>
    %78 = arith.truncf %77 : vector<1x8x8xf32> to vector<1x8x8xbf16>
    %79 = vector.extract_strided_slice %30 {offsets = [0, 0, 80], sizes = [1, 8, 8], strides = [1, 1, 1]} : vector<1x8x96xf32> to vector<1x8x8xf32>
    %80 = arith.truncf %79 : vector<1x8x8xf32> to vector<1x8x8xbf16>
    "tpu.trace_start"() <{level = 10 : i32, message = "bqd,bkd->bqk"}> : () -> ()
    %cst_27 = arith.constant dense<0.000000e+00> : vector<1x8x8xf32>
    %81 = tpu.matmul %76, %78, %cst_27 {dimension_numbers = #tpu.dot_dimension_numbers<[2], [2], [1], [1], [0, 0, 0, 1, 1, 1], [0], [0]>} : vector<1x8x8xbf16>, vector<1x8x8xbf16>, vector<1x8x8xf32> -> vector<1x8x8xf32>
    "tpu.trace_stop"() : () -> ()
    %cst_28 = arith.constant 0.353553385 : f32
    %82 = vector.broadcast %cst_28 : f32 to vector<1x8x8xf32>
    %83 = arith.mulf %81, %82 : vector<1x8x8xf32>
    %cst_29 = arith.constant dense<0xFF800000> : vector<1x8xf32>
    %84 = vector.multi_reduction <maximumf>, %83, %cst_29 [2] : vector<1x8x8xf32> to vector<1x8xf32>
    %85 = vector.shape_cast %84 : vector<1x8xf32> to vector<1x8x1xf32>
    %86 = vector.broadcast %85 : vector<1x8x1xf32> to vector<1x8x8xf32>
    %87 = arith.subf %83, %86 : vector<1x8x8xf32>
    %88 = math.exp %87 : vector<1x8x8xf32>
    %cst_30 = arith.constant dense<0.000000e+00> : vector<1x8xf32>
    %89 = vector.multi_reduction <add>, %88, %cst_30 [2] : vector<1x8x8xf32> to vector<1x8xf32>
    %90 = vector.shape_cast %89 : vector<1x8xf32> to vector<1x8x1xf32>
    %91 = tpu.reciprocal %90 {approx = true} : vector<1x8x1xf32> -> vector<1x8x1xf32>
    %92 = vector.broadcast %91 : vector<1x8x1xf32> to vector<1x8x8xf32>
    %93 = arith.mulf %88, %92 : vector<1x8x8xf32>
    %94 = arith.truncf %93 : vector<1x8x8xf32> to vector<1x8x8xbf16>
    "tpu.trace_start"() <{level = 10 : i32, message = "bqk,bkd->bqd"}> : () -> ()
    %cst_31 = arith.constant dense<0.000000e+00> : vector<1x8x8xf32>
    %95 = tpu.matmul %94, %80, %cst_31 {dimension_numbers = #tpu.dot_dimension_numbers<[2], [1], [1], [2], [0, 0, 0, 1, 1, 2], [0], [0]>} : vector<1x8x8xbf16>, vector<1x8x8xbf16>, vector<1x8x8xf32> -> vector<1x8x8xf32>
    "tpu.trace_stop"() : () -> ()
    %96 = arith.truncf %95 : vector<1x8x8xf32> to vector<1x8x8xbf16>
    %97 = vector.extract_strided_slice %30 {offsets = [0, 0, 24], sizes = [1, 8, 8], strides = [1, 1, 1]} : vector<1x8x96xf32> to vector<1x8x8xf32>
    %98 = arith.truncf %97 : vector<1x8x8xf32> to vector<1x8x8xbf16>
    %99 = vector.extract_strided_slice %30 {offsets = [0, 0, 56], sizes = [1, 8, 8], strides = [1, 1, 1]} : vector<1x8x96xf32> to vector<1x8x8xf32>
    %100 = arith.truncf %99 : vector<1x8x8xf32> to vector<1x8x8xbf16>
    %101 = vector.extract_strided_slice %30 {offsets = [0, 0, 88], sizes = [1, 8, 8], strides = [1, 1, 1]} : vector<1x8x96xf32> to vector<1x8x8xf32>
    %102 = arith.truncf %101 : vector<1x8x8xf32> to vector<1x8x8xbf16>
    "tpu.trace_start"() <{level = 10 : i32, message = "bqd,bkd->bqk"}> : () -> ()
    %cst_32 = arith.constant dense<0.000000e+00> : vector<1x8x8xf32>
    %103 = tpu.matmul %98, %100, %cst_32 {dimension_numbers = #tpu.dot_dimension_numbers<[2], [2], [1], [1], [0, 0, 0, 1, 1, 1], [0], [0]>} : vector<1x8x8xbf16>, vector<1x8x8xbf16>, vector<1x8x8xf32> -> vector<1x8x8xf32>
    "tpu.trace_stop"() : () -> ()
    %cst_33 = arith.constant 0.353553385 : f32
    %104 = vector.broadcast %cst_33 : f32 to vector<1x8x8xf32>
    %105 = arith.mulf %103, %104 : vector<1x8x8xf32>
    %cst_34 = arith.constant dense<0xFF800000> : vector<1x8xf32>
    %106 = vector.multi_reduction <maximumf>, %105, %cst_34 [2] : vector<1x8x8xf32> to vector<1x8xf32>
    %107 = vector.shape_cast %106 : vector<1x8xf32> to vector<1x8x1xf32>
    %108 = vector.broadcast %107 : vector<1x8x1xf32> to vector<1x8x8xf32>
    %109 = arith.subf %105, %108 : vector<1x8x8xf32>
    %110 = math.exp %109 : vector<1x8x8xf32>
    %cst_35 = arith.constant dense<0.000000e+00> : vector<1x8xf32>
    %111 = vector.multi_reduction <add>, %110, %cst_35 [2] : vector<1x8x8xf32> to vector<1x8xf32>
    %112 = vector.shape_cast %111 : vector<1x8xf32> to vector<1x8x1xf32>
    %113 = tpu.reciprocal %112 {approx = true} : vector<1x8x1xf32> -> vector<1x8x1xf32>
    %114 = vector.broadcast %113 : vector<1x8x1xf32> to vector<1x8x8xf32>
    %115 = arith.mulf %110, %114 : vector<1x8x8xf32>
    %116 = arith.truncf %115 : vector<1x8x8xf32> to vector<1x8x8xbf16>
    "tpu.trace_start"() <{level = 10 : i32, message = "bqk,bkd->bqd"}> : () -> ()
    %cst_36 = arith.constant dense<0.000000e+00> : vector<1x8x8xf32>
    %117 = tpu.matmul %116, %102, %cst_36 {dimension_numbers = #tpu.dot_dimension_numbers<[2], [1], [1], [2], [0, 0, 0, 1, 1, 2], [0], [0]>} : vector<1x8x8xbf16>, vector<1x8x8xbf16>, vector<1x8x8xf32> -> vector<1x8x8xf32>
    "tpu.trace_stop"() : () -> ()
    %118 = arith.truncf %117 : vector<1x8x8xf32> to vector<1x8x8xbf16>
    %119 = tpu.concatenate %52, %74, %96, %118 in 2 : vector<1x8x8xbf16>, vector<1x8x8xbf16>, vector<1x8x8xbf16>, vector<1x8x8xbf16> -> vector<1x8x32xbf16>
    %120 = vector.shape_cast %119 : vector<1x8x32xbf16> to vector<8x32xbf16>
    %cst_37 = arith.constant dense<0.000000e+00> : vector<8x32xf32>
    %121 = tpu.matmul %120, %15, %cst_37 {dimension_numbers = #tpu.dot_dimension_numbers<[1], [0], [0], [1], [0, 0, 1, 1], [], []>} : vector<8x32xbf16>, vector<32x32xbf16>, vector<8x32xf32> -> vector<8x32xf32>
    %122 = vector.broadcast %19 : vector<1x32xf32> to vector<8x32xf32>
    %123 = arith.addf %121, %122 : vector<8x32xf32>
    %124 = arith.addf %13, %123 : vector<8x32xf32>
    %cst_38 = arith.constant dense<0.000000e+00> : vector<8xf32>
    %125 = vector.multi_reduction <add>, %124, %cst_38 [1] : vector<8x32xf32> to vector<8xf32>
    %126 = vector.shape_cast %125 : vector<8xf32> to vector<8x1xf32>
    %cst_39 = arith.constant 3.200000e+01 : f32
    %127 = vector.broadcast %cst_39 : f32 to vector<8x1xf32>
    %128 = arith.divf %126, %127 : vector<8x1xf32>
    %129 = vector.broadcast %128 : vector<8x1xf32> to vector<8x32xf32>
    %130 = arith.subf %124, %129 : vector<8x32xf32>
    %131 = arith.mulf %130, %130 : vector<8x32xf32>
    %cst_40 = arith.constant dense<0.000000e+00> : vector<8xf32>
    %132 = vector.multi_reduction <add>, %131, %cst_40 [1] : vector<8x32xf32> to vector<8xf32>
    %133 = vector.shape_cast %132 : vector<8xf32> to vector<8x1xf32>
    %cst_41 = arith.constant 3.200000e+01 : f32
    %134 = vector.broadcast %cst_41 : f32 to vector<8x1xf32>
    %135 = arith.divf %133, %134 : vector<8x1xf32>
    %136 = vector.broadcast %128 : vector<8x1xf32> to vector<8x32xf32>
    %137 = arith.subf %124, %136 : vector<8x32xf32>
    %cst_42 = arith.constant 9.99999974E-6 : f32
    %138 = vector.broadcast %cst_42 : f32 to vector<8x1xf32>
    %139 = arith.addf %135, %138 : vector<8x1xf32>
    %140 = math.rsqrt %139 : vector<8x1xf32>
    %141 = vector.broadcast %140 : vector<8x1xf32> to vector<8x32xf32>
    %142 = arith.mulf %137, %141 : vector<8x32xf32>
    %143 = vector.broadcast %20 : vector<1x32xf32> to vector<8x32xf32>
    %144 = arith.mulf %142, %143 : vector<8x32xf32>
    %145 = vector.broadcast %21 : vector<1x32xf32> to vector<8x32xf32>
    %146 = arith.addf %144, %145 : vector<8x32xf32>
    %147 = arith.truncf %146 : vector<8x32xf32> to vector<8x32xbf16>
    %cst_43 = arith.constant dense<0.000000e+00> : vector<8x128xf32>
    %148 = tpu.matmul %147, %16, %cst_43 {dimension_numbers = #tpu.dot_dimension_numbers<[1], [0], [0], [1], [0, 0, 1, 1], [], []>} : vector<8x32xbf16>, vector<32x128xbf16>, vector<8x128xf32> -> vector<8x128xf32>
    %149 = vector.broadcast %22 : vector<1x128xf32> to vector<8x128xf32>
    %150 = arith.addf %148, %149 : vector<8x128xf32>
    %cst_44 = arith.constant 0.000000e+00 : f32
    %151 = vector.broadcast %cst_44 : f32 to vector<8x128xf32>
    %152 = arith.maximumf %150, %151 : vector<8x128xf32>
    %153 = arith.truncf %152 : vector<8x128xf32> to vector<8x128xbf16>
    %cst_45 = arith.constant dense<0.000000e+00> : vector<8x32xf32>
    %154 = tpu.matmul %153, %17, %cst_45 {dimension_numbers = #tpu.dot_dimension_numbers<[1], [0], [0], [1], [0, 0, 1, 1], [], []>} : vector<8x128xbf16>, vector<128x32xbf16>, vector<8x32xf32> -> vector<8x32xf32>
    %155 = vector.broadcast %23 : vector<1x32xf32> to vector<8x32xf32>
    %156 = arith.addf %154, %155 : vector<8x32xf32>
    %157 = arith.addf %146, %156 : vector<8x32xf32>
    %cst_46 = arith.constant dense<0.000000e+00> : vector<8xf32>
    %158 = vector.multi_reduction <add>, %157, %cst_46 [1] : vector<8x32xf32> to vector<8xf32>
    %159 = vector.shape_cast %158 : vector<8xf32> to vector<8x1xf32>
    %cst_47 = arith.constant 3.200000e+01 : f32
    %160 = vector.broadcast %cst_47 : f32 to vector<8x1xf32>
    %161 = arith.divf %159, %160 : vector<8x1xf32>
    %162 = vector.broadcast %161 : vector<8x1xf32> to vector<8x32xf32>
    %163 = arith.subf %157, %162 : vector<8x32xf32>
    %164 = arith.mulf %163, %163 : vector<8x32xf32>
    %cst_48 = arith.constant dense<0.000000e+00> : vector<8xf32>
    %165 = vector.multi_reduction <add>, %164, %cst_48 [1] : vector<8x32xf32> to vector<8xf32>
    %166 = vector.shape_cast %165 : vector<8xf32> to vector<8x1xf32>
    %cst_49 = arith.constant 3.200000e+01 : f32
    %167 = vector.broadcast %cst_49 : f32 to vector<8x1xf32>
    %168 = arith.divf %166, %167 : vector<8x1xf32>
    %169 = vector.broadcast %161 : vector<8x1xf32> to vector<8x32xf32>
    %170 = arith.subf %157, %169 : vector<8x32xf32>
    %cst_50 = arith.constant 9.99999974E-6 : f32
    %171 = vector.broadcast %cst_50 : f32 to vector<8x1xf32>
    %172 = arith.addf %168, %171 : vector<8x1xf32>
    %173 = math.rsqrt %172 : vector<8x1xf32>
    %174 = vector.broadcast %173 : vector<8x1xf32> to vector<8x32xf32>
    %175 = arith.mulf %170, %174 : vector<8x32xf32>
    %176 = vector.broadcast %24 : vector<1x32xf32> to vector<8x32xf32>
    %177 = arith.mulf %175, %176 : vector<8x32xf32>
    %178 = vector.broadcast %25 : vector<1x32xf32> to vector<8x32xf32>
    %179 = arith.addf %177, %178 : vector<8x32xf32>
    %c0_51 = arith.constant 0 : index
    %c0_52 = arith.constant 0 : index
    %180 = vector.load %arg10[%c0_51, %c0_52] : memref<32x96xbf16, #tpu.memory_space<vmem>>, vector<32x96xbf16>
    %c0_53 = arith.constant 0 : index
    %c0_54 = arith.constant 0 : index
    %181 = vector.load %arg11[%c0_53, %c0_54] : memref<32x32xbf16, #tpu.memory_space<vmem>>, vector<32x32xbf16>
    %c0_55 = arith.constant 0 : index
    %c0_56 = arith.constant 0 : index
    %182 = vector.load %arg12[%c0_55, %c0_56] : memref<32x128xbf16, #tpu.memory_space<vmem>>, vector<32x128xbf16>
    %c0_57 = arith.constant 0 : index
    %c0_58 = arith.constant 0 : index
    %183 = vector.load %arg13[%c0_57, %c0_58] : memref<128x32xbf16, #tpu.memory_space<vmem>>, vector<128x32xbf16>
    %184 = vector.extract_strided_slice %0 {offsets = [9, 0], sizes = [1, 96], strides = [1, 1]} : vector<19x128xf32> to vector<1x96xf32>
    %185 = vector.extract_strided_slice %0 {offsets = [10, 0], sizes = [1, 32], strides = [1, 1]} : vector<19x128xf32> to vector<1x32xf32>
    %186 = vector.extract_strided_slice %0 {offsets = [11, 0], sizes = [1, 32], strides = [1, 1]} : vector<19x128xf32> to vector<1x32xf32>
    %187 = vector.extract_strided_slice %0 {offsets = [12, 0], sizes = [1, 32], strides = [1, 1]} : vector<19x128xf32> to vector<1x32xf32>
    %188 = vector.extract_strided_slice %0 {offsets = [13, 0], sizes = [1, 128], strides = [1, 1]} : vector<19x128xf32> to vector<1x128xf32>
    %189 = vector.extract_strided_slice %0 {offsets = [14, 0], sizes = [1, 32], strides = [1, 1]} : vector<19x128xf32> to vector<1x32xf32>
    %190 = vector.extract_strided_slice %0 {offsets = [15, 0], sizes = [1, 32], strides = [1, 1]} : vector<19x128xf32> to vector<1x32xf32>
    %191 = vector.extract_strided_slice %0 {offsets = [16, 0], sizes = [1, 32], strides = [1, 1]} : vector<19x128xf32> to vector<1x32xf32>
    %192 = arith.truncf %179 : vector<8x32xf32> to vector<8x32xbf16>
    %cst_59 = arith.constant dense<0.000000e+00> : vector<8x96xf32>
    %193 = tpu.matmul %192, %180, %cst_59 {dimension_numbers = #tpu.dot_dimension_numbers<[1], [0], [0], [1], [0, 0, 1, 1], [], []>} : vector<8x32xbf16>, vector<32x96xbf16>, vector<8x96xf32> -> vector<8x96xf32>
    %194 = vector.broadcast %184 : vector<1x96xf32> to vector<8x96xf32>
    %195 = arith.addf %193, %194 : vector<8x96xf32>
    %196 = vector.shape_cast %195 : vector<8x96xf32> to vector<1x8x96xf32>
    %197 = vector.extract_strided_slice %196 {offsets = [0, 0, 0], sizes = [1, 8, 8], strides = [1, 1, 1]} : vector<1x8x96xf32> to vector<1x8x8xf32>
    %198 = arith.truncf %197 : vector<1x8x8xf32> to vector<1x8x8xbf16>
    %199 = vector.extract_strided_slice %196 {offsets = [0, 0, 32], sizes = [1, 8, 8], strides = [1, 1, 1]} : vector<1x8x96xf32> to vector<1x8x8xf32>
    %200 = arith.truncf %199 : vector<1x8x8xf32> to vector<1x8x8xbf16>
    %201 = vector.extract_strided_slice %196 {offsets = [0, 0, 64], sizes = [1, 8, 8], strides = [1, 1, 1]} : vector<1x8x96xf32> to vector<1x8x8xf32>
    %202 = arith.truncf %201 : vector<1x8x8xf32> to vector<1x8x8xbf16>
    "tpu.trace_start"() <{level = 10 : i32, message = "bqd,bkd->bqk"}> : () -> ()
    %cst_60 = arith.constant dense<0.000000e+00> : vector<1x8x8xf32>
    %203 = tpu.matmul %198, %200, %cst_60 {dimension_numbers = #tpu.dot_dimension_numbers<[2], [2], [1], [1], [0, 0, 0, 1, 1, 1], [0], [0]>} : vector<1x8x8xbf16>, vector<1x8x8xbf16>, vector<1x8x8xf32> -> vector<1x8x8xf32>
    "tpu.trace_stop"() : () -> ()
    %cst_61 = arith.constant 0.353553385 : f32
    %204 = vector.broadcast %cst_61 : f32 to vector<1x8x8xf32>
    %205 = arith.mulf %203, %204 : vector<1x8x8xf32>
    %cst_62 = arith.constant dense<0xFF800000> : vector<1x8xf32>
    %206 = vector.multi_reduction <maximumf>, %205, %cst_62 [2] : vector<1x8x8xf32> to vector<1x8xf32>
    %207 = vector.shape_cast %206 : vector<1x8xf32> to vector<1x8x1xf32>
    %208 = vector.broadcast %207 : vector<1x8x1xf32> to vector<1x8x8xf32>
    %209 = arith.subf %205, %208 : vector<1x8x8xf32>
    %210 = math.exp %209 : vector<1x8x8xf32>
    %cst_63 = arith.constant dense<0.000000e+00> : vector<1x8xf32>
    %211 = vector.multi_reduction <add>, %210, %cst_63 [2] : vector<1x8x8xf32> to vector<1x8xf32>
    %212 = vector.shape_cast %211 : vector<1x8xf32> to vector<1x8x1xf32>
    %213 = tpu.reciprocal %212 {approx = true} : vector<1x8x1xf32> -> vector<1x8x1xf32>
    %214 = vector.broadcast %213 : vector<1x8x1xf32> to vector<1x8x8xf32>
    %215 = arith.mulf %210, %214 : vector<1x8x8xf32>
    %216 = arith.truncf %215 : vector<1x8x8xf32> to vector<1x8x8xbf16>
    "tpu.trace_start"() <{level = 10 : i32, message = "bqk,bkd->bqd"}> : () -> ()
    %cst_64 = arith.constant dense<0.000000e+00> : vector<1x8x8xf32>
    %217 = tpu.matmul %216, %202, %cst_64 {dimension_numbers = #tpu.dot_dimension_numbers<[2], [1], [1], [2], [0, 0, 0, 1, 1, 2], [0], [0]>} : vector<1x8x8xbf16>, vector<1x8x8xbf16>, vector<1x8x8xf32> -> vector<1x8x8xf32>
    "tpu.trace_stop"() : () -> ()
    %218 = arith.truncf %217 : vector<1x8x8xf32> to vector<1x8x8xbf16>
    %219 = vector.extract_strided_slice %196 {offsets = [0, 0, 8], sizes = [1, 8, 8], strides = [1, 1, 1]} : vector<1x8x96xf32> to vector<1x8x8xf32>
    %220 = arith.truncf %219 : vector<1x8x8xf32> to vector<1x8x8xbf16>
    %221 = vector.extract_strided_slice %196 {offsets = [0, 0, 40], sizes = [1, 8, 8], strides = [1, 1, 1]} : vector<1x8x96xf32> to vector<1x8x8xf32>
    %222 = arith.truncf %221 : vector<1x8x8xf32> to vector<1x8x8xbf16>
    %223 = vector.extract_strided_slice %196 {offsets = [0, 0, 72], sizes = [1, 8, 8], strides = [1, 1, 1]} : vector<1x8x96xf32> to vector<1x8x8xf32>
    %224 = arith.truncf %223 : vector<1x8x8xf32> to vector<1x8x8xbf16>
    "tpu.trace_start"() <{level = 10 : i32, message = "bqd,bkd->bqk"}> : () -> ()
    %cst_65 = arith.constant dense<0.000000e+00> : vector<1x8x8xf32>
    %225 = tpu.matmul %220, %222, %cst_65 {dimension_numbers = #tpu.dot_dimension_numbers<[2], [2], [1], [1], [0, 0, 0, 1, 1, 1], [0], [0]>} : vector<1x8x8xbf16>, vector<1x8x8xbf16>, vector<1x8x8xf32> -> vector<1x8x8xf32>
    "tpu.trace_stop"() : () -> ()
    %cst_66 = arith.constant 0.353553385 : f32
    %226 = vector.broadcast %cst_66 : f32 to vector<1x8x8xf32>
    %227 = arith.mulf %225, %226 : vector<1x8x8xf32>
    %cst_67 = arith.constant dense<0xFF800000> : vector<1x8xf32>
    %228 = vector.multi_reduction <maximumf>, %227, %cst_67 [2] : vector<1x8x8xf32> to vector<1x8xf32>
    %229 = vector.shape_cast %228 : vector<1x8xf32> to vector<1x8x1xf32>
    %230 = vector.broadcast %229 : vector<1x8x1xf32> to vector<1x8x8xf32>
    %231 = arith.subf %227, %230 : vector<1x8x8xf32>
    %232 = math.exp %231 : vector<1x8x8xf32>
    %cst_68 = arith.constant dense<0.000000e+00> : vector<1x8xf32>
    %233 = vector.multi_reduction <add>, %232, %cst_68 [2] : vector<1x8x8xf32> to vector<1x8xf32>
    %234 = vector.shape_cast %233 : vector<1x8xf32> to vector<1x8x1xf32>
    %235 = tpu.reciprocal %234 {approx = true} : vector<1x8x1xf32> -> vector<1x8x1xf32>
    %236 = vector.broadcast %235 : vector<1x8x1xf32> to vector<1x8x8xf32>
    %237 = arith.mulf %232, %236 : vector<1x8x8xf32>
    %238 = arith.truncf %237 : vector<1x8x8xf32> to vector<1x8x8xbf16>
    "tpu.trace_start"() <{level = 10 : i32, message = "bqk,bkd->bqd"}> : () -> ()
    %cst_69 = arith.constant dense<0.000000e+00> : vector<1x8x8xf32>
    %239 = tpu.matmul %238, %224, %cst_69 {dimension_numbers = #tpu.dot_dimension_numbers<[2], [1], [1], [2], [0, 0, 0, 1, 1, 2], [0], [0]>} : vector<1x8x8xbf16>, vector<1x8x8xbf16>, vector<1x8x8xf32> -> vector<1x8x8xf32>
    "tpu.trace_stop"() : () -> ()
    %240 = arith.truncf %239 : vector<1x8x8xf32> to vector<1x8x8xbf16>
    %241 = vector.extract_strided_slice %196 {offsets = [0, 0, 16], sizes = [1, 8, 8], strides = [1, 1, 1]} : vector<1x8x96xf32> to vector<1x8x8xf32>
    %242 = arith.truncf %241 : vector<1x8x8xf32> to vector<1x8x8xbf16>
    %243 = vector.extract_strided_slice %196 {offsets = [0, 0, 48], sizes = [1, 8, 8], strides = [1, 1, 1]} : vector<1x8x96xf32> to vector<1x8x8xf32>
    %244 = arith.truncf %243 : vector<1x8x8xf32> to vector<1x8x8xbf16>
    %245 = vector.extract_strided_slice %196 {offsets = [0, 0, 80], sizes = [1, 8, 8], strides = [1, 1, 1]} : vector<1x8x96xf32> to vector<1x8x8xf32>
    %246 = arith.truncf %245 : vector<1x8x8xf32> to vector<1x8x8xbf16>
    "tpu.trace_start"() <{level = 10 : i32, message = "bqd,bkd->bqk"}> : () -> ()
    %cst_70 = arith.constant dense<0.000000e+00> : vector<1x8x8xf32>
    %247 = tpu.matmul %242, %244, %cst_70 {dimension_numbers = #tpu.dot_dimension_numbers<[2], [2], [1], [1], [0, 0, 0, 1, 1, 1], [0], [0]>} : vector<1x8x8xbf16>, vector<1x8x8xbf16>, vector<1x8x8xf32> -> vector<1x8x8xf32>
    "tpu.trace_stop"() : () -> ()
    %cst_71 = arith.constant 0.353553385 : f32
    %248 = vector.broadcast %cst_71 : f32 to vector<1x8x8xf32>
    %249 = arith.mulf %247, %248 : vector<1x8x8xf32>
    %cst_72 = arith.constant dense<0xFF800000> : vector<1x8xf32>
    %250 = vector.multi_reduction <maximumf>, %249, %cst_72 [2] : vector<1x8x8xf32> to vector<1x8xf32>
    %251 = vector.shape_cast %250 : vector<1x8xf32> to vector<1x8x1xf32>
    %252 = vector.broadcast %251 : vector<1x8x1xf32> to vector<1x8x8xf32>
    %253 = arith.subf %249, %252 : vector<1x8x8xf32>
    %254 = math.exp %253 : vector<1x8x8xf32>
    %cst_73 = arith.constant dense<0.000000e+00> : vector<1x8xf32>
    %255 = vector.multi_reduction <add>, %254, %cst_73 [2] : vector<1x8x8xf32> to vector<1x8xf32>
    %256 = vector.shape_cast %255 : vector<1x8xf32> to vector<1x8x1xf32>
    %257 = tpu.reciprocal %256 {approx = true} : vector<1x8x1xf32> -> vector<1x8x1xf32>
    %258 = vector.broadcast %257 : vector<1x8x1xf32> to vector<1x8x8xf32>
    %259 = arith.mulf %254, %258 : vector<1x8x8xf32>
    %260 = arith.truncf %259 : vector<1x8x8xf32> to vector<1x8x8xbf16>
    "tpu.trace_start"() <{level = 10 : i32, message = "bqk,bkd->bqd"}> : () -> ()
    %cst_74 = arith.constant dense<0.000000e+00> : vector<1x8x8xf32>
    %261 = tpu.matmul %260, %246, %cst_74 {dimension_numbers = #tpu.dot_dimension_numbers<[2], [1], [1], [2], [0, 0, 0, 1, 1, 2], [0], [0]>} : vector<1x8x8xbf16>, vector<1x8x8xbf16>, vector<1x8x8xf32> -> vector<1x8x8xf32>
    "tpu.trace_stop"() : () -> ()
    %262 = arith.truncf %261 : vector<1x8x8xf32> to vector<1x8x8xbf16>
    %263 = vector.extract_strided_slice %196 {offsets = [0, 0, 24], sizes = [1, 8, 8], strides = [1, 1, 1]} : vector<1x8x96xf32> to vector<1x8x8xf32>
    %264 = arith.truncf %263 : vector<1x8x8xf32> to vector<1x8x8xbf16>
    %265 = vector.extract_strided_slice %196 {offsets = [0, 0, 56], sizes = [1, 8, 8], strides = [1, 1, 1]} : vector<1x8x96xf32> to vector<1x8x8xf32>
    %266 = arith.truncf %265 : vector<1x8x8xf32> to vector<1x8x8xbf16>
    %267 = vector.extract_strided_slice %196 {offsets = [0, 0, 88], sizes = [1, 8, 8], strides = [1, 1, 1]} : vector<1x8x96xf32> to vector<1x8x8xf32>
    %268 = arith.truncf %267 : vector<1x8x8xf32> to vector<1x8x8xbf16>
    "tpu.trace_start"() <{level = 10 : i32, message = "bqd,bkd->bqk"}> : () -> ()
    %cst_75 = arith.constant dense<0.000000e+00> : vector<1x8x8xf32>
    %269 = tpu.matmul %264, %266, %cst_75 {dimension_numbers = #tpu.dot_dimension_numbers<[2], [2], [1], [1], [0, 0, 0, 1, 1, 1], [0], [0]>} : vector<1x8x8xbf16>, vector<1x8x8xbf16>, vector<1x8x8xf32> -> vector<1x8x8xf32>
    "tpu.trace_stop"() : () -> ()
    %cst_76 = arith.constant 0.353553385 : f32
    %270 = vector.broadcast %cst_76 : f32 to vector<1x8x8xf32>
    %271 = arith.mulf %269, %270 : vector<1x8x8xf32>
    %cst_77 = arith.constant dense<0xFF800000> : vector<1x8xf32>
    %272 = vector.multi_reduction <maximumf>, %271, %cst_77 [2] : vector<1x8x8xf32> to vector<1x8xf32>
    %273 = vector.shape_cast %272 : vector<1x8xf32> to vector<1x8x1xf32>
    %274 = vector.broadcast %273 : vector<1x8x1xf32> to vector<1x8x8xf32>
    %275 = arith.subf %271, %274 : vector<1x8x8xf32>
    %276 = math.exp %275 : vector<1x8x8xf32>
    %cst_78 = arith.constant dense<0.000000e+00> : vector<1x8xf32>
    %277 = vector.multi_reduction <add>, %276, %cst_78 [2] : vector<1x8x8xf32> to vector<1x8xf32>
    %278 = vector.shape_cast %277 : vector<1x8xf32> to vector<1x8x1xf32>
    %279 = tpu.reciprocal %278 {approx = true} : vector<1x8x1xf32> -> vector<1x8x1xf32>
    %280 = vector.broadcast %279 : vector<1x8x1xf32> to vector<1x8x8xf32>
    %281 = arith.mulf %276, %280 : vector<1x8x8xf32>
    %282 = arith.truncf %281 : vector<1x8x8xf32> to vector<1x8x8xbf16>
    "tpu.trace_start"() <{level = 10 : i32, message = "bqk,bkd->bqd"}> : () -> ()
    %cst_79 = arith.constant dense<0.000000e+00> : vector<1x8x8xf32>
    %283 = tpu.matmul %282, %268, %cst_79 {dimension_numbers = #tpu.dot_dimension_numbers<[2], [1], [1], [2], [0, 0, 0, 1, 1, 2], [0], [0]>} : vector<1x8x8xbf16>, vector<1x8x8xbf16>, vector<1x8x8xf32> -> vector<1x8x8xf32>
    "tpu.trace_stop"() : () -> ()
    %284 = arith.truncf %283 : vector<1x8x8xf32> to vector<1x8x8xbf16>
    %285 = tpu.concatenate %218, %240, %262, %284 in 2 : vector<1x8x8xbf16>, vector<1x8x8xbf16>, vector<1x8x8xbf16>, vector<1x8x8xbf16> -> vector<1x8x32xbf16>
    %286 = vector.shape_cast %285 : vector<1x8x32xbf16> to vector<8x32xbf16>
    %cst_80 = arith.constant dense<0.000000e+00> : vector<8x32xf32>
    %287 = tpu.matmul %286, %181, %cst_80 {dimension_numbers = #tpu.dot_dimension_numbers<[1], [0], [0], [1], [0, 0, 1, 1], [], []>} : vector<8x32xbf16>, vector<32x32xbf16>, vector<8x32xf32> -> vector<8x32xf32>
    %288 = vector.broadcast %185 : vector<1x32xf32> to vector<8x32xf32>
    %289 = arith.addf %287, %288 : vector<8x32xf32>
    %290 = arith.addf %179, %289 : vector<8x32xf32>
    %cst_81 = arith.constant dense<0.000000e+00> : vector<8xf32>
    %291 = vector.multi_reduction <add>, %290, %cst_81 [1] : vector<8x32xf32> to vector<8xf32>
    %292 = vector.shape_cast %291 : vector<8xf32> to vector<8x1xf32>
    %cst_82 = arith.constant 3.200000e+01 : f32
    %293 = vector.broadcast %cst_82 : f32 to vector<8x1xf32>
    %294 = arith.divf %292, %293 : vector<8x1xf32>
    %295 = vector.broadcast %294 : vector<8x1xf32> to vector<8x32xf32>
    %296 = arith.subf %290, %295 : vector<8x32xf32>
    %297 = arith.mulf %296, %296 : vector<8x32xf32>
    %cst_83 = arith.constant dense<0.000000e+00> : vector<8xf32>
    %298 = vector.multi_reduction <add>, %297, %cst_83 [1] : vector<8x32xf32> to vector<8xf32>
    %299 = vector.shape_cast %298 : vector<8xf32> to vector<8x1xf32>
    %cst_84 = arith.constant 3.200000e+01 : f32
    %300 = vector.broadcast %cst_84 : f32 to vector<8x1xf32>
    %301 = arith.divf %299, %300 : vector<8x1xf32>
    %302 = vector.broadcast %294 : vector<8x1xf32> to vector<8x32xf32>
    %303 = arith.subf %290, %302 : vector<8x32xf32>
    %cst_85 = arith.constant 9.99999974E-6 : f32
    %304 = vector.broadcast %cst_85 : f32 to vector<8x1xf32>
    %305 = arith.addf %301, %304 : vector<8x1xf32>
    %306 = math.rsqrt %305 : vector<8x1xf32>
    %307 = vector.broadcast %306 : vector<8x1xf32> to vector<8x32xf32>
    %308 = arith.mulf %303, %307 : vector<8x32xf32>
    %309 = vector.broadcast %186 : vector<1x32xf32> to vector<8x32xf32>
    %310 = arith.mulf %308, %309 : vector<8x32xf32>
    %311 = vector.broadcast %187 : vector<1x32xf32> to vector<8x32xf32>
    %312 = arith.addf %310, %311 : vector<8x32xf32>
    %313 = arith.truncf %312 : vector<8x32xf32> to vector<8x32xbf16>
    %cst_86 = arith.constant dense<0.000000e+00> : vector<8x128xf32>
    %314 = tpu.matmul %313, %182, %cst_86 {dimension_numbers = #tpu.dot_dimension_numbers<[1], [0], [0], [1], [0, 0, 1, 1], [], []>} : vector<8x32xbf16>, vector<32x128xbf16>, vector<8x128xf32> -> vector<8x128xf32>
    %315 = vector.broadcast %188 : vector<1x128xf32> to vector<8x128xf32>
    %316 = arith.addf %314, %315 : vector<8x128xf32>
    %cst_87 = arith.constant 0.000000e+00 : f32
    %317 = vector.broadcast %cst_87 : f32 to vector<8x128xf32>
    %318 = arith.maximumf %316, %317 : vector<8x128xf32>
    %319 = arith.truncf %318 : vector<8x128xf32> to vector<8x128xbf16>
    %cst_88 = arith.constant dense<0.000000e+00> : vector<8x32xf32>
    %320 = tpu.matmul %319, %183, %cst_88 {dimension_numbers = #tpu.dot_dimension_numbers<[1], [0], [0], [1], [0, 0, 1, 1], [], []>} : vector<8x128xbf16>, vector<128x32xbf16>, vector<8x32xf32> -> vector<8x32xf32>
    %321 = vector.broadcast %189 : vector<1x32xf32> to vector<8x32xf32>
    %322 = arith.addf %320, %321 : vector<8x32xf32>
    %323 = arith.addf %312, %322 : vector<8x32xf32>
    %cst_89 = arith.constant dense<0.000000e+00> : vector<8xf32>
    %324 = vector.multi_reduction <add>, %323, %cst_89 [1] : vector<8x32xf32> to vector<8xf32>
    %325 = vector.shape_cast %324 : vector<8xf32> to vector<8x1xf32>
    %cst_90 = arith.constant 3.200000e+01 : f32
    %326 = vector.broadcast %cst_90 : f32 to vector<8x1xf32>
    %327 = arith.divf %325, %326 : vector<8x1xf32>
    %328 = vector.broadcast %327 : vector<8x1xf32> to vector<8x32xf32>
    %329 = arith.subf %323, %328 : vector<8x32xf32>
    %330 = arith.mulf %329, %329 : vector<8x32xf32>
    %cst_91 = arith.constant dense<0.000000e+00> : vector<8xf32>
    %331 = vector.multi_reduction <add>, %330, %cst_91 [1] : vector<8x32xf32> to vector<8xf32>
    %332 = vector.shape_cast %331 : vector<8xf32> to vector<8x1xf32>
    %cst_92 = arith.constant 3.200000e+01 : f32
    %333 = vector.broadcast %cst_92 : f32 to vector<8x1xf32>
    %334 = arith.divf %332, %333 : vector<8x1xf32>
    %335 = vector.broadcast %327 : vector<8x1xf32> to vector<8x32xf32>
    %336 = arith.subf %323, %335 : vector<8x32xf32>
    %cst_93 = arith.constant 9.99999974E-6 : f32
    %337 = vector.broadcast %cst_93 : f32 to vector<8x1xf32>
    %338 = arith.addf %334, %337 : vector<8x1xf32>
    %339 = math.rsqrt %338 : vector<8x1xf32>
    %340 = vector.broadcast %339 : vector<8x1xf32> to vector<8x32xf32>
    %341 = arith.mulf %336, %340 : vector<8x32xf32>
    %342 = vector.broadcast %190 : vector<1x32xf32> to vector<8x32xf32>
    %343 = arith.mulf %341, %342 : vector<8x32xf32>
    %344 = vector.broadcast %191 : vector<1x32xf32> to vector<8x32xf32>
    %345 = arith.addf %343, %344 : vector<8x32xf32>
    %c0_94 = arith.constant 0 : index
    %c0_95 = arith.constant 0 : index
    %346 = vector.load %arg3[%c0_94, %c0_95] : memref<1x8xf32, #tpu.memory_space<vmem>>, vector<1x8xf32>
    %cst_96 = arith.constant dense<0.000000e+00> : vector<1x32xf32>
    %347 = tpu.matmul %346, %345, %cst_96 {dimension_numbers = #tpu.dot_dimension_numbers<[1], [0], [0], [1], [0, 0, 1, 1], [], []>} : vector<1x8xf32>, vector<8x32xf32>, vector<1x32xf32> -> vector<1x32xf32>
    %348 = arith.truncf %347 : vector<1x32xf32> to vector<1x32xbf16>
    %c0_97 = arith.constant 0 : index
    %c0_98 = arith.constant 0 : index
    %349 = vector.load %arg14[%c0_97, %c0_98] : memref<32x32xbf16, #tpu.memory_space<vmem>>, vector<32x32xbf16>
    %cst_99 = arith.constant dense<0.000000e+00> : vector<1x32xf32>
    %350 = tpu.matmul %348, %349, %cst_99 {dimension_numbers = #tpu.dot_dimension_numbers<[1], [0], [0], [1], [0, 0, 1, 1], [], []>} : vector<1x32xbf16>, vector<32x32xbf16>, vector<1x32xf32> -> vector<1x32xf32>
    %351 = vector.extract_strided_slice %0 {offsets = [17, 0], sizes = [1, 32], strides = [1, 1]} : vector<19x128xf32> to vector<1x32xf32>
    %352 = arith.addf %350, %351 : vector<1x32xf32>
    %cst_100 = arith.constant 0.000000e+00 : f32
    %353 = vector.broadcast %cst_100 : f32 to vector<1x32xf32>
    %354 = arith.maximumf %352, %353 : vector<1x32xf32>
    %355 = arith.truncf %354 : vector<1x32xf32> to vector<1x32xbf16>
    %c0_101 = arith.constant 0 : index
    %c0_102 = arith.constant 0 : index
    %356 = vector.load %arg15[%c0_101, %c0_102] : memref<32x3xbf16, #tpu.memory_space<vmem>>, vector<32x3xbf16>
    %cst_103 = arith.constant dense<0.000000e+00> : vector<1x3xf32>
    %357 = tpu.matmul %355, %356, %cst_103 {dimension_numbers = #tpu.dot_dimension_numbers<[1], [0], [0], [1], [0, 0, 1, 1], [], []>} : vector<1x32xbf16>, vector<32x3xbf16>, vector<1x3xf32> -> vector<1x3xf32>
    %358 = vector.extract_strided_slice %0 {offsets = [18, 0], sizes = [1, 3], strides = [1, 1]} : vector<19x128xf32> to vector<1x3xf32>
    %359 = arith.addf %357, %358 : vector<1x3xf32>
    %360 = vector.shape_cast %359 : vector<1x3xf32> to vector<1x1x3xf32>
    %c0_104 = arith.constant 0 : index
    %c0_105 = arith.constant 0 : index
    %c0_106 = arith.constant 0 : index
    %361 = vector.load %arg16[%c0_104, %c0_105, %c0_106] : memref<1x1x3xf32, #tpu.memory_space<vmem>>, vector<1x1x3xf32>
    tpu.vector_store %arg16[%c0_104, %c0_105, %c0_106], %360 {strides = array<i32>} : memref<1x1x3xf32, #tpu.memory_space<vmem>>, vector<1x1x3xf32>,
    return
  }
  func.func @transform_0(%arg0: i32) -> (i32, i32, i32) {
    %c0_i32 = arith.constant 0 : i32
    %c0_i32_0 = arith.constant 0 : i32
    %c0_i32_1 = arith.constant 0 : i32
    return %arg0, %c0_i32, %c0_i32_0 : i32, i32, i32
  }
  func.func @transform_1(%arg0: i32) -> (i32, i32) {
    %c0_i32 = arith.constant 0 : i32
    %c0_i32_0 = arith.constant 0 : i32
    %c0_i32_1 = arith.constant 0 : i32
    return %c0_i32, %c0_i32_0 : i32, i32
  }
  func.func @transform_2(%arg0: i32) -> (i32, i32) {
    %c0_i32 = arith.constant 0 : i32
    %c0_i32_0 = arith.constant 0 : i32
    %c0_i32_1 = arith.constant 0 : i32
    return %c0_i32, %c0_i32_0 : i32, i32
  }
  func.func @transform_3(%arg0: i32) -> (i32, i32) {
    %c0_i32 = arith.constant 0 : i32
    %c0_i32_0 = arith.constant 0 : i32
    %c0_i32_1 = arith.constant 0 : i32
    return %c0_i32, %c0_i32_0 : i32, i32
  }
  func.func @transform_4(%arg0: i32) -> (i32, i32) {
    %c0_i32 = arith.constant 0 : i32
    %c0_i32_0 = arith.constant 0 : i32
    %c0_i32_1 = arith.constant 0 : i32
    return %c0_i32, %c0_i32_0 : i32, i32
  }
  func.func @transform_5(%arg0: i32) -> (i32, i32) {
    %c0_i32 = arith.constant 0 : i32
    %c0_i32_0 = arith.constant 0 : i32
    %c0_i32_1 = arith.constant 0 : i32
    return %c0_i32, %c0_i32_0 : i32, i32
  }
  func.func @transform_6(%arg0: i32) -> (i32, i32) {
    %c0_i32 = arith.constant 0 : i32
    %c0_i32_0 = arith.constant 0 : i32
    %c0_i32_1 = arith.constant 0 : i32
    return %c0_i32, %c0_i32_0 : i32, i32
  }
  func.func @transform_7(%arg0: i32) -> (i32, i32) {
    %c0_i32 = arith.constant 0 : i32
    %c0_i32_0 = arith.constant 0 : i32
    %c0_i32_1 = arith.constant 0 : i32
    return %c0_i32, %c0_i32_0 : i32, i32
  }
  func.func @transform_8(%arg0: i32) -> (i32, i32) {
    %c0_i32 = arith.constant 0 : i32
    %c0_i32_0 = arith.constant 0 : i32
    %c0_i32_1 = arith.constant 0 : i32
    return %c0_i32, %c0_i32_0 : i32, i32
  }
  func.func @transform_9(%arg0: i32) -> (i32, i32) {
    %c0_i32 = arith.constant 0 : i32
    %c0_i32_0 = arith.constant 0 : i32
    %c0_i32_1 = arith.constant 0 : i32
    return %c0_i32, %c0_i32_0 : i32, i32
  }
  func.func @transform_10(%arg0: i32) -> (i32, i32) {
    %c0_i32 = arith.constant 0 : i32
    %c0_i32_0 = arith.constant 0 : i32
    %c0_i32_1 = arith.constant 0 : i32
    return %c0_i32, %c0_i32_0 : i32, i32
  }
  func.func @transform_11(%arg0: i32) -> (i32, i32) {
    %c0_i32 = arith.constant 0 : i32
    %c0_i32_0 = arith.constant 0 : i32
    %c0_i32_1 = arith.constant 0 : i32
    return %c0_i32, %c0_i32_0 : i32, i32
  }
  func.func @transform_12(%arg0: i32) -> (i32, i32) {
    %c0_i32 = arith.constant 0 : i32
    %c0_i32_0 = arith.constant 0 : i32
    %c0_i32_1 = arith.constant 0 : i32
    return %c0_i32, %c0_i32_0 : i32, i32
  }
  func.func @transform_13(%arg0: i32) -> (i32, i32) {
    %c0_i32 = arith.constant 0 : i32
    %c0_i32_0 = arith.constant 0 : i32
    %c0_i32_1 = arith.constant 0 : i32
    return %c0_i32, %c0_i32_0 : i32, i32
  }
  func.func @transform_14(%arg0: i32) -> (i32, i32) {
    %c0_i32 = arith.constant 0 : i32
    %c0_i32_0 = arith.constant 0 : i32
    %c0_i32_1 = arith.constant 0 : i32
    return %c0_i32, %c0_i32_0 : i32, i32
  }
  func.func @transform_15(%arg0: i32) -> (i32, i32, i32) {
    %c0_i32 = arith.constant 0 : i32
    %c0_i32_0 = arith.constant 0 : i32
    %c0_i32_1 = arith.constant 0 : i32
    return %arg0, %c0_i32, %c0_i32_0 : i32, i32, i32
  }
}

</mosaic_0001>

<bundles_post_ra>
// kernel: tpu_custom_call.1
= control target key start
LH: loop header
LB: loop body
LE: loop exit
PB: predicated region body
PF: predicated region fallthrough
CT: control target
= control target key end

     0   :  { %s3617_s0 = inlined_call_operand.vmem [shape: f32[2,8,4], index: 0, kind: input, shape index: {}]   ;;  %s3618_s1 = inlined_call_operand.vmem [shape: f32[8,32], index: 1, kind: input, shape index: {}]   ;;  %s3619_s2 = inlined_call_operand.vmem [shape: f32[1,8], index: 2, kind: input, shape index: {}]   ;;  %s3620_s3 = inlined_call_operand.vmem [shape: f32[19,128], index: 3, kind: input, shape index: {}]   ;;  %s3621_s4 = inlined_call_operand.vmem [shape: bf16[4,32], index: 4, kind: input, shape index: {}]   ;;  %s3622_s5 = inlined_call_operand.vmem [shape: bf16[32,96], index: 5, kind: input, shape index: {}]   ;;  %s3623_s6 = inlined_call_operand.vmem [shape: bf16[32,32], index: 6, kind: input, shape index: {}]   ;;  %s3624_s7 = inlined_call_operand.vmem [shape: bf16[32,128], index: 7, kind: input, shape index: {}]   ;;  %s3625_s8 = inlined_call_operand.vmem [shape: bf16[128,32], index: 8, kind: input, shape index: {}]   ;;  %s3626_s9 = inlined_call_operand.vmem [shape: bf16[32,96], index: 9, kind: input, shape index: {}]   ;;  %s3627_s10 = inlined_call_operand.vmem [shape: bf16[32,32], index: 10, kind: input, shape index: {}]   ;;  %s3628_s11 = inlined_call_operand.vmem [shape: bf16[32,128], index: 11, kind: input, shape index: {}]   ;;  %s3629_s12 = inlined_call_operand.vmem [shape: bf16[128,32], index: 12, kind: input, shape index: {}]   ;;  %s3630_s13 = inlined_call_operand.vmem [shape: bf16[32,32], index: 13, kind: input, shape index: {}]   ;;  %s3631_s14 = inlined_call_operand.vmem [shape: bf16[32,3], index: 14, kind: input, shape index: {}]   ;;  %s3632_s15 = inlined_call_operand.hbm [shape: f32[2,1,3], index: 15, kind: output, shape index: {}]  }
   0x1   :  { %3647 = sst [smem:[#allocation6_spill]] %s3617_s0 }
   0x2   :  { %3648 = sst [smem:[#allocation7_spill]] %s3618_s1 }
   0x3   :  { %3649 = sst [smem:[#allocation8_spill]] %s3621_s4 }
   0x4   :  { %20 = vsyncpa [#allocation3], 0 }
   0x5   :  { %22 = vsyncpa [#allocation3 + $0x1], 0  ;;  %s3093_s18 = smov 0   ;;  %s3095_s19 = smov 0  }
   0x6   :  { %s3097_s20 = smov 0   ;;  %s3099_s21 = smov 0  }
   0x7 LB: > { %s3114_s22 = sadd.s32 4294967295, %s2994_s21   ;;  %s2450_s23 = sadd.s32 4294967294, %s2994_s21   ;;  %s2994_s21 = sphi %s3099_s21, %s3674_s21   ;;  %s2990_s20 = sphi %s3097_s20, %s3673_s20   ;;  %s2986_s19 = sphi %s3095_s19, %s3672_s19   ;;  %s2982_s18 = sphi %s3093_s18, %s3671_s18  }
   0x8   : > { %s3118_s24 = sadd.s32 1, %s2994_s21   ;;  %s355_s25 = sadd.s32 1, %s2990_s20 }
   0x9   : > { %s352_s26 = ssub.s32 %s2994_s21, %s3118_s24  ;;  %p365_p0 = scmp.ne.s32.totalorder %s2990_s20, %s2986_s19 }
   0xa   : > { %p353_p1 = scmp.eq.s32.totalorder %s352_s26, 0  ;;  %p366_p2 = scmp.eq.s32.totalorder %s3114_s22, 1 }
   0xb   : > { %p371_p3 = scmp.ne.s32.totalorder %s2986_s19, %s2982_s18  ;;  %p372_p4 = scmp.eq.s32.totalorder %s2450_s23, 1 }
   0xc   : > { %s3129_s27 = scalar_select %p353_p1, %s2990_s20, %s355_s25  }
   0xd   : > { %p3131_p5 = por %p366_p2, %p365_p0  ;;  %p3135_p6 = por %p372_p4, %p371_p3 }
   0xe   : > { %3650 = sst [smem:[#allocation5_spill]] %s3129_s27  ;;  %p2453_p7 = scmp.ge.s32.totalorder %s2994_s21, 1 }
   0xf   : > { %p439_p8 = scmp.lt.s32.totalorder %s2994_s21, 3 }
  0x11   : > { %p440_p9 = pnand %p2453_p7, %p439_p8 }
  0x12   : > { %s3653_s4 = sld [smem:[#allocation8_spill]] (!%p440_p9)  ;;  %vm504_vm0 = vcmask (!%p440_p9), 1041408   ;;  %p485_p10 = scmp.lt.s32.totalorder (!%p440_p9), %s3114_s22, 1  ;;  %v2996_v1 = vmov (!%p440_p9), 0.0   ;;  %vm2997_vm1 = vmmov (!%p440_p9), 0   ;;  %vm500_vm2 = vcmask (!%p440_p9), 31744  }
  0x13   : > { %443 = sbr.rel (%p440_p9) target bundleno = 6485 (0x1955), region = 80  ;;  %2594 = vmatprep.subr.bf16.mxu0 (!%p440_p9), %v2996_v1  ;;  %2596 = vmatprep.mubr.msk.bf16.mxu0 (!%p440_p9), %vm2997_vm1, %v2996_v1  ;;  %s3654_s0 = sld [smem:[#allocation6_spill]] (!%p440_p9)  ;;  %v2860_v5 = vld [vmem:[%s3622_s5] sm:$0xff] (!%p440_p9)   ;;  %v2861_v6 = vld [vmem:[%s3622_s5 + $0x8] sm:$0xff] (!%p440_p9)   ;;  %v496_v7 = vlaneseq (!%p440_p9)  ;;  %vm595_vm3 = vcmask (!%p440_p9), 261120   ;;  %vm643_vm4 = vcmask (!%p440_p9), 64512  }
  0x14   : > { %2600 = vmatprep.subr.bf16.mxu1 (!%p440_p9), %v2996_v1  ;;  %2604 = vmatprep.mubr.msk.bf16.mxu1 (!%p440_p9), %vm2997_vm1, %v2996_v1  ;;  %v3174_v10 = vld [vmem:[%s3620_s3] sm:$0xff] (!%p440_p9)  ;;  %s3655_s1 = sld [smem:[#allocation7_spill]] (!%p440_p9)  ;;  %s3644_s26 = smov (!%p440_p9), 120   ;;  %vm708_vm5 = vcmask (!%p440_p9), 1043456   ;;  %vm1101_vm6 = vcmask (!%p440_p9), 130048   ;;  %vm1104_vm7 = vcmask (!%p440_p9), 195584  }
  0x15   : > { %2601 = vmatpush3.bf16.msra.mxu1 (!%p440_p9), %v2860_v5  ;;  %v3166_v8 = vshrl.u32 (!%p440_p9), %v496_v7, 7  ;;  %s3640_s16 = smov (!%p440_p9), 80   ;;  %s3635_s25 = smov (!%p440_p9), 112   ;;  %vm2380_vm8 = vcmask (!%p440_p9), 16384  }
  0x16   : > { %2602 = vmatprep.subr.bf16.mxu1 (!%p440_p9), %v2996_v1  ;;  %s3638_s27 = smov (!%p440_p9), 56  }
  0x17   : > { %v3169_v9 = vsub.s32 (!%p440_p9), 0, %v3166_v8  ;;  %v581_v20 = vsub.s32 (!%p440_p9), 1, %v3166_v8 }
  0x18   : > { %v495_v0 = vld [vmem:[%s3653_s4] sm:$0x3] (!%p440_p9)  ;;  %s3634_s4 = smov (!%p440_p9), 104  }
  0x19   : > { %v506_v2 = vsel (!%p440_p9), %vm504_vm0, %v495_v0, 0  ;;  %2603 = vmatpush3.bf16.msra.mxu1 (!%p440_p9), %v2861_v6  ;;  %v499_v11 = vrot.slane (!%p440_p9), %v3174_v10, %v3169_v9  ;;  %v582_v21 = vrot.slane (!%p440_p9), %v3174_v10, %v581_v20 }
  0x1a   : > { %2595 = vmatpush3.bf16.msra.mxu0 %v506_v2  ;;  %s486_s17 = scalar_select %p485_p10, %s3114_s22, 1  ;;  %2614 = vmatprep.subr.bf16.mxu1 %v2996_v1  ;;  %v548_v13 = vld [vmem:[%s3655_s1] sm:$0xff] }
  0x1b   : > { %2608 = vmatprep.subr.bf16.mxu0 %v2996_v1 }
  0x1c   : > { %s2454_s23 = sshll.u32 %s486_s17, 3  ;;  %s3645_s17 = smov 88  }
  0x1d   : > { %s488_s30 = scalar_lea.vmem %s3654_s0, %s2454_s23  ;;  %s3633_s23 = smov 72  }
  0x1e   : > { %v493_v3 = vld [vmem:[%s488_s30] sm:$0xff]  ;;  %s3646_s30 = smov 96   ;;  %s3012_s0 = smov [#allocation2]  }
  0x1f   : > { %v494_v4 = vpack.c.bf16 %v493_v3, %v493_v3  ;;  %s2936_s1 = sshll.u32 %s3012_s0, 4  ;;  %s2937_s1 = int_to_ptr.vmem [resolvable:$false] %s2936_s1 }
  0x21   : > { %2597 = vmatmul.mubr.msk.bf16.vlgmr.msra.gmra.mrb[0].mxu0 %vm500_vm2, %v494_v4 }
  0x22   : > { %2610 = vmatprep.mubr.msk.bf16.mxu0 %vm2997_vm1, %v2996_v1 }
  0xf4   : > { %v542_v12 = vpop.f32.mrb[0].mxu0 }
  0xf5   : > { %v543_v14 = vadd.f32 %v542_v12, %v499_v11  ;;  %v2598_v15 = vpop.f32.mrb[1].mxu0 }
  0xf6   : > { %v545_v16 = vpop.f32.mrb[2].mxu0 }
  0xf7   : > { %v3181_v17 = vadd.f32 %v548_v13, %v543_v14  ;;  %v2599_v18 = vpop.f32.mrb[3].mxu0 }
  0xf9   : > { %v578_v19 = vpack.c.bf16 %v3181_v17, %v3181_v17 }
  0xfb   : > { %2605 = vmatmul.mubr.msk.bf16.vlgmr.msra.gmra.mrb[0].mxu1 %vm595_vm3, %v578_v19 }
  0xfc   : > { %2616 = vmatprep.mubr.msk.bf16.mxu1 %vm2997_vm1, %v2996_v1 }
 0x1ce   : > { %v633_v22 = vpop.f32.mrb[0].mxu1 }
 0x1cf   : > { %v634_v23 = vadd.f32 %v633_v22, %v582_v21  ;;  %v2606_v24 = vpop.f32.mrb[1].mxu1 }
 0x1d0   : > { %v636_v25 = vpop.f32.mrb[2].mxu1 }
 0x1d1   : > { %v3192_v26 = vpack.c.bf16 %v634_v23, %v634_v23  ;;  %v2607_v27 = vpop.f32.mrb[3].mxu1 }
 0x1d3   : > { %753 = vrot.lane.b32.xlu1 %v3192_v26, %s3644_s26  ;;  %641 = vrot.lane.b32.xlu0 %v3192_v26, %s3646_s30  ;;  %s3658_s26 = smov 120   ;;  %s3659_s30 = smov 80  }
 0x1d7   : > { %867 = vrot.lane.b32.xlu1 %v3192_v26, %s3640_s16  ;;  %755 = vrot.lane.b32.xlu0 %v3192_v26, %s3645_s17  ;;  %s3660_s17 = smov 112   ;;  %s3662_s16 = smov 64  }
 0x1db   : > { %979 = vrot.lane.b32.xlu1 %v3192_v26, %s3633_s23  ;;  %865 = vrot.lane.b32.xlu0 %v3192_v26, %s3635_s25  ;;  %s3639_s23 = smov 64   ;;  %s3636_s25 = smov 48  }
 0x1df   : > { %977 = vrot.lane.b32.xlu0 %v3192_v26, %s3634_s4  ;;  %s3637_s4 = smov 40  }
 0x245   : > { %v642_v28 = vpop.permute.xlu0 %641  ;;  %v754_v31 = vpop.permute.xlu1 %753 }
 0x246   : > { %v648_v29 = vsel %vm643_vm4, %v642_v28, 0 }
 0x247   : > { %2609 = vmatpush3.bf16.xpose.msra.mxu0 %v648_v29 }
 0x248   : > { %2620 = vmatprep.subr.bf16.mxu0 %v2996_v1 }
 0x249   : > { %v756_v30 = vpop.permute.xlu0 %755  ;;  %v868_v33 = vpop.permute.xlu1 %867 }
 0x24a   : > { %v761_v32 = vsel %vm643_vm4, %v756_v30, 0  ;;  %v873_v34 = vsel %vm643_vm4, %v868_v33, 0 }
 0x24d   : > { %v980_v35 = vpop.permute.xlu1 %979  ;;  %v866_v36 = vpop.permute.xlu0 %865 }
 0x24e   : > { %2611 = vmatmul.mubr.msk.bf16.vlgmr.msra.gmra.mrb[4].mxu0 %vm643_vm4, %v3192_v26  ;;  %v985_v37 = vsel %vm643_vm4, %v980_v35, 0 }
 0x24f   : > { %2621 = vmatpush3.bf16.xpose.msra.mxu0 %v761_v32  ;;  %2622 = vmatprep.mubr.msk.bf16.mxu0 %vm2997_vm1, %v2996_v1 }
 0x250   : > { %2632 = vmatprep.subr.bf16.mxu0 %v2996_v1 }
 0x251   : > { %v978_v38 = vpop.permute.xlu0 %977 }
 0x256   : > { %2623 = vmatmul.mubr.msk.bf16.vlgmr.msra.gmra.mrb[8].mxu0 %vm643_vm4, %v754_v31 }
 0x257   : > { %2633 = vmatpush3.bf16.xpose.msra.mxu0 %v873_v34  ;;  %2634 = vmatprep.mubr.msk.bf16.mxu0 %vm2997_vm1, %v2996_v1 }
 0x258   : > { %2644 = vmatprep.subr.bf16.mxu0 %v2996_v1 }
 0x25e   : > { %2635 = vmatmul.mubr.msk.bf16.vlgmr.msra.gmra.mrb[12].mxu0 %vm643_vm4, %v866_v36 }
 0x25f   : > { %2645 = vmatpush3.bf16.xpose.msra.mxu0 %v985_v37  ;;  %2646 = vmatprep.mubr.msk.bf16.mxu0 %vm2997_vm1, %v2996_v1 }
 0x260   : > { %2656 = vmatprep.subr.bf16.mxu0 %v2996_v1 }
 0x266   : > { %2647 = vmatmul.mubr.msk.bf16.vlgmr.msra.gmra.mrb[16].mxu0 %vm643_vm4, %v978_v38 }
 0x267   : > { %2660 = vmatprep.mubr.msk.bf16.mxu0 %vm2997_vm1, %v2996_v1 }
 0x321   : > { %v684_v39 = vpop.f32.mrb[4].mxu0 }
 0x322   : > { %v690_v40 = vmul.f32 0.35355338, %v684_v39  ;;  %v2612_v41 = vpop.f32.mrb[5].mxu0 }
 0x323   : > { %v687_v42 = vpop.f32.mrb[6].mxu0 }
 0x324   : > { %v2613_v43 = vpop.f32.mrb[7].mxu0  ;;  %v691_v44 = vsel %vm643_vm4, %v690_v40, -inf }
 0x325   : > { %692 = vmax.xlane.f32.xlu1 %v691_v44 }
 0x329   : > { %v797_v45 = vpop.f32.mrb[8].mxu0 }
 0x32a   : > { %v803_v46 = vmul.f32 0.35355338, %v797_v45  ;;  %v2624_v47 = vpop.f32.mrb[9].mxu0 }
 0x32b   : > { %v800_v48 = vpop.f32.mrb[10].mxu0 }
 0x32c   : > { %v2625_v49 = vpop.f32.mrb[11].mxu0  ;;  %v804_v50 = vsel %vm643_vm4, %v803_v46, -inf }
 0x32d   : > { %805 = vmax.xlane.f32.xlu0 %v804_v50 }
 0x331   : > { %v909_v51 = vpop.f32.mrb[12].mxu0 }
 0x332   : > { %v915_v52 = vmul.f32 0.35355338, %v909_v51  ;;  %v2636_v53 = vpop.f32.mrb[13].mxu0 }
 0x333   : > { %v912_v54 = vpop.f32.mrb[14].mxu0 }
 0x334   : > { %v2637_v55 = vpop.f32.mrb[15].mxu0  ;;  %v916_v56 = vsel %vm643_vm4, %v915_v52, -inf }
 0x335   : > { %917 = vmax.xlane.f32.xlu0 %v916_v56 }
 0x339   : > { %v1021_v57 = vpop.f32.mrb[16].mxu0 }
 0x33a   : > { %v1027_v58 = vmul.f32 0.35355338, %v1021_v57  ;;  %v2648_v59 = vpop.f32.mrb[17].mxu0 }
 0x33b   : > { %v1024_v60 = vpop.f32.mrb[18].mxu0  ;;  %v2863_v59 = vld [vmem:[%s3623_s6 + $0x8] sm:$0xff]  }
 0x33c   : > { %v2649_v61 = vpop.f32.mrb[19].mxu0  ;;  %v1028_v62 = vsel %vm643_vm4, %v1027_v58, -inf }
 0x33d   : > { %1029 = vmax.xlane.f32.xlu1 %v1028_v62 }
 0x3b2   : > { %v693_v63 = vpop.xlane.xlu1 %692 }
 0x3b3   : > { %v694_v0 = vsub.f32 %v690_v40, %v693_v63 }
 0x3b5   : > { %v695_v2 = vmul.f32 1.442695, %v694_v0 }
 0x3b7   : > { %2892 = vpow2.f32 %v695_v2 }
 0x3ba   : > { %v806_v3 = vpop.xlane.xlu0 %805 }
 0x3bb   : > { %v807_v4 = vsub.f32 %v803_v46, %v806_v3 }
 0x3bd   : > { %v808_v5 = vmul.f32 1.442695, %v807_v4 }
 0x3bf   : > { %2894 = vpow2.f32 %v808_v5 }
 0x3c1   : > { %v2893_v6 = vpop.eup %2892 }
 0x3c2   : > { %v918_v7 = vpop.xlane.xlu0 %917  ;;  %v697_v11 = vsel %vm643_vm4, %v2893_v6, 0.0 }
 0x3c3   : > { %v919_v12 = vsub.f32 %v915_v52, %v918_v7  ;;  %698 = vadd.xlane.f32.xlu0 %v697_v11 }
 0x3c5   : > { %v920_v13 = vmul.f32 1.442695, %v919_v12 }
 0x3c7   : > { %2896 = vpow2.f32 %v920_v13 }
 0x3c9   : > { %v2895_v14 = vpop.eup %2894 }
 0x3ca   : > { %v810_v15 = vsel %vm643_vm4, %v2895_v14, 0.0  ;;  %v1030_v19 = vpop.xlane.xlu1 %1029 }
 0x3cb   : > { %811 = vadd.xlane.f32.xlu1 %v810_v15  ;;  %v1031_v21 = vsub.f32 %v1027_v58, %v1030_v19  ;;  %v2862_v58 = vld [vmem:[%s3623_s6] sm:$0xff]  }
 0x3cc   : > { %2657 = vmatpush3.bf16.msra.mxu0 %v2862_v58 }
 0x3cd   : > { %v1032_v22 = vmul.f32 1.442695, %v1031_v21  ;;  %2658 = vmatprep.subr.bf16.mxu0 %v2996_v1 }
 0x3cf   : > { %2898 = vpow2.f32 %v1032_v22 }
 0x3d0   : > { %2659 = vmatpush3.bf16.msra.mxu0 %v2863_v59 }
 0x3d1   : > { %v2897_v16 = vpop.eup %2896  ;;  %2672 = vmatprep.subr.bf16.mxu0 %v2996_v1 }
 0x3d2   : > { %v922_v18 = vsel %vm643_vm4, %v2897_v16, 0.0 }
 0x3d3   : > { %923 = vadd.xlane.f32.xlu0 %v922_v18  ;;  %v1109_v18 = vsub.s32 2, %v3166_v8 }
 0x3d5   : > { %v1110_v19 = vrot.slane %v3174_v10, %v1109_v18 }
 0x3d9   : > { %v2899_v23 = vpop.eup %2898 }
 0x3da   : > { %v1034_v24 = vsel %vm643_vm4, %v2899_v23, 0.0 }
 0x3dc   : > { %816 = vrot.lane.b32.xlu1 %v3192_v26, %s3638_s27  ;;  %s3657_s27 = smov 88  }
 0x3e9   : > { %703 = vrot.lane.b32.xlu0 %v3192_v26, %s3639_s23  ;;  %s3663_s23 = smov 72  }
 0x3ed   : > { %1040 = vrot.lane.b32.xlu0 %v3192_v26, %s3637_s4  ;;  %s3642_s4 = smov 24  }
 0x400   : > { %1035 = vadd.xlane.f32.xlu1 %v1034_v24 }
 0x411   : > { %928 = vrot.lane.b32.xlu1 %v3192_v26, %s3636_s25  ;;  %s3641_s25 = smov 8  }
 0x450   : > { %v699_v25 = vpop.xlane.xlu0 %698 }
 0x451   : > { %2900 = vrcp.f32 %v699_v25 }
 0x458   : > { %v812_v27 = vpop.xlane.xlu1 %811 }
 0x459   : > { %2902 = vrcp.f32 %v812_v27 }
 0x45b   : > { %v2901_v28 = vpop.eup %2900 }
 0x45c   : > { %v701_v30 = vmul.f32 %v2901_v28, %v2893_v6  ;;  %v817_v33 = vpop.permute.xlu1 %816 }
 0x45d   : > { %v822_v36 = vsel %vm708_vm5, %v817_v33, 0 }
 0x45e   : > { %v702_v34 = vpack.c.bf16 %v701_v30, %v701_v30 }
 0x460   : > { %v924_v29 = vpop.xlane.xlu0 %923 }
 0x461   : > { %2904 = vrcp.f32 %v924_v29 }
 0x463   : > { %v2903_v35 = vpop.eup %2902 }
 0x464   : > { %v704_v31 = vpop.permute.xlu0 %703  ;;  %v814_v26 = vmul.f32 %v2903_v35, %v2895_v14  ;;  %v2866_v35 = vld [vmem:[%s3625_s8] sm:$0xff]  }
 0x465   : > { %v710_v32 = vsel %vm708_vm5, %v704_v31, 0 }
 0x466   : > { %2615 = vmatpush3.bf16.msra.mxu1 %v710_v32  ;;  %v815_v37 = vpack.c.bf16 %v814_v26, %v814_v26  ;;  %v2868_v26 = vld [vmem:[%s3625_s8 + $0x10] sm:$0xff]  }
 0x467   : > { %2626 = vmatprep.subr.bf16.mxu1 %v2996_v1 }
 0x468   : > { %v1041_v43 = vpop.permute.xlu0 %1040 }
 0x469   : > { %2617 = vmatmul.mubr.msk.bf16.vlgmr.msra.gmra.mrb[4].mxu1 %vm643_vm4, %v702_v34  ;;  %v1046_v45 = vsel %vm708_vm5, %v1041_v43, 0  ;;  %v2864_v34 = vld [vmem:[%s3624_s7] sm:$0xff]   ;;  %v1182_v43 = vsub.s32 3, %v3166_v8 }
 0x46a   : > { %2627 = vmatpush3.bf16.msra.mxu1 %v822_v36  ;;  %2628 = vmatprep.mubr.msk.bf16.mxu1 %vm2997_vm1, %v2996_v1  ;;  %v2867_v36 = vld [vmem:[%s3625_s8 + $0x8] sm:$0xff]  }
 0x46b   : > { %2638 = vmatprep.subr.bf16.mxu1 %v2996_v1  ;;  %v2905_v38 = vpop.eup %2904 }
 0x46c   : > { %v926_v40 = vmul.f32 %v2905_v38, %v2897_v16  ;;  %v2870_v38 = vld [vmem:[%s3625_s8 + $0x20] sm:$0xff]  }
 0x46e   : > { %v927_v44 = vpack.c.bf16 %v926_v40, %v926_v40 }
 0x471   : > { %2629 = vmatmul.mubr.msk.bf16.vlgmr.msra.gmra.mrb[8].mxu1 %vm643_vm4, %v815_v37  ;;  %v2869_v37 = vld [vmem:[%s3625_s8 + $0x18] sm:$0xff]  }
 0x472   : > { %2640 = vmatprep.mubr.msk.bf16.mxu1 %vm2997_vm1, %v2996_v1 }
 0x48d   : > { %v1036_v39 = vpop.xlane.xlu1 %1035 }
 0x48e   : > { %2906 = vrcp.f32 %v1036_v39  ;;  %v2871_v39 = vld [vmem:[%s3625_s8 + $0x28] sm:$0xff]  }
 0x491   : > { %v929_v41 = vpop.permute.xlu1 %928 }
 0x492   : > { %v934_v42 = vsel %vm708_vm5, %v929_v41, 0 }
 0x493   : > { %2639 = vmatpush3.bf16.msra.mxu1 %v934_v42 }
 0x494   : > { %2650 = vmatprep.subr.bf16.mxu1 %v2996_v1 }
 0x496   : > { %2641 = vmatmul.mubr.msk.bf16.vlgmr.msra.gmra.mrb[12].mxu1 %vm643_vm4, %v927_v44  ;;  %v1187_v44 = vsub.s32 4, %v3166_v8 }
 0x497   : > { %2651 = vmatpush3.bf16.msra.mxu1 %v1046_v45  ;;  %2652 = vmatprep.mubr.msk.bf16.mxu1 %vm2997_vm1, %v2996_v1  ;;  %v1183_v45 = vrot.slane %v3174_v10, %v1182_v43 }
 0x498   : > { %v2907_v46 = vpop.eup %2906  ;;  %2664 = vmatprep.subr.bf16.mxu1 %v2996_v1 }
 0x499   : > { %v1038_v47 = vmul.f32 %v2907_v46, %v2899_v23 }
 0x49b   : > { %v1039_v48 = vpack.c.bf16 %v1038_v47, %v1038_v47 }
 0x49e   : > { %2653 = vmatmul.mubr.msk.bf16.vlgmr.msra.gmra.mrb[16].mxu1 %vm643_vm4, %v1039_v48  ;;  %v1188_v48 = vrot.slane %v3174_v10, %v1187_v44 }
 0x49f   : > { %2668 = vmatprep.mubr.msk.bf16.mxu1 %vm2997_vm1, %v2996_v1  ;;  %2665 = vmatpush3.bf16.msra.mxu1 %v2864_v34 }
 0x4a0   : > { %2666 = vmatprep.subr.bf16.mxu1 %v2996_v1 }
 0x53c   : > { %v746_v49 = vpop.f32.mrb[4].mxu1 }
 0x53d   : > { %v2618_v50 = vpop.f32.mrb[5].mxu1  ;;  %v752_v11 = vpack.c.bf16 %v746_v49, %v746_v49 }
 0x53e   : > { %v749_v51 = vpop.f32.mrb[6].mxu1 }
 0x53f   : > { %v2619_v52 = vpop.f32.mrb[7].mxu1 }
 0x540   : > { %v2872_v52 = vld [vmem:[%s3625_s8 + $0x30] sm:$0xff]  }
 0x544   : > { %v858_v53 = vpop.f32.mrb[8].mxu1 }
 0x545   : > { %v864_v54 = vpack.c.bf16 %v858_v53, %v858_v53  ;;  %v2630_v55 = vpop.f32.mrb[9].mxu1  ;;  %v2873_v53 = vld [vmem:[%s3625_s8 + $0x38] sm:$0xff]  }
 0x546   : > { %v861_v56 = vpop.f32.mrb[10].mxu1 }
 0x547   : > { %1090 = vrot.lane.b32.xlu1 %v864_v54, %s3641_s25  ;;  %v2631_v57 = vpop.f32.mrb[11].mxu1  ;;  %s3643_s25 = smov 16   ;;  %v1193_v54 = vsub.s32 5, %v3166_v8 }
 0x549   : > { %v1194_v55 = vrot.slane %v3174_v10, %v1193_v54 }
 0x569   : > { %v970_v60 = vpop.f32.mrb[12].mxu1 }
 0x56a   : > { %v976_v61 = vpack.c.bf16 %v970_v60, %v970_v60  ;;  %v2642_v62 = vpop.f32.mrb[13].mxu1 }
 0x56b   : > { %v973_v63 = vpop.f32.mrb[14].mxu1 }
 0x56c   : > { %1093 = vrot.lane.b32.xlu0 %v976_v61, %s3643_s25  ;;  %v2643_v0 = vpop.f32.mrb[15].mxu1  ;;  %v1254_v63 = vsub.s32 6, %v3166_v8  ;;  %s3661_s25 = smov 104  }
 0x56e   : > { %v1255_v0 = vrot.slane %v3174_v10, %v1254_v63 }
 0x571   : > { %v1082_v2 = vpop.f32.mrb[16].mxu1 }
 0x572   : > { %v1088_v3 = vpack.c.bf16 %v1082_v2, %v1082_v2  ;;  %v2654_v4 = vpop.f32.mrb[17].mxu1 }
 0x573   : > { %v1085_v5 = vpop.f32.mrb[18].mxu1 }
 0x574   : > { %1096 = vrot.lane.b32.xlu1 %v1088_v3, %s3642_s4  ;;  %v2655_v6 = vpop.f32.mrb[19].mxu1  ;;  %s3656_s4 = smov 96  }
 0x5b9   : > { %v1091_v7 = vpop.permute.xlu1 %1090 }
 0x5ba   : > { %v1100_v13 = vsel %vm643_vm4, %v752_v11, %v1091_v7 }
 0x5de   : > { %v1094_v12 = vpop.permute.xlu0 %1093 }
 0x5df   : > { %v1103_v14 = vsel %vm1101_vm6, %v1100_v13, %v1094_v12 }
 0x5e6   : > { %v1097_v15 = vpop.permute.xlu1 %1096 }
 0x5e7   : > { %v1106_v16 = vsel %vm1104_vm7, %v1103_v14, %v1097_v15 }
 0x5e8   : > { %2661 = vmatmul.mubr.msk.bf16.vlgmr.msra.gmra.mrb[20].mxu0 %vm595_vm3, %v1106_v16 }
 0x5e9   : > { %2688 = vmatprep.mubr.msk.bf16.mxu0 %vm2997_vm1, %v2996_v1  ;;  %2673 = vmatpush3.bf16.msra.mxu0 %v2866_v35 }
 0x5ea   : > { %2674 = vmatprep.subr.bf16.mxu0 %v2996_v1 }
 0x5ed   : > { %2675 = vmatpush3.bf16.msra.mxu0 %v2867_v36 }
 0x5ee   : > { %2676 = vmatprep.subr.bf16.mxu0 %v2996_v1 }
 0x5f1   : > { %2677 = vmatpush3.bf16.msra.mxu0 %v2868_v26 }
 0x5f2   : > { %2678 = vmatprep.subr.bf16.mxu0 %v2996_v1 }
 0x5f5   : > { %2679 = vmatpush3.bf16.msra.mxu0 %v2869_v37 }
 0x5f6   : > { %2680 = vmatprep.subr.bf16.mxu0 %v2996_v1 }
 0x5f9   : > { %2681 = vmatpush3.bf16.msra.mxu0 %v2870_v38 }
 0x5fa   : > { %2682 = vmatprep.subr.bf16.mxu0 %v2996_v1 }
 0x5fd   : > { %2683 = vmatpush3.bf16.msra.mxu0 %v2871_v39 }
 0x5fe   : > { %2684 = vmatprep.subr.bf16.mxu0 %v2996_v1 }
 0x601   : > { %2685 = vmatpush3.bf16.msra.mxu0 %v2872_v52 }
 0x602   : > { %2686 = vmatprep.subr.bf16.mxu0 %v2996_v1 }
 0x605   : > { %2687 = vmatpush3.bf16.msra.mxu0 %v2873_v53 }
 0x606   : > { %2718 = vmatprep.subr.bf16.mxu0 %v2996_v1 }
 0x6bb   : > { %v1159_v21 = vpop.f32.mrb[20].mxu0 }
 0x6bc   : > { %v1160_v22 = vadd.f32 %v1159_v21, %v1110_v19  ;;  %v2662_v23 = vpop.f32.mrb[21].mxu0  ;;  %v2874_v19 = vld [vmem:[%s3626_s9] sm:$0xff]   ;;  %v2875_v21 = vld [vmem:[%s3626_s9 + $0x8] sm:$0xff]  }
 0x6bd   : > { %v1162_v24 = vpop.f32.mrb[22].mxu0 }
 0x6be   : > { %v2663_v25 = vpop.f32.mrb[23].mxu0  ;;  %v1165_v27 = vadd.f32 %v1160_v22, %v3181_v17  ;;  %v2865_v17 = vld [vmem:[%s3624_s7 + $0x8] sm:$0xff]  }
 0x6bf   : > { %2667 = vmatpush3.bf16.msra.mxu1 %v2865_v17  ;;  %v1360_v25 = vsub.s32 7, %v3166_v8  ;;  %v2889_v8 = vld [vmem:[%s3630_s13 + $0x8] sm:$0xff]  }
 0x6c0   : > { %v1166_v28 = vsel %vm595_vm3, %v1165_v27, 0.0  ;;  %2692 = vmatprep.subr.bf16.mxu1 %v2996_v1 }
 0x6c1   : > { %1167 = vadd.xlane.f32.xlu0 %v1166_v28  ;;  %v1361_v28 = vrot.slane %v3174_v10, %v1360_v25 }
 0x74e   : > { %v1168_v29 = vpop.xlane.xlu0 %1167 }
 0x74f   : > { %v1170_v30 = vmul.f32 0.03125, %v1168_v29 }
 0x751   : > { %v1171_v31 = vsub.f32 %v1165_v27, %v1170_v30  ;;  %v3364_v27 = vld [vmem:[%s3620_s3 + $0x8] sm:$0xff] }
 0x752   : > { %v1366_v30 = vrot.slane %v3364_v27, %v3169_v9  ;;  %v1400_v10 = vrot.slane %v3364_v27, %v581_v20 }
 0x753   : > { %v1172_v32 = vmul.f32 %v1171_v31, %v1171_v31 }
 0x755   : > { %v1173_v33 = vsel %vm595_vm3, %v1172_v32, 0.0 }
 0x756   : > { %1174 = vadd.xlane.f32.xlu1 %v1173_v33 }
 0x7e3   : > { %v1175_v40 = vpop.xlane.xlu1 %1174 }
 0x7e4   : > { %v1176_v41 = vmul.f32 0.03125, %v1175_v40 }
 0x7e6   : > { %v1177_v42 = vadd.f32 1e-05, %v1176_v41 }
 0x7e8   : > { %2908 = vrsqrt.f32 %v1177_v42 }
 0x7f2   : > { %v2909_v46 = vpop.eup %2908 }
 0x7f3   : > { %v1179_v47 = vmul.f32 %v2909_v46, %v1171_v31 }
 0x7f5   : > { %v1184_v49 = vmul.f32 %v1183_v45, %v1179_v47 }
 0x7f7   : > { %v1189_v50 = vadd.f32 %v1188_v48, %v1184_v49 }
 0x7f9   : > { %v1190_v51 = vpack.c.bf16 %v1189_v50, %v1189_v50 }
 0x7fb   : > { %2669 = vmatmul.mubr.msk.bf16.vlgmr.msra.gmra.mrb[20].mxu1 %vm595_vm3, %v1190_v51 }
 0x7fc   : > { %2696 = vmatprep.mubr.msk.bf16.mxu1 %vm2997_vm1, %v2996_v1  ;;  %2693 = vmatpush3.bf16.msra.mxu1 %v2874_v19 }
 0x7fd   : > { %2694 = vmatprep.subr.bf16.mxu1 %v2996_v1 }
 0x800   : > { %2695 = vmatpush3.bf16.msra.mxu1 %v2875_v21 }
 0x801   : > { %2700 = vmatprep.subr.bf16.mxu1 %v2996_v1 }
 0x8ce   : > { %v1244_v56 = vpop.f32.mrb[20].mxu1 }
 0x8cf   : > { %v1245_v57 = vadd.f32 %v1244_v56, %v1194_v55  ;;  %v2670_v58 = vpop.f32.mrb[21].mxu1 }
 0x8d0   : > { %v1247_v59 = vpop.f32.mrb[22].mxu1 }
 0x8d1   : > { %v1250_v60 = vmax.f32 %v1245_v57, 0.0  ;;  %v2671_v61 = vpop.f32.mrb[23].mxu1 }
 0x8d3   : > { %v1251_v62 = vpack.c.bf16 %v1250_v60, %v1250_v60 }
 0x8d5   : > { %2689 = vmatmul.mubr.bf16.vlgmr.msra.gmra.mrb[24].mxu0 %v1251_v62 }
 0x8d6   : > { %2720 = vmatprep.mubr.msk.bf16.mxu0 %vm2997_vm1, %v2996_v1 }
 0x9a8   : > { %v1338_v2 = vpop.f32.mrb[24].mxu0 }
 0x9a9   : > { %v1339_v3 = vadd.f32 %v1338_v2, %v1255_v0  ;;  %v2690_v4 = vpop.f32.mrb[25].mxu0 }
 0x9aa   : > { %v1341_v5 = vpop.f32.mrb[26].mxu0 }
 0x9ab   : > { %v2691_v6 = vpop.f32.mrb[27].mxu0  ;;  %v1344_v7 = vadd.f32 %v1339_v3, %v1189_v50 }
 0x9ad   : > { %v1345_v11 = vsel %vm595_vm3, %v1344_v7, 0.0 }
 0x9ae   : > { %1346 = vadd.xlane.f32.xlu0 %v1345_v11 }
 0xa3b   : > { %v1347_v12 = vpop.xlane.xlu0 %1346 }
 0xa3c   : > { %v1348_v13 = vmul.f32 0.03125, %v1347_v12 }
 0xa3e   : > { %v1349_v14 = vsub.f32 %v1344_v7, %v1348_v13 }
 0xa40   : > { %v1350_v15 = vmul.f32 %v1349_v14, %v1349_v14 }
 0xa42   : > { %v1351_v16 = vsel %vm595_vm3, %v1350_v15, 0.0 }
 0xa43   : > { %1352 = vadd.xlane.f32.xlu0 %v1351_v16 }
 0xad0   : > { %v1353_v22 = vpop.xlane.xlu0 %1352 }
 0xad1   : > { %v1354_v23 = vmul.f32 0.03125, %v1353_v22 }
 0xad3   : > { %v1355_v24 = vadd.f32 1e-05, %v1354_v23 }
 0xad5   : > { %2910 = vrsqrt.f32 %v1355_v24 }
 0xadf   : > { %v2911_v29 = vpop.eup %2910 }
 0xae0   : > { %v1357_v31 = vmul.f32 %v2911_v29, %v1349_v14 }
 0xae2   : > { %v1362_v32 = vmul.f32 %v1361_v28, %v1357_v31 }
 0xae4   : > { %v3371_v33 = vadd.f32 %v1366_v30, %v1362_v32 }
 0xae6   : > { %v1396_v34 = vpack.c.bf16 %v3371_v33, %v3371_v33 }
 0xae8   : > { %2697 = vmatmul.mubr.msk.bf16.vlgmr.msra.gmra.mrb[24].mxu1 %vm595_vm3, %v1396_v34 }
 0xae9   : > { %2702 = vmatprep.mubr.msk.bf16.mxu1 %vm2997_vm1, %v2996_v1 }
 0xbbb   : > { %v1450_v17 = vpop.f32.mrb[24].mxu1 }
 0xbbc   : > { %v1451_v35 = vadd.f32 %v1450_v17, %v1400_v10  ;;  %v2698_v36 = vpop.f32.mrb[25].mxu1 }
 0xbbd   : > { %v1453_v26 = vpop.f32.mrb[26].mxu1 }
 0xbbe   : > { %v3381_v37 = vpack.c.bf16 %v1451_v35, %v1451_v35  ;;  %v2699_v38 = vpop.f32.mrb[27].mxu1 }
 0xbc0   : > { %1458 = vrot.lane.b32.xlu1 %v3381_v37, %s3656_s4  ;;  %s3664_s4 = smov 56  }
 0xbc4   : > { %1570 = vrot.lane.b32.xlu1 %v3381_v37, %s3657_s27  ;;  %s3665_s27 = smov 40  }
 0xbc8   : > { %1568 = vrot.lane.b32.xlu1 %v3381_v37, %s3658_s26  ;;  %s3666_s26 = smov 48  }
 0xbcc   : > { %1682 = vrot.lane.b32.xlu1 %v3381_v37, %s3659_s30  ;;  %s2513_s30 = sshll.u32 %s3114_s22, 4 }
 0xbd0   : > { %1680 = vrot.lane.b32.xlu1 %v3381_v37, %s3660_s17 }
 0xbd4   : > { %1792 = vrot.lane.b32.xlu1 %v3381_v37, %s3661_s25 }
 0xc32   : > { %v1459_v20 = vpop.permute.xlu1 %1458 }
 0xc33   : > { %v1464_v39 = vsel %vm643_vm4, %v1459_v20, 0 }
 0xc34   : > { %2701 = vmatpush3.bf16.xpose.msra.mxu1 %v1464_v39 }
 0xc35   : > { %2706 = vmatprep.subr.bf16.mxu1 %v2996_v1 }
 0xc36   : > { %v1571_v57 = vpop.permute.xlu1 %1570 }
 0xc37   : > { %v1576_v62 = vsel %vm643_vm4, %v1571_v57, 0 }
 0xc3a   : > { %v1569_v61 = vpop.permute.xlu1 %1568 }
 0xc3b   : > { %2703 = vmatmul.mubr.msk.bf16.vlgmr.msra.gmra.mrb[28].mxu1 %vm643_vm4, %v3381_v37 }
 0xc3c   : > { %2708 = vmatprep.mubr.msk.bf16.mxu1 %vm2997_vm1, %v2996_v1 }
 0xc3e   : > { %v1683_v0 = vpop.permute.xlu1 %1682 }
 0xc3f   : > { %v1688_v2 = vsel %vm643_vm4, %v1683_v0, 0 }
 0xc42   : > { %v1681_v4 = vpop.permute.xlu1 %1680 }
 0xc46   : > { %v1793_v6 = vpop.permute.xlu1 %1792 }
 0xd0e   : > { %v1500_v40 = vpop.f32.mrb[28].mxu1 }
 0xd0f   : > { %v1506_v41 = vmul.f32 0.35355338, %v1500_v40  ;;  %v2704_v42 = vpop.f32.mrb[29].mxu1 }
 0xd10   : > { %v1503_v45 = vpop.f32.mrb[30].mxu1 }
 0xd11   : > { %v2705_v46 = vpop.f32.mrb[31].mxu1  ;;  %v1507_v47 = vsel %vm643_vm4, %v1506_v41, -inf }
 0xd12   : > { %1508 = vmax.xlane.f32.xlu0 %v1507_v47 }
 0xd9f   : > { %v1509_v48 = vpop.xlane.xlu0 %1508 }
 0xda0   : > { %v1510_v49 = vsub.f32 %v1506_v41, %v1509_v48 }
 0xda2   : > { %v1511_v50 = vmul.f32 1.442695, %v1510_v49 }
 0xda4   : > { %2912 = vpow2.f32 %v1511_v50 }
 0xdae   : > { %v2913_v51 = vpop.eup %2912 }
 0xdaf   : > { %v1513_v52 = vsel %vm643_vm4, %v2913_v51, 0.0 }
 0xdb0   : > { %1514 = vadd.xlane.f32.xlu0 %v1513_v52 }
 0xdc6   : > { %1519 = vrot.lane.b32.xlu0 %v3381_v37, %s3662_s16  ;;  %s2938_s16 = scalar_lea.vmem %s2937_s1, 32 }
 0xdca   : > { %1794 = vrot.lane.b32.xlu0 %v3381_v37, %s3663_s23  ;;  %s3667_s23 = smov 8  }
 0xe3d   : > { %v1515_v53 = vpop.xlane.xlu0 %1514 }
 0xe3e   : > { %2914 = vrcp.f32 %v1515_v53 }
 0xe41   : > { %v1520_v55 = vpop.permute.xlu0 %1519 }
 0xe42   : > { %v1525_v56 = vsel %vm708_vm5, %v1520_v55, 0 }
 0xe43   : > { %2707 = vmatpush3.bf16.msra.mxu1 %v1525_v56 }
 0xe44   : > { %2712 = vmatprep.subr.bf16.mxu1 %v2996_v1 }
 0xe45   : > { %v1795_v3 = vpop.permute.xlu0 %1794 }
 0xe46   : > { %v1800_v5 = vsel %vm643_vm4, %v1795_v3, 0 }
 0xe48   : > { %v2915_v58 = vpop.eup %2914 }
 0xe49   : > { %v1517_v59 = vmul.f32 %v2915_v58, %v2913_v51 }
 0xe4b   : > { %v1518_v60 = vpack.c.bf16 %v1517_v59, %v1517_v59 }
 0xe4d   : > { %2709 = vmatmul.mubr.msk.bf16.vlgmr.msra.gmra.mrb[32].mxu1 %vm643_vm4, %v1518_v60 }
 0xe4e   : > { %2713 = vmatpush3.bf16.xpose.msra.mxu1 %v1576_v62  ;;  %2714 = vmatprep.mubr.msk.bf16.mxu1 %vm2997_vm1, %v2996_v1 }
 0xe4f   : > { %2724 = vmatprep.subr.bf16.mxu1 %v2996_v1 }
 0xe55   : > { %2715 = vmatmul.mubr.msk.bf16.vlgmr.msra.gmra.mrb[36].mxu1 %vm643_vm4, %v1569_v61 }
 0xe56   : > { %2725 = vmatpush3.bf16.xpose.msra.mxu1 %v1688_v2  ;;  %2726 = vmatprep.mubr.msk.bf16.mxu1 %vm2997_vm1, %v2996_v1 }
 0xe57   : > { %2736 = vmatprep.subr.bf16.mxu1 %v2996_v1 }
 0xe5d   : > { %2727 = vmatmul.mubr.msk.bf16.vlgmr.msra.gmra.mrb[40].mxu1 %vm643_vm4, %v1681_v4 }
 0xe5e   : > { %2737 = vmatpush3.bf16.xpose.msra.mxu1 %v1800_v5  ;;  %2738 = vmatprep.mubr.msk.bf16.mxu1 %vm2997_vm1, %v2996_v1 }
 0xe5f   : > { %2748 = vmatprep.subr.bf16.mxu1 %v2996_v1 }
 0xe65   : > { %2739 = vmatmul.mubr.msk.bf16.vlgmr.msra.gmra.mrb[44].mxu1 %vm643_vm4, %v1793_v6 }
 0xe66   : > { %2752 = vmatprep.mubr.msk.bf16.mxu1 %vm2997_vm1, %v2996_v1 }
 0xf20   : > { %v3427_v7 = vpop.f32.mrb[32].mxu1 }
 0xf21   : > { %v2710_v11 = vpop.f32.mrb[33].mxu1 }
 0xf22   : > { %v1564_v12 = vpop.f32.mrb[34].mxu1 }
 0xf23   : > { %v2711_v13 = vpop.f32.mrb[35].mxu1 }
 0xf24   : > { %v2876_v13 = vld [vmem:[%s3627_s10] sm:$0xff]  }
 0xf25   : > { %2749 = vmatpush3.bf16.msra.mxu1 %v2876_v13  ;;  %v2886_v13 = vld [vmem:[%s3629_s12 + $0x30] sm:$0xff]  }
 0xf26   : > { %2750 = vmatprep.subr.bf16.mxu1 %v2996_v1 }
 0xf28   : > { %v1612_v14 = vpop.f32.mrb[36].mxu1 }
 0xf29   : > { %v1618_v15 = vmul.f32 0.35355338, %v1612_v14  ;;  %v2716_v16 = vpop.f32.mrb[37].mxu1 }
 0xf2a   : > { %v1615_v19 = vpop.f32.mrb[38].mxu1 }
 0xf2b   : > { %v2717_v21 = vpop.f32.mrb[39].mxu1  ;;  %v1619_v22 = vsel %vm643_vm4, %v1618_v15, -inf  ;;  %v2877_v19 = vld [vmem:[%s3627_s10 + $0x8] sm:$0xff]  }
 0xf2c   : > { %1620 = vmax.xlane.f32.xlu0 %v1619_v22  ;;  %2751 = vmatpush3.bf16.msra.mxu1 %v2877_v19 }
 0xf2d   : > { %2764 = vmatprep.subr.bf16.mxu1 %v2996_v1 }
 0xf30   : > { %v1724_v23 = vpop.f32.mrb[40].mxu1 }
 0xf31   : > { %v1730_v24 = vmul.f32 0.35355338, %v1724_v23  ;;  %v2728_v28 = vpop.f32.mrb[41].mxu1 }
 0xf32   : > { %v1727_v29 = vpop.f32.mrb[42].mxu1 }
 0xf33   : > { %v2729_v30 = vpop.f32.mrb[43].mxu1  ;;  %v1731_v31 = vsel %vm643_vm4, %v1730_v24, -inf }
 0xf34   : > { %1732 = vmax.xlane.f32.xlu1 %v1731_v31 }
 0xf38   : > { %v1836_v32 = vpop.f32.mrb[44].mxu1 }
 0xf39   : > { %v1842_v34 = vmul.f32 0.35355338, %v1836_v32  ;;  %v2740_v10 = vpop.f32.mrb[45].mxu1 }
 0xf3a   : > { %v1839_v17 = vpop.f32.mrb[46].mxu1 }
 0xf3b   : > { %v2741_v35 = vpop.f32.mrb[47].mxu1  ;;  %v1843_v36 = vsel %vm643_vm4, %v1842_v34, -inf }
 0xf3c   : > { %1844 = vmax.xlane.f32.xlu0 %v1843_v36  ;;  %v1567_v36 = vpack.c.bf16 %v3427_v7, %v3427_v7 }
 0xf45   : > { %1631 = vrot.lane.b32.xlu1 %v3381_v37, %s3664_s4  ;;  %s3668_s4 = smov 16  }
 0xfb9   : > { %v1621_v26 = vpop.xlane.xlu0 %1620 }
 0xfba   : > { %v1622_v38 = vsub.f32 %v1618_v15, %v1621_v26 }
 0xfbc   : > { %v1623_v20 = vmul.f32 1.442695, %v1622_v38 }
 0xfbe   : > { %2916 = vpow2.f32 %v1623_v20 }
 0xfc1   : > { %v1733_v39 = vpop.xlane.xlu1 %1732 }
 0xfc2   : > { %v1734_v40 = vsub.f32 %v1730_v24, %v1733_v39 }
 0xfc4   : > { %v1735_v41 = vmul.f32 1.442695, %v1734_v40 }
 0xfc5   : > { %v1632_v42 = vpop.permute.xlu1 %1631 }
 0xfc6   : > { %2918 = vpow2.f32 %v1735_v41  ;;  %v1637_v45 = vsel %vm708_vm5, %v1632_v42, 0  ;;  %v1923_v41 = vrot.slane %v3364_v27, %v1109_v18  ;;  %v2878_v18 = vld [vmem:[%s3628_s11] sm:$0xff]  }
 0xfc7   : > { %2719 = vmatpush3.bf16.msra.mxu0 %v1637_v45 }
 0xfc8   : > { %v2917_v46 = vpop.eup %2916  ;;  %2730 = vmatprep.subr.bf16.mxu0 %v2996_v1 }
 0xfc9   : > { %v1845_v47 = vpop.xlane.xlu0 %1844  ;;  %v1625_v48 = vsel %vm643_vm4, %v2917_v46, 0.0 }
 0xfca   : > { %v1846_v49 = vsub.f32 %v1842_v34, %v1845_v47  ;;  %1626 = vadd.xlane.f32.xlu0 %v1625_v48 }
 0xfcc   : > { %v1847_v50 = vmul.f32 1.442695, %v1846_v49 }
 0xfce   : > { %2920 = vpow2.f32 %v1847_v50 }
 0xfd0   : > { %v2919_v51 = vpop.eup %2918 }
 0xfd1   : > { %v1737_v52 = vsel %vm643_vm4, %v2919_v51, 0.0 }
 0xfd2   : > { %1738 = vadd.xlane.f32.xlu1 %v1737_v52 }
 0xfd8   : > { %v2921_v53 = vpop.eup %2920 }
 0xfd9   : > { %v1849_v55 = vsel %vm643_vm4, %v2921_v53, 0.0 }
 0xfda   : > { %1850 = vadd.xlane.f32.xlu0 %v1849_v55 }
 0xfe3   : > { %1855 = vrot.lane.b32.xlu1 %v3381_v37, %s3665_s27  ;;  %s3669_s27 = smov 24  }
 0xff0   : > { %1743 = vrot.lane.b32.xlu0 %v3381_v37, %s3666_s26  ;;  %s483_s26 = sand.u32 1, %s2986_s19  }
 0xff1   : > { %s484_s17 = scalar_lea.vmem [#allocation2], %s483_s26  ;;  %s2383_s22 = scalar_lea.sflag [#allocation3], %s483_s26 }
 0xff2   : > { %s2395_s25 = sshll.u32 %s484_s17, 4  ;;  %s3577_s25 = int_to_ptr.vmem [resolvable:$true] %s2395_s25 }
 0xff3   : > { %p2939_p0 = scmp.lt.s32.totalorder %s3577_s25, %s2937_s1 }
0x1057   : > { %v1627_v56 = vpop.xlane.xlu0 %1626 }
0x1058   : > { %2922 = vrcp.f32 %v1627_v56  ;;  %v2879_v56 = vld [vmem:[%s3628_s11 + $0x8] sm:$0xff]  }
0x105f   : > { %v1739_v57 = vpop.xlane.xlu1 %1738 }
0x1060   : > { %2924 = vrcp.f32 %v1739_v57  ;;  %v2881_v57 = vld [vmem:[%s3629_s12 + $0x8] sm:$0xff]  }
0x1062   : > { %v2923_v58 = vpop.eup %2922 }
0x1063   : > { %v1629_v59 = vmul.f32 %v2923_v58, %v2917_v46  ;;  %v1856_v37 = vpop.permute.xlu1 %1855  ;;  %v2882_v58 = vld [vmem:[%s3629_s12 + $0x10] sm:$0xff]  }
0x1064   : > { %v1861_v5 = vsel %vm708_vm5, %v1856_v37, 0 }
0x1065   : > { %v1630_v60 = vpack.c.bf16 %v1629_v59, %v1629_v59  ;;  %v2883_v59 = vld [vmem:[%s3629_s12 + $0x18] sm:$0xff]  }
0x1067   : > { %2721 = vmatmul.mubr.msk.bf16.vlgmr.msra.gmra.mrb[28].mxu0 %vm643_vm4, %v1630_v60  ;;  %v1851_v61 = vpop.xlane.xlu0 %1850  ;;  %v2884_v60 = vld [vmem:[%s3629_s12 + $0x20] sm:$0xff]  }
0x1068   : > { %2926 = vrcp.f32 %v1851_v61  ;;  %2732 = vmatprep.mubr.msk.bf16.mxu0 %vm2997_vm1, %v2996_v1  ;;  %v2885_v61 = vld [vmem:[%s3629_s12 + $0x28] sm:$0xff]  }
0x106a   : > { %v2925_v62 = vpop.eup %2924 }
0x106b   : > { %v1741_v0 = vmul.f32 %v2925_v62, %v2919_v51  ;;  %v1744_v2 = vpop.permute.xlu0 %1743 }
0x106c   : > { %v1749_v3 = vsel %vm708_vm5, %v1744_v2, 0 }
0x106d   : > { %2731 = vmatpush3.bf16.msra.mxu0 %v1749_v3  ;;  %v1742_v4 = vpack.c.bf16 %v1741_v0, %v1741_v0  ;;  %v1995_v3 = vrot.slane %v3364_v27, %v1182_v43  ;;  %v2887_v43 = vld [vmem:[%s3629_s12 + $0x38] sm:$0xff]  }
0x106e   : > { %2742 = vmatprep.subr.bf16.mxu0 %v2996_v1 }
0x1070   : > { %2733 = vmatmul.mubr.msk.bf16.vlgmr.msra.gmra.mrb[32].mxu0 %vm643_vm4, %v1742_v4 }
0x1071   : > { %2743 = vmatpush3.bf16.msra.mxu0 %v1861_v5  ;;  %2744 = vmatprep.mubr.msk.bf16.mxu0 %vm2997_vm1, %v2996_v1  ;;  %v2000_v5 = vrot.slane %v3364_v27, %v1187_v44  ;;  %v2006_v44 = vrot.slane %v3364_v27, %v1193_v54 }
0x1072   : > { %v2927_v6 = vpop.eup %2926  ;;  %2756 = vmatprep.subr.bf16.mxu0 %v2996_v1 }
0x1073   : > { %v1853_v11 = vmul.f32 %v2927_v6, %v2921_v53 }
0x1075   : > { %v1854_v12 = vpack.c.bf16 %v1853_v11, %v1853_v11 }
0x1078   : > { %2745 = vmatmul.mubr.msk.bf16.vlgmr.msra.gmra.mrb[36].mxu0 %vm643_vm4, %v1854_v12 }
0x1079   : > { %2760 = vmatprep.mubr.msk.bf16.mxu0 %vm2997_vm1, %v2996_v1  ;;  %2757 = vmatpush3.bf16.msra.mxu0 %v2878_v18 }
0x107a   : > { %2758 = vmatprep.subr.bf16.mxu0 %v2996_v1 }
0x107d   : > { %2759 = vmatpush3.bf16.msra.mxu0 %v2879_v56 }
0x107e   : > { %2784 = vmatprep.subr.mxu0 %v2996_v1 }
0x113a   : > { %v1673_v14 = vpop.f32.mrb[28].mxu0 }
0x113b   : > { %v1679_v15 = vpack.c.bf16 %v1673_v14, %v1673_v14  ;;  %v2722_v16 = vpop.f32.mrb[29].mxu0 }
0x113c   : > { %v1676_v21 = vpop.f32.mrb[30].mxu0 }
0x113d   : > { %1905 = vrot.lane.b32.xlu1 %v1679_v15, %s3667_s23  ;;  %v2723_v22 = vpop.f32.mrb[31].mxu0 }
0x1143   : > { %v1785_v23 = vpop.f32.mrb[32].mxu0 }
0x1144   : > { %v1791_v24 = vpack.c.bf16 %v1785_v23, %v1785_v23  ;;  %v2734_v28 = vpop.f32.mrb[33].mxu0 }
0x1145   : > { %v1788_v29 = vpop.f32.mrb[34].mxu0 }
0x1146   : > { %1908 = vrot.lane.b32.xlu0 %v1791_v24, %s3668_s4  ;;  %v2735_v30 = vpop.f32.mrb[35].mxu0  ;;  %v2067_v24 = vrot.slane %v3364_v27, %v1254_v63  ;;  %v492_v63 = vld [vmem:[%s3620_s3 + $0x10] sm:$0x7]  ;;  %s3575_s4 = scalar_lea.hbm %s3632_s15, %s2513_s30 }
0x114b   : > { %v1897_v31 = vpop.f32.mrb[36].mxu0 }
0x114c   : > { %v1903_v32 = vpack.c.bf16 %v1897_v31, %v1897_v31  ;;  %v2746_v34 = vpop.f32.mrb[37].mxu0 }
0x114d   : > { %v1900_v10 = vpop.f32.mrb[38].mxu0 }
0x114e   : > { %1911 = vrot.lane.b32.xlu1 %v1903_v32, %s3669_s27  ;;  %v2747_v17 = vpop.f32.mrb[39].mxu0  ;;  %s2932_s27 = scalar_lea.vmem %s3577_s25, 16 }
0x114f   : > { %p2933_p11 = scmp.ne.s32.totalorder %s3577_s25, %s2932_s27  ;;  %p2940_p1 = scmp.lt.s32.totalorder %s2938_s16, %s2932_s27 }
0x1151   : > { %p2934_p12 = pnand %p2933_p11, %p3131_p5  ;;  %p2941_p2 = por %p2940_p1, %p2939_p0 }
0x1153   : > { %p2935_p13 = pneg %p2934_p12 }
0x1155   : > { %p2942_p3 = pnand %p2941_p2, %p2935_p13 }
0x11af   : > { %v1906_v35 = vpop.permute.xlu1 %1905 }
0x11b0   : > { %v1915_v38 = vsel %vm643_vm4, %v1567_v36, %v1906_v35 }
0x11b8   : > { %v1909_v26 = vpop.permute.xlu0 %1908 }
0x11b9   : > { %v1917_v20 = vsel %vm1101_vm6, %v1915_v38, %v1909_v26 }
0x11c0   : > { %v1912_v39 = vpop.permute.xlu1 %1911 }
0x11c1   : > { %v1919_v40 = vsel %vm1104_vm7, %v1917_v20, %v1912_v39 }
0x11c2   : > { %2753 = vmatmul.mubr.msk.bf16.vlgmr.msra.gmra.mrb[48].mxu1 %vm595_vm3, %v1919_v40  ;;  %v2173_v40 = vrot.slane %v3364_v27, %v1360_v25 }
0x11c3   : > { %2780 = vmatprep.mubr.msk.bf16.mxu1 %vm2997_vm1, %v2996_v1 }
0x1295   : > { %v1972_v42 = vpop.f32.mrb[48].mxu1 }
0x1296   : > { %v1973_v45 = vadd.f32 %v1972_v42, %v1923_v41  ;;  %v2754_v7 = vpop.f32.mrb[49].mxu1 }
0x1297   : > { %v1975_v46 = vpop.f32.mrb[50].mxu1 }
0x1298   : > { %v2755_v47 = vpop.f32.mrb[51].mxu1  ;;  %v1978_v48 = vadd.f32 %v1973_v45, %v3371_v33  ;;  %v2880_v33 = vld [vmem:[%s3629_s12] sm:$0xff]   ;;  %v2178_v45 = vrot.slane %v492_v63, %v3169_v9 }
0x1299   : > { %2765 = vmatpush3.bf16.msra.mxu1 %v2880_v33  ;;  %v2180_v47 = vld [vmem:[%s3619_s2] sm:$0x1] }
0x129a   : > { %v1979_v49 = vsel %vm595_vm3, %v1978_v48, 0.0  ;;  %2766 = vmatprep.subr.bf16.mxu1 %v2996_v1 }
0x129b   : > { %1980 = vadd.xlane.f32.xlu0 %v1979_v49  ;;  %v2890_v49 = vld [vmem:[%s3631_s14] sm:$0xff]  }
0x129d   : > { %2767 = vmatpush3.bf16.msra.mxu1 %v2881_v57 }
0x129e   : > { %2768 = vmatprep.subr.bf16.mxu1 %v2996_v1 }
0x12a1   : > { %2769 = vmatpush3.bf16.msra.mxu1 %v2882_v58  ;;  %v2335_v58 = vrot.slane %v492_v63, 2 }
0x12a2   : > { %2770 = vmatprep.subr.bf16.mxu1 %v2996_v1 }
0x12a5   : > { %2771 = vmatpush3.bf16.msra.mxu1 %v2883_v59 }
0x12a6   : > { %2772 = vmatprep.subr.bf16.mxu1 %v2996_v1 }
0x12a9   : > { %2773 = vmatpush3.bf16.msra.mxu1 %v2884_v60 }
0x12aa   : > { %2774 = vmatprep.subr.bf16.mxu1 %v2996_v1 }
0x12ad   : > { %2775 = vmatpush3.bf16.msra.mxu1 %v2885_v61 }
0x12ae   : > { %2776 = vmatprep.subr.bf16.mxu1 %v2996_v1 }
0x12b1   : > { %2777 = vmatpush3.bf16.msra.mxu1 %v2886_v13 }
0x12b2   : > { %2778 = vmatprep.subr.bf16.mxu1 %v2996_v1 }
0x12b5   : > { %2779 = vmatpush3.bf16.msra.mxu1 %v2887_v43 }
0x1328   : > { %v1981_v50 = vpop.xlane.xlu0 %1980 }
0x1329   : > { %v1982_v51 = vmul.f32 0.03125, %v1981_v50  ;;  %v2891_v50 = vld [vmem:[%s3631_s14 + $0x8] sm:$0xff]  }
0x132b   : > { %v1983_v52 = vsub.f32 %v1978_v48, %v1982_v51  ;;  %v2888_v48 = vld [vmem:[%s3630_s13] sm:$0xff]   ;;  %v2272_v51 = vrot.slane %v492_v63, 1 }
0x132d   : > { %v1984_v53 = vmul.f32 %v1983_v52, %v1983_v52 }
0x132f   : > { %v1985_v55 = vsel %vm595_vm3, %v1984_v53, 0.0 }
0x1330   : > { %1986 = vadd.xlane.f32.xlu1 %v1985_v55 }
0x13bd   : > { %v1987_v62 = vpop.xlane.xlu1 %1986 }
0x13be   : > { %v1988_v0 = vmul.f32 0.03125, %v1987_v62 }
0x13c0   : > { %v1989_v2 = vadd.f32 1e-05, %v1988_v0 }
0x13c2   : > { %2928 = vrsqrt.f32 %v1989_v2 }
0x13cc   : > { %v2929_v37 = vpop.eup %2928 }
0x13cd   : > { %v1991_v4 = vmul.f32 %v2929_v37, %v1983_v52 }
0x13cf   : > { %v1996_v6 = vmul.f32 %v1995_v3, %v1991_v4 }
0x13d1   : > { %v2001_v11 = vadd.f32 %v2000_v5, %v1996_v6 }
0x13d3   : > { %v2002_v12 = vpack.c.bf16 %v2001_v11, %v2001_v11 }
0x13d5   : > { %2761 = vmatmul.mubr.msk.bf16.vlgmr.msra.gmra.mrb[40].mxu0 %vm595_vm3, %v2002_v12 }
0x13d6   : > { %2786 = vmatprep.mubr.msk.f32.mxu0 %vm2997_vm1, %v2996_v1 }
0x14a8   : > { %v2056_v14 = vpop.f32.mrb[40].mxu0 }
0x14a9   : > { %v2057_v15 = vadd.f32 %v2056_v14, %v2006_v44  ;;  %v2762_v16 = vpop.f32.mrb[41].mxu0 }
0x14aa   : > { %v2059_v19 = vpop.f32.mrb[42].mxu0 }
0x14ab   : > { %v2062_v21 = vmax.f32 %v2057_v15, 0.0  ;;  %v2763_v22 = vpop.f32.mrb[43].mxu0 }
0x14ad   : > { %v2063_v23 = vpack.c.bf16 %v2062_v21, %v2062_v21 }
0x14af   : > { %2781 = vmatmul.mubr.bf16.vlgmr.msra.gmra.mrb[52].mxu1 %v2063_v23 }
0x1582   : > { %v2150_v28 = vpop.f32.mrb[52].mxu1 }
0x1583   : > { %v2151_v29 = vadd.f32 %v2150_v28, %v2067_v24  ;;  %v2782_v30 = vpop.f32.mrb[53].mxu1 }
0x1584   : > { %v2153_v31 = vpop.f32.mrb[54].mxu1 }
0x1585   : > { %v2783_v32 = vpop.f32.mrb[55].mxu1  ;;  %v2156_v34 = vadd.f32 %v2151_v29, %v2001_v11 }
0x1587   : > { %v2157_v54 = vsel %vm595_vm3, %v2156_v34, 0.0 }
0x1588   : > { %2158 = vadd.xlane.f32.xlu0 %v2157_v54 }
0x1615   : > { %v2159_v10 = vpop.xlane.xlu0 %2158 }
0x1616   : > { %v2160_v17 = vmul.f32 0.03125, %v2159_v10 }
0x1618   : > { %v2161_v35 = vsub.f32 %v2156_v34, %v2160_v17 }
0x161a   : > { %v2162_v36 = vmul.f32 %v2161_v35, %v2161_v35 }
0x161c   : > { %v2163_v26 = vsel %vm595_vm3, %v2162_v36, 0.0 }
0x161d   : > { %2164 = vadd.xlane.f32.xlu0 %v2163_v26 }
0x16aa   : > { %v2165_v38 = vpop.xlane.xlu0 %2164 }
0x16ab   : > { %v2166_v20 = vmul.f32 0.03125, %v2165_v38 }
0x16ad   : > { %v2167_v39 = vadd.f32 1e-05, %v2166_v20 }
0x16af   : > { %2930 = vrsqrt.f32 %v2167_v39 }
0x16b9   : > { %v2931_v41 = vpop.eup %2930 }
0x16ba   : > { %v2169_v42 = vmul.f32 %v2931_v41, %v2161_v35 }
0x16bc   : > { %v2174_v7 = vmul.f32 %v2173_v40, %v2169_v42 }
0x16be   : > { %v2179_v46 = vadd.f32 %v2178_v45, %v2174_v7 }
0x16c0   : > { %2785 = vmatpush3.msra.mxu0 %v2179_v46 }
0x16c1   : > { %2787 = vmatmul.mubr.msk.f32.vlgmr.msra.gmra.mrb[44].mxu0 %vm643_vm4, %v2180_v47  ;;  %2789 = vmatprep.subr.bf16.mxu0 %v2996_v1 }
0x16c2   : > { %2790 = vmatpush3.bf16.msra.mxu0 %v2888_v48  ;;  %2793 = vmatprep.mubr.msk.bf16.mxu0 %vm2997_vm1, %v2996_v1 }
0x16c3   : > { %2791 = vmatprep.subr.bf16.mxu0 %v2996_v1 }
0x16c6   : > { %2792 = vmatpush3.bf16.msra.mxu0 %v2889_v8 }
0x16c7   : > { %2797 = vmatprep.subr.bf16.mxu0 %v2996_v1 }
0x1794   : > { %v2250_v9 = vpop.f32.mrb[44].mxu0 }
0x1795   : > { %v2254_v25 = vpack.c.bf16 %v2250_v9, %v2250_v9  ;;  %v2788_v27 = vpop.f32.mrb[45].mxu0 }
0x1797   : > { %2794 = vmatmul.mubr.msk.bf16.vlgmr.msra.gmra.mrb[48].mxu0 %vm595_vm3, %v2254_v25 }
0x1798   : > { %2801 = vmatprep.mubr.msk.bf16.mxu0 %vm2997_vm1, %v2996_v1  ;;  %2798 = vmatpush3.bf16.msra.mxu0 %v2890_v49 }
0x1799   : > { %2799 = vmatprep.subr.bf16.mxu0 %v2996_v1 }
0x179c   : > { %2800 = vmatpush3.bf16.msra.mxu0 %v2891_v50 }
0x186a   : > { %v2311_v52 = vpop.f32.mrb[48].mxu0 }
0x186b   : > { %v2312_v53 = vadd.f32 %v2311_v52, %v2272_v51  ;;  %v2795_v55 = vpop.f32.mrb[49].mxu0 }
0x186c   : > { %v2314_v18 = vpop.f32.mrb[50].mxu0 }
0x186d   : > { %v2317_v56 = vmax.f32 %v2312_v53, 0.0  ;;  %v2796_v33 = vpop.f32.mrb[51].mxu0 }
0x186f   : > { %v2318_v57 = vpack.c.bf16 %v2317_v56, %v2317_v56 }
0x1871   : > { %2802 = vmatmul.mubr.msk.bf16.vlgmr.msra.gmra.mrb[52].mxu0 %vm595_vm3, %v2318_v57 }
0x1944   : > { %v2374_v1 = vpop.f32.mrb[52].mxu0 }
0x1945   : > { %v2375_v59 = vadd.f32 %v2374_v1, %v2335_v58  ;;  %v2803_v60 = vpop.f32.mrb[53].mxu0 }
0x1946   : > { %v2377_v61 = vpop.f32.mrb[54].mxu0 }
0x1947   : > { %v2804_v62 = vpop.f32.mrb[55].mxu0  ;;  %2381 = vst.msk [vmem:[%s484_s17] sm:$0x1] %vm2380_vm8, %v2375_v59 }
0x1948   : > { %2945 = shalt.err (!%p2942_p3)
}
0x1949   : > { %s2946_s26 = scalar_lea.hbm %s3575_s4, 16  ;;  %s2950_s0 = scalar_lea.hbm %s3632_s15, 32 }
0x194a   : > { %p2947_p4 = scmp.ne.s32.totalorder %s3575_s4, %s2946_s26  ;;  %p2951_p9 = scmp.lt.u32.totalorder %s3575_s4, %s3632_s15 }
0x194b   : > { %p2952_p10 = scmp.lt.u32.totalorder %s2950_s0, %s2946_s26  ;;  %p2954_p12 = scmp.lt.u32.totalorder %s2946_s26, %s3575_s4 }
0x194c   : > { %p2948_p7 = pnand %p2947_p4, %p3131_p5 }
0x194d   : > { %p2953_p11 = por %p2952_p10, %p2951_p9 }
0x194e   : > { %p2949_p8 = pneg %p2948_p7 }
0x194f   : > { %p2955_p13 = por %p2954_p12, %p2953_p11 }
0x1951   : > { %p2956_p0 = pnand %p2955_p13, %p2949_p8 }
0x1953   : > { %2959 = shalt.err (!%p2956_p0)
}
0x1954   : > { %2805 = dma.vmem_to_hbm [thread:$0]  (%p3131_p5), %s3577_s25, 16, %s3575_s4, %s2383_s22  }
0x1955 PF: > { %p2811_p1 = scmp.ge.s32.totalorder %s2994_s21, 2  ;;  %s2407_s27 = sand.u32 1, %s2982_s18  }
0x1956   : > { %s2408_s16 = scalar_lea.sflag [#allocation3], %s2407_s27 }
0x1957   : > { %p2808_p2 = pnand %p2811_p1, %p3135_p6 }
0x1959   : > { %2977 = dma.done.wait (!%p2808_p2), %s2408_s16, 16  }
0x195a   : > { %2979 = vsyncadd (!%p2808_p2), %s2408_s16, 4294967280  ;;  %s3670_s26 = sld [smem:[#allocation5_spill]]  ;;  %p25_p3 = scmp.ge.s32.totalorder %s3118_s24, 4  }
0x195b   : > { %s3671_s18 = smov %s2986_s19  ;;  %s3672_s19 = smov %s2990_s20 }
0x195c   : > { %s3674_s21 = smov %s3118_s24  ;;  %27 = sbr.rel (!%p25_p3) target bundleno = 7 (0x7), region = 115 }
0x1960   : > { %s3673_s20 = smov %s3670_s26 }
0x1963   :  { %2412 = vsyncpa [#allocation3], 1 }
0x1964   :  { %2414 = vsyncpa [#allocation3 + $0x1], 1 }

// kernel: tpu_custom_call.1
= control target key start
LH: loop header
LB: loop body
LE: loop exit
PB: predicated region body
PF: predicated region fallthrough
CT: control target
= control target key end

     0   :  { %s3617_s0 = inlined_call_operand.vmem [shape: f32[2,8,4], index: 0, kind: input, shape index: {}]   ;;  %s3618_s1 = inlined_call_operand.vmem [shape: f32[8,32], index: 1, kind: input, shape index: {}]   ;;  %s3619_s2 = inlined_call_operand.vmem [shape: f32[1,8], index: 2, kind: input, shape index: {}]   ;;  %s3620_s3 = inlined_call_operand.vmem [shape: f32[19,128], index: 3, kind: input, shape index: {}]   ;;  %s3621_s4 = inlined_call_operand.vmem [shape: bf16[4,32], index: 4, kind: input, shape index: {}]   ;;  %s3622_s5 = inlined_call_operand.vmem [shape: bf16[32,96], index: 5, kind: input, shape index: {}]   ;;  %s3623_s6 = inlined_call_operand.vmem [shape: bf16[32,32], index: 6, kind: input, shape index: {}]   ;;  %s3624_s7 = inlined_call_operand.vmem [shape: bf16[32,128], index: 7, kind: input, shape index: {}]   ;;  %s3625_s8 = inlined_call_operand.vmem [shape: bf16[128,32], index: 8, kind: input, shape index: {}]   ;;  %s3626_s9 = inlined_call_operand.vmem [shape: bf16[32,96], index: 9, kind: input, shape index: {}]   ;;  %s3627_s10 = inlined_call_operand.vmem [shape: bf16[32,32], index: 10, kind: input, shape index: {}]   ;;  %s3628_s11 = inlined_call_operand.vmem [shape: bf16[32,128], index: 11, kind: input, shape index: {}]   ;;  %s3629_s12 = inlined_call_operand.vmem [shape: bf16[128,32], index: 12, kind: input, shape index: {}]   ;;  %s3630_s13 = inlined_call_operand.vmem [shape: bf16[32,32], index: 13, kind: input, shape index: {}]   ;;  %s3631_s14 = inlined_call_operand.vmem [shape: bf16[32,3], index: 14, kind: input, shape index: {}]   ;;  %s3632_s15 = inlined_call_operand.hbm [shape: f32[2,1,3], index: 15, kind: output, shape index: {}]  }
   0x1   :  { %3647 = sst [smem:[#allocation6_spill]] %s3617_s0 }
   0x2   :  { %3648 = sst [smem:[#allocation7_spill]] %s3618_s1 }
   0x3   :  { %3649 = sst [smem:[#allocation8_spill]] %s3621_s4 }
   0x4   :  { %20 = vsyncpa [#allocation3], 0 }
   0x5   :  { %22 = vsyncpa [#allocation3 + $0x1], 0  ;;  %s3093_s18 = smov 0   ;;  %s3095_s19 = smov 0  }
   0x6   :  { %s3097_s20 = smov 0   ;;  %s3099_s21 = smov 0  }
   0x7 LB: > { %s3114_s22 = sadd.s32 4294967295, %s2994_s21   ;;  %s2450_s23 = sadd.s32 4294967294, %s2994_s21   ;;  %s2994_s21 = sphi %s3099_s21, %s3674_s21   ;;  %s2990_s20 = sphi %s3097_s20, %s3673_s20   ;;  %s2986_s19 = sphi %s3095_s19, %s3672_s19   ;;  %s2982_s18 = sphi %s3093_s18, %s3671_s18  }
   0x8   : > { %s3118_s24 = sadd.s32 1, %s2994_s21   ;;  %s355_s25 = sadd.s32 1, %s2990_s20 }
   0x9   : > { %s352_s26 = ssub.s32 %s2994_s21, %s3118_s24  ;;  %p365_p0 = scmp.ne.s32.totalorder %s2990_s20, %s2986_s19 }
   0xa   : > { %p353_p1 = scmp.eq.s32.totalorder %s352_s26, 0  ;;  %p366_p2 = scmp.eq.s32.totalorder %s3114_s22, 1 }
   0xb   : > { %p371_p3 = scmp.ne.s32.totalorder %s2986_s19, %s2982_s18  ;;  %p372_p4 = scmp.eq.s32.totalorder %s2450_s23, 1 }
   0xc   : > { %s3129_s27 = scalar_select %p353_p1, %s2990_s20, %s355_s25  }
   0xd   : > { %p3131_p5 = por %p366_p2, %p365_p0  ;;  %p3135_p6 = por %p372_p4, %p371_p3 }
   0xe   : > { %3650 = sst [smem:[#allocation5_spill]] %s3129_s27  ;;  %p2453_p7 = scmp.ge.s32.totalorder %s2994_s21, 1 }
   0xf   : > { %p439_p8 = scmp.lt.s32.totalorder %s2994_s21, 3 }
  0x11   : > { %p440_p9 = pnand %p2453_p7, %p439_p8 }
  0x12   : > { %s3653_s4 = sld [smem:[#allocation8_spill]] (!%p440_p9)  ;;  %vm504_vm0 = vcmask (!%p440_p9), 1041408   ;;  %p485_p10 = scmp.lt.s32.totalorder (!%p440_p9), %s3114_s22, 1  ;;  %v2996_v1 = vmov (!%p440_p9), 0.0   ;;  %vm2997_vm1 = vmmov (!%p440_p9), 0   ;;  %vm500_vm2 = vcmask (!%p440_p9), 31744  }
  0x13   : > { %443 = sbr.rel (%p440_p9) target bundleno = 6485 (0x1955), region = 80  ;;  %2594 = vmatprep.subr.bf16.mxu0 (!%p440_p9), %v2996_v1  ;;  %2596 = vmatprep.mubr.msk.bf16.mxu0 (!%p440_p9), %vm2997_vm1, %v2996_v1  ;;  %s3654_s0 = sld [smem:[#allocation6_spill]] (!%p440_p9)  ;;  %v2860_v5 = vld [vmem:[%s3622_s5] sm:$0xff] (!%p440_p9)   ;;  %v2861_v6 = vld [vmem:[%s3622_s5 + $0x8] sm:$0xff] (!%p440_p9)   ;;  %v496_v7 = vlaneseq (!%p440_p9)  ;;  %vm595_vm3 = vcmask (!%p440_p9), 261120   ;;  %vm643_vm4 = vcmask (!%p440_p9), 64512  }
  0x14   : > { %2600 = vmatprep.subr.bf16.mxu1 (!%p440_p9), %v2996_v1  ;;  %2604 = vmatprep.mubr.msk.bf16.mxu1 (!%p440_p9), %vm2997_vm1, %v2996_v1  ;;  %v3174_v10 = vld [vmem:[%s3620_s3] sm:$0xff] (!%p440_p9)  ;;  %s3655_s1 = sld [smem:[#allocation7_spill]] (!%p440_p9)  ;;  %s3644_s26 = smov (!%p440_p9), 120   ;;  %vm708_vm5 = vcmask (!%p440_p9), 1043456   ;;  %vm1101_vm6 = vcmask (!%p440_p9), 130048   ;;  %vm1104_vm7 = vcmask (!%p440_p9), 195584  }
  0x15   : > { %2601 = vmatpush3.bf16.msra.mxu1 (!%p440_p9), %v2860_v5  ;;  %v3166_v8 = vshrl.u32 (!%p440_p9), %v496_v7, 7  ;;  %s3640_s16 = smov (!%p440_p9), 80   ;;  %s3635_s25 = smov (!%p440_p9), 112   ;;  %vm2380_vm8 = vcmask (!%p440_p9), 16384  }
  0x16   : > { %2602 = vmatprep.subr.bf16.mxu1 (!%p440_p9), %v2996_v1  ;;  %s3638_s27 = smov (!%p440_p9), 56  }
  0x17   : > { %v3169_v9 = vsub.s32 (!%p440_p9), 0, %v3166_v8  ;;  %v581_v20 = vsub.s32 (!%p440_p9), 1, %v3166_v8 }
  0x18   : > { %v495_v0 = vld [vmem:[%s3653_s4] sm:$0x3] (!%p440_p9)  ;;  %s3634_s4 = smov (!%p440_p9), 104  }
  0x19   : > { %v506_v2 = vsel (!%p440_p9), %vm504_vm0, %v495_v0, 0  ;;  %2603 = vmatpush3.bf16.msra.mxu1 (!%p440_p9), %v2861_v6  ;;  %v499_v11 = vrot.slane (!%p440_p9), %v3174_v10, %v3169_v9  ;;  %v582_v21 = vrot.slane (!%p440_p9), %v3174_v10, %v581_v20 }
  0x1a   : > { %2595 = vmatpush3.bf16.msra.mxu0 %v506_v2  ;;  %s486_s17 = scalar_select %p485_p10, %s3114_s22, 1  ;;  %2614 = vmatprep.subr.bf16.mxu1 %v2996_v1  ;;  %v548_v13 = vld [vmem:[%s3655_s1] sm:$0xff] }
  0x1b   : > { %2608 = vmatprep.subr.bf16.mxu0 %v2996_v1 }
  0x1c   : > { %s2454_s23 = sshll.u32 %s486_s17, 3  ;;  %s3645_s17 = smov 88  }
  0x1d   : > { %s488_s30 = scalar_lea.vmem %s3654_s0, %s2454_s23  ;;  %s3633_s23 = smov 72  }
  0x1e   : > { %v493_v3 = vld [vmem:[%s488_s30] sm:$0xff]  ;;  %s3646_s30 = smov 96   ;;  %s3012_s0 = smov [#allocation2]  }
  0x1f   : > { %v494_v4 = vpack.c.bf16 %v493_v3, %v493_v3  ;;  %s2936_s1 = sshll.u32 %s3012_s0, 4  ;;  %s2937_s1 = int_to_ptr.vmem [resolvable:$false] %s2936_s1 }
  0x21   : > { %2597 = vmatmul.mubr.msk.bf16.vlgmr.msra.gmra.mrb[0].mxu0 %vm500_vm2, %v494_v4 }
  0x22   : > { %2610 = vmatprep.mubr.msk.bf16.mxu0 %vm2997_vm1, %v2996_v1 }
  0xf4   : > { %v542_v12 = vpop.f32.mrb[0].mxu0 }
  0xf5   : > { %v543_v14 = vadd.f32 %v542_v12, %v499_v11  ;;  %v2598_v15 = vpop.f32.mrb[1].mxu0 }
  0xf6   : > { %v545_v16 = vpop.f32.mrb[2].mxu0 }
  0xf7   : > { %v3181_v17 = vadd.f32 %v548_v13, %v543_v14  ;;  %v2599_v18 = vpop.f32.mrb[3].mxu0 }
  0xf9   : > { %v578_v19 = vpack.c.bf16 %v3181_v17, %v3181_v17 }
  0xfb   : > { %2605 = vmatmul.mubr.msk.bf16.vlgmr.msra.gmra.mrb[0].mxu1 %vm595_vm3, %v578_v19 }
  0xfc   : > { %2616 = vmatprep.mubr.msk.bf16.mxu1 %vm2997_vm1, %v2996_v1 }
 0x1ce   : > { %v633_v22 = vpop.f32.mrb[0].mxu1 }
 0x1cf   : > { %v634_v23 = vadd.f32 %v633_v22, %v582_v21  ;;  %v2606_v24 = vpop.f32.mrb[1].mxu1 }
 0x1d0   : > { %v636_v25 = vpop.f32.mrb[2].mxu1 }
 0x1d1   : > { %v3192_v26 = vpack.c.bf16 %v634_v23, %v634_v23  ;;  %v2607_v27 = vpop.f32.mrb[3].mxu1 }
 0x1d3   : > { %753 = vrot.lane.b32.xlu1 %v3192_v26, %s3644_s26  ;;  %641 = vrot.lane.b32.xlu0 %v3192_v26, %s3646_s30  ;;  %s3658_s26 = smov 120   ;;  %s3659_s30 = smov 80  }
 0x1d7   : > { %867 = vrot.lane.b32.xlu1 %v3192_v26, %s3640_s16  ;;  %755 = vrot.lane.b32.xlu0 %v3192_v26, %s3645_s17  ;;  %s3660_s17 = smov 112   ;;  %s3662_s16 = smov 64  }
 0x1db   : > { %979 = vrot.lane.b32.xlu1 %v3192_v26, %s3633_s23  ;;  %865 = vrot.lane.b32.xlu0 %v3192_v26, %s3635_s25  ;;  %s3639_s23 = smov 64   ;;  %s3636_s25 = smov 48  }
 0x1df   : > { %977 = vrot.lane.b32.xlu0 %v3192_v26, %s3634_s4  ;;  %s3637_s4 = smov 40  }
 0x245   : > { %v642_v28 = vpop.permute.xlu0 %641  ;;  %v754_v31 = vpop.permute.xlu1 %753 }
 0x246   : > { %v648_v29 = vsel %vm643_vm4, %v642_v28, 0 }
 0x247   : > { %2609 = vmatpush3.bf16.xpose.msra.mxu0 %v648_v29 }
 0x248   : > { %2620 = vmatprep.subr.bf16.mxu0 %v2996_v1 }
 0x249   : > { %v756_v30 = vpop.permute.xlu0 %755  ;;  %v868_v33 = vpop.permute.xlu1 %867 }
 0x24a   : > { %v761_v32 = vsel %vm643_vm4, %v756_v30, 0  ;;  %v873_v34 = vsel %vm643_vm4, %v868_v33, 0 }
 0x24d   : > { %v980_v35 = vpop.permute.xlu1 %979  ;;  %v866_v36 = vpop.permute.xlu0 %865 }
 0x24e   : > { %2611 = vmatmul.mubr.msk.bf16.vlgmr.msra.gmra.mrb[4].mxu0 %vm643_vm4, %v3192_v26  ;;  %v985_v37 = vsel %vm643_vm4, %v980_v35, 0 }
 0x24f   : > { %2621 = vmatpush3.bf16.xpose.msra.mxu0 %v761_v32  ;;  %2622 = vmatprep.mubr.msk.bf16.mxu0 %vm2997_vm1, %v2996_v1 }
 0x250   : > { %2632 = vmatprep.subr.bf16.mxu0 %v2996_v1 }
 0x251   : > { %v978_v38 = vpop.permute.xlu0 %977 }
 0x256   : > { %2623 = vmatmul.mubr.msk.bf16.vlgmr.msra.gmra.mrb[8].mxu0 %vm643_vm4, %v754_v31 }
 0x257   : > { %2633 = vmatpush3.bf16.xpose.msra.mxu0 %v873_v34  ;;  %2634 = vmatprep.mubr.msk.bf16.mxu0 %vm2997_vm1, %v2996_v1 }
 0x258   : > { %2644 = vmatprep.subr.bf16.mxu0 %v2996_v1 }
 0x25e   : > { %2635 = vmatmul.mubr.msk.bf16.vlgmr.msra.gmra.mrb[12].mxu0 %vm643_vm4, %v866_v36 }
 0x25f   : > { %2645 = vmatpush3.bf16.xpose.msra.mxu0 %v985_v37  ;;  %2646 = vmatprep.mubr.msk.bf16.mxu0 %vm2997_vm1, %v2996_v1 }
 0x260   : > { %2656 = vmatprep.subr.bf16.mxu0 %v2996_v1 }
 0x266   : > { %2647 = vmatmul.mubr.msk.bf16.vlgmr.msra.gmra.mrb[16].mxu0 %vm643_vm4, %v978_v38 }
 0x267   : > { %2660 = vmatprep.mubr.msk.bf16.mxu0 %vm2997_vm1, %v2996_v1 }
 0x321   : > { %v684_v39 = vpop.f32.mrb[4].mxu0 }
 0x322   : > { %v690_v40 = vmul.f32 0.35355338, %v684_v39  ;;  %v2612_v41 = vpop.f32.mrb[5].mxu0 }
 0x323   : > { %v687_v42 = vpop.f32.mrb[6].mxu0 }
 0x324   : > { %v2613_v43 = vpop.f32.mrb[7].mxu0  ;;  %v691_v44 = vsel %vm643_vm4, %v690_v40, -inf }
 0x325   : > { %692 = vmax.xlane.f32.xlu1 %v691_v44 }
 0x329   : > { %v797_v45 = vpop.f32.mrb[8].mxu0 }
 0x32a   : > { %v803_v46 = vmul.f32 0.35355338, %v797_v45  ;;  %v2624_v47 = vpop.f32.mrb[9].mxu0 }
 0x32b   : > { %v800_v48 = vpop.f32.mrb[10].mxu0 }
 0x32c   : > { %v2625_v49 = vpop.f32.mrb[11].mxu0  ;;  %v804_v50 = vsel %vm643_vm4, %v803_v46, -inf }
 0x32d   : > { %805 = vmax.xlane.f32.xlu0 %v804_v50 }
 0x331   : > { %v909_v51 = vpop.f32.mrb[12].mxu0 }
 0x332   : > { %v915_v52 = vmul.f32 0.35355338, %v909_v51  ;;  %v2636_v53 = vpop.f32.mrb[13].mxu0 }
 0x333   : > { %v912_v54 = vpop.f32.mrb[14].mxu0 }
 0x334   : > { %v2637_v55 = vpop.f32.mrb[15].mxu0  ;;  %v916_v56 = vsel %vm643_vm4, %v915_v52, -inf }
 0x335   : > { %917 = vmax.xlane.f32.xlu0 %v916_v56 }
 0x339   : > { %v1021_v57 = vpop.f32.mrb[16].mxu0 }
 0x33a   : > { %v1027_v58 = vmul.f32 0.35355338, %v1021_v57  ;;  %v2648_v59 = vpop.f32.mrb[17].mxu0 }
 0x33b   : > { %v1024_v60 = vpop.f32.mrb[18].mxu0  ;;  %v2863_v59 = vld [vmem:[%s3623_s6 + $0x8] sm:$0xff]  }
 0x33c   : > { %v2649_v61 = vpop.f32.mrb[19].mxu0  ;;  %v1028_v62 = vsel %vm643_vm4, %v1027_v58, -inf }
 0x33d   : > { %1029 = vmax.xlane.f32.xlu1 %v1028_v62 }
 0x3b2   : > { %v693_v63 = vpop.xlane.xlu1 %692 }
 0x3b3   : > { %v694_v0 = vsub.f32 %v690_v40, %v693_v63 }
 0x3b5   : > { %v695_v2 = vmul.f32 1.442695, %v694_v0 }
 0x3b7   : > { %2892 = vpow2.f32 %v695_v2 }
 0x3ba   : > { %v806_v3 = vpop.xlane.xlu0 %805 }
 0x3bb   : > { %v807_v4 = vsub.f32 %v803_v46, %v806_v3 }
 0x3bd   : > { %v808_v5 = vmul.f32 1.442695, %v807_v4 }
 0x3bf   : > { %2894 = vpow2.f32 %v808_v5 }
 0x3c1   : > { %v2893_v6 = vpop.eup %2892 }
 0x3c2   : > { %v918_v7 = vpop.xlane.xlu0 %917  ;;  %v697_v11 = vsel %vm643_vm4, %v2893_v6, 0.0 }
 0x3c3   : > { %v919_v12 = vsub.f32 %v915_v52, %v918_v7  ;;  %698 = vadd.xlane.f32.xlu0 %v697_v11 }
 0x3c5   : > { %v920_v13 = vmul.f32 1.442695, %v919_v12 }
 0x3c7   : > { %2896 = vpow2.f32 %v920_v13 }
 0x3c9   : > { %v2895_v14 = vpop.eup %2894 }
 0x3ca   : > { %v810_v15 = vsel %vm643_vm4, %v2895_v14, 0.0  ;;  %v1030_v19 = vpop.xlane.xlu1 %1029 }
 0x3cb   : > { %811 = vadd.xlane.f32.xlu1 %v810_v15  ;;  %v1031_v21 = vsub.f32 %v1027_v58, %v1030_v19  ;;  %v2862_v58 = vld [vmem:[%s3623_s6] sm:$0xff]  }
 0x3cc   : > { %2657 = vmatpush3.bf16.msra.mxu0 %v2862_v58 }
 0x3cd   : > { %v1032_v22 = vmul.f32 1.442695, %v1031_v21  ;;  %2658 = vmatprep.subr.bf16.mxu0 %v2996_v1 }
 0x3cf   : > { %2898 = vpow2.f32 %v1032_v22 }
 0x3d0   : > { %2659 = vmatpush3.bf16.msra.mxu0 %v2863_v59 }
 0x3d1   : > { %v2897_v16 = vpop.eup %2896  ;;  %2672 = vmatprep.subr.bf16.mxu0 %v2996_v1 }
 0x3d2   : > { %v922_v18 = vsel %vm643_vm4, %v2897_v16, 0.0 }
 0x3d3   : > { %923 = vadd.xlane.f32.xlu0 %v922_v18  ;;  %v1109_v18 = vsub.s32 2, %v3166_v8 }
 0x3d5   : > { %v1110_v19 = vrot.slane %v3174_v10, %v1109_v18 }
 0x3d9   : > { %v2899_v23 = vpop.eup %2898 }
 0x3da   : > { %v1034_v24 = vsel %vm643_vm4, %v2899_v23, 0.0 }
 0x3dc   : > { %816 = vrot.lane.b32.xlu1 %v3192_v26, %s3638_s27  ;;  %s3657_s27 = smov 88  }
 0x3e9   : > { %703 = vrot.lane.b32.xlu0 %v3192_v26, %s3639_s23  ;;  %s3663_s23 = smov 72  }
 0x3ed   : > { %1040 = vrot.lane.b32.xlu0 %v3192_v26, %s3637_s4  ;;  %s3642_s4 = smov 24  }
 0x400   : > { %1035 = vadd.xlane.f32.xlu1 %v1034_v24 }
 0x411   : > { %928 = vrot.lane.b32.xlu1 %v3192_v26, %s3636_s25  ;;  %s3641_s25 = smov 8  }
 0x450   : > { %v699_v25 = vpop.xlane.xlu0 %698 }
 0x451   : > { %2900 = vrcp.f32 %v699_v25 }
 0x458   : > { %v812_v27 = vpop.xlane.xlu1 %811 }
 0x459   : > { %2902 = vrcp.f32 %v812_v27 }
 0x45b   : > { %v2901_v28 = vpop.eup %2900 }
 0x45c   : > { %v701_v30 = vmul.f32 %v2901_v28, %v2893_v6  ;;  %v817_v33 = vpop.permute.xlu1 %816 }
 0x45d   : > { %v822_v36 = vsel %vm708_vm5, %v817_v33, 0 }
 0x45e   : > { %v702_v34 = vpack.c.bf16 %v701_v30, %v701_v30 }
 0x460   : > { %v924_v29 = vpop.xlane.xlu0 %923 }
 0x461   : > { %2904 = vrcp.f32 %v924_v29 }
 0x463   : > { %v2903_v35 = vpop.eup %2902 }
 0x464   : > { %v704_v31 = vpop.permute.xlu0 %703  ;;  %v814_v26 = vmul.f32 %v2903_v35, %v2895_v14  ;;  %v2866_v35 = vld [vmem:[%s3625_s8] sm:$0xff]  }
 0x465   : > { %v710_v32 = vsel %vm708_vm5, %v704_v31, 0 }
 0x466   : > { %2615 = vmatpush3.bf16.msra.mxu1 %v710_v32  ;;  %v815_v37 = vpack.c.bf16 %v814_v26, %v814_v26  ;;  %v2868_v26 = vld [vmem:[%s3625_s8 + $0x10] sm:$0xff]  }
 0x467   : > { %2626 = vmatprep.subr.bf16.mxu1 %v2996_v1 }
 0x468   : > { %v1041_v43 = vpop.permute.xlu0 %1040 }
 0x469   : > { %2617 = vmatmul.mubr.msk.bf16.vlgmr.msra.gmra.mrb[4].mxu1 %vm643_vm4, %v702_v34  ;;  %v1046_v45 = vsel %vm708_vm5, %v1041_v43, 0  ;;  %v2864_v34 = vld [vmem:[%s3624_s7] sm:$0xff]   ;;  %v1182_v43 = vsub.s32 3, %v3166_v8 }
 0x46a   : > { %2627 = vmatpush3.bf16.msra.mxu1 %v822_v36  ;;  %2628 = vmatprep.mubr.msk.bf16.mxu1 %vm2997_vm1, %v2996_v1  ;;  %v2867_v36 = vld [vmem:[%s3625_s8 + $0x8] sm:$0xff]  }
 0x46b   : > { %2638 = vmatprep.subr.bf16.mxu1 %v2996_v1  ;;  %v2905_v38 = vpop.eup %2904 }
 0x46c   : > { %v926_v40 = vmul.f32 %v2905_v38, %v2897_v16  ;;  %v2870_v38 = vld [vmem:[%s3625_s8 + $0x20] sm:$0xff]  }
 0x46e   : > { %v927_v44 = vpack.c.bf16 %v926_v40, %v926_v40 }
 0x471   : > { %2629 = vmatmul.mubr.msk.bf16.vlgmr.msra.gmra.mrb[8].mxu1 %vm643_vm4, %v815_v37  ;;  %v2869_v37 = vld [vmem:[%s3625_s8 + $0x18] sm:$0xff]  }
 0x472   : > { %2640 = vmatprep.mubr.msk.bf16.mxu1 %vm2997_vm1, %v2996_v1 }
 0x48d   : > { %v1036_v39 = vpop.xlane.xlu1 %1035 }
 0x48e   : > { %2906 = vrcp.f32 %v1036_v39  ;;  %v2871_v39 = vld [vmem:[%s3625_s8 + $0x28] sm:$0xff]  }
 0x491   : > { %v929_v41 = vpop.permute.xlu1 %928 }
 0x492   : > { %v934_v42 = vsel %vm708_vm5, %v929_v41, 0 }
 0x493   : > { %2639 = vmatpush3.bf16.msra.mxu1 %v934_v42 }
 0x494   : > { %2650 = vmatprep.subr.bf16.mxu1 %v2996_v1 }
 0x496   : > { %2641 = vmatmul.mubr.msk.bf16.vlgmr.msra.gmra.mrb[12].mxu1 %vm643_vm4, %v927_v44  ;;  %v1187_v44 = vsub.s32 4, %v3166_v8 }
 0x497   : > { %2651 = vmatpush3.bf16.msra.mxu1 %v1046_v45  ;;  %2652 = vmatprep.mubr.msk.bf16.mxu1 %vm2997_vm1, %v2996_v1  ;;  %v1183_v45 = vrot.slane %v3174_v10, %v1182_v43 }
 0x498   : > { %v2907_v46 = vpop.eup %2906  ;;  %2664 = vmatprep.subr.bf16.mxu1 %v2996_v1 }
 0x499   : > { %v1038_v47 = vmul.f32 %v2907_v46, %v2899_v23 }
 0x49b   : > { %v1039_v48 = vpack.c.bf16 %v1038_v47, %v1038_v47 }
 0x49e   : > { %2653 = vmatmul.mubr.msk.bf16.vlgmr.msra.gmra.mrb[16].mxu1 %vm643_vm4, %v1039_v48  ;;  %v1188_v48 = vrot.slane %v3174_v10, %v1187_v44 }
 0x49f   : > { %2668 = vmatprep.mubr.msk.bf16.mxu1 %vm2997_vm1, %v2996_v1  ;;  %2665 = vmatpush3.bf16.msra.mxu1 %v2864_v34 }
 0x4a0   : > { %2666 = vmatprep.subr.bf16.mxu1 %v2996_v1 }
 0x53c   : > { %v746_v49 = vpop.f32.mrb[4].mxu1 }
 0x53d   : > { %v2618_v50 = vpop.f32.mrb[5].mxu1  ;;  %v752_v11 = vpack.c.bf16 %v746_v49, %v746_v49 }
 0x53e   : > { %v749_v51 = vpop.f32.mrb[6].mxu1 }
 0x53f   : > { %v2619_v52 = vpop.f32.mrb[7].mxu1 }
 0x540   : > { %v2872_v52 = vld [vmem:[%s3625_s8 + $0x30] sm:$0xff]  }
 0x544   : > { %v858_v53 = vpop.f32.mrb[8].mxu1 }
 0x545   : > { %v864_v54 = vpack.c.bf16 %v858_v53, %v858_v53  ;;  %v2630_v55 = vpop.f32.mrb[9].mxu1  ;;  %v2873_v53 = vld [vmem:[%s3625_s8 + $0x38] sm:$0xff]  }
 0x546   : > { %v861_v56 = vpop.f32.mrb[10].mxu1 }
 0x547   : > { %1090 = vrot.lane.b32.xlu1 %v864_v54, %s3641_s25  ;;  %v2631_v57 = vpop.f32.mrb[11].mxu1  ;;  %s3643_s25 = smov 16   ;;  %v1193_v54 = vsub.s32 5, %v3166_v8 }
 0x549   : > { %v1194_v55 = vrot.slane %v3174_v10, %v1193_v54 }
 0x569   : > { %v970_v60 = vpop.f32.mrb[12].mxu1 }
 0x56a   : > { %v976_v61 = vpack.c.bf16 %v970_v60, %v970_v60  ;;  %v2642_v62 = vpop.f32.mrb[13].mxu1 }
 0x56b   : > { %v973_v63 = vpop.f32.mrb[14].mxu1 }
 0x56c   : > { %1093 = vrot.lane.b32.xlu0 %v976_v61, %s3643_s25  ;;  %v2643_v0 = vpop.f32.mrb[15].mxu1  ;;  %v1254_v63 = vsub.s32 6, %v3166_v8  ;;  %s3661_s25 = smov 104  }
 0x56e   : > { %v1255_v0 = vrot.slane %v3174_v10, %v1254_v63 }
 0x571   : > { %v1082_v2 = vpop.f32.mrb[16].mxu1 }
 0x572   : > { %v1088_v3 = vpack.c.bf16 %v1082_v2, %v1082_v2  ;;  %v2654_v4 = vpop.f32.mrb[17].mxu1 }
 0x573   : > { %v1085_v5 = vpop.f32.mrb[18].mxu1 }
 0x574   : > { %1096 = vrot.lane.b32.xlu1 %v1088_v3, %s3642_s4  ;;  %v2655_v6 = vpop.f32.mrb[19].mxu1  ;;  %s3656_s4 = smov 96  }
 0x5b9   : > { %v1091_v7 = vpop.permute.xlu1 %1090 }
 0x5ba   : > { %v1100_v13 = vsel %vm643_vm4, %v752_v11, %v1091_v7 }
 0x5de   : > { %v1094_v12 = vpop.permute.xlu0 %1093 }
 0x5df   : > { %v1103_v14 = vsel %vm1101_vm6, %v1100_v13, %v1094_v12 }
 0x5e6   : > { %v1097_v15 = vpop.permute.xlu1 %1096 }
 0x5e7   : > { %v1106_v16 = vsel %vm1104_vm7, %v1103_v14, %v1097_v15 }
 0x5e8   : > { %2661 = vmatmul.mubr.msk.bf16.vlgmr.msra.gmra.mrb[20].mxu0 %vm595_vm3, %v1106_v16 }
 0x5e9   : > { %2688 = vmatprep.mubr.msk.bf16.mxu0 %vm2997_vm1, %v2996_v1  ;;  %2673 = vmatpush3.bf16.msra.mxu0 %v2866_v35 }
 0x5ea   : > { %2674 = vmatprep.subr.bf16.mxu0 %v2996_v1 }
 0x5ed   : > { %2675 = vmatpush3.bf16.msra.mxu0 %v2867_v36 }
 0x5ee   : > { %2676 = vmatprep.subr.bf16.mxu0 %v2996_v1 }
 0x5f1   : > { %2677 = vmatpush3.bf16.msra.mxu0 %v2868_v26 }
 0x5f2   : > { %2678 = vmatprep.subr.bf16.mxu0 %v2996_v1 }
 0x5f5   : > { %2679 = vmatpush3.bf16.msra.mxu0 %v2869_v37 }
 0x5f6   : > { %2680 = vmatprep.subr.bf16.mxu0 %v2996_v1 }
 0x5f9   : > { %2681 = vmatpush3.bf16.msra.mxu0 %v2870_v38 }
 0x5fa   : > { %2682 = vmatprep.subr.bf16.mxu0 %v2996_v1 }
 0x5fd   : > { %2683 = vmatpush3.bf16.msra.mxu0 %v2871_v39 }
 0x5fe   : > { %2684 = vmatprep.subr.bf16.mxu0 %v2996_v1 }
 0x601   : > { %2685 = vmatpush3.bf16.msra.mxu0 %v2872_v52 }
 0x602   : > { %2686 = vmatprep.subr.bf16.mxu0 %v2996_v1 }
 0x605   : > { %2687 = vmatpush3.bf16.msra.mxu0 %v2873_v53 }
 0x606   : > { %2718 = vmatprep.subr.bf16.mxu0 %v2996_v1 }
 0x6bb   : > { %v1159_v21 = vpop.f32.mrb[20].mxu0 }
 0x6bc   : > { %v1160_v22 = vadd.f32 %v1159_v21, %v1110_v19  ;;  %v2662_v23 = vpop.f32.mrb[21].mxu0  ;;  %v2874_v19 = vld [vmem:[%s3626_s9] sm:$0xff]   ;;  %v2875_v21 = vld [vmem:[%s3626_s9 + $0x8] sm:$0xff]  }
 0x6bd   : > { %v1162_v24 = vpop.f32.mrb[22].mxu0 }
 0x6be   : > { %v2663_v25 = vpop.f32.mrb[23].mxu0  ;;  %v1165_v27 = vadd.f32 %v1160_v22, %v3181_v17  ;;  %v2865_v17 = vld [vmem:[%s3624_s7 + $0x8] sm:$0xff]  }
 0x6bf   : > { %2667 = vmatpush3.bf16.msra.mxu1 %v2865_v17  ;;  %v1360_v25 = vsub.s32 7, %v3166_v8  ;;  %v2889_v8 = vld [vmem:[%s3630_s13 + $0x8] sm:$0xff]  }
 0x6c0   : > { %v1166_v28 = vsel %vm595_vm3, %v1165_v27, 0.0  ;;  %2692 = vmatprep.subr.bf16.mxu1 %v2996_v1 }
 0x6c1   : > { %1167 = vadd.xlane.f32.xlu0 %v1166_v28  ;;  %v1361_v28 = vrot.slane %v3174_v10, %v1360_v25 }
 0x74e   : > { %v1168_v29 = vpop.xlane.xlu0 %1167 }
 0x74f   : > { %v1170_v30 = vmul.f32 0.03125, %v1168_v29 }
 0x751   : > { %v1171_v31 = vsub.f32 %v1165_v27, %v1170_v30  ;;  %v3364_v27 = vld [vmem:[%s3620_s3 + $0x8] sm:$0xff] }
 0x752   : > { %v1366_v30 = vrot.slane %v3364_v27, %v3169_v9  ;;  %v1400_v10 = vrot.slane %v3364_v27, %v581_v20 }
 0x753   : > { %v1172_v32 = vmul.f32 %v1171_v31, %v1171_v31 }
 0x755   : > { %v1173_v33 = vsel %vm595_vm3, %v1172_v32, 0.0 }
 0x756   : > { %1174 = vadd.xlane.f32.xlu1 %v1173_v33 }
 0x7e3   : > { %v1175_v40 = vpop.xlane.xlu1 %1174 }
 0x7e4   : > { %v1176_v41 = vmul.f32 0.03125, %v1175_v40 }
 0x7e6   : > { %v1177_v42 = vadd.f32 1e-05, %v1176_v41 }
 0x7e8   : > { %2908 = vrsqrt.f32 %v1177_v42 }
 0x7f2   : > { %v2909_v46 = vpop.eup %2908 }
 0x7f3   : > { %v1179_v47 = vmul.f32 %v2909_v46, %v1171_v31 }
 0x7f5   : > { %v1184_v49 = vmul.f32 %v1183_v45, %v1179_v47 }
 0x7f7   : > { %v1189_v50 = vadd.f32 %v1188_v48, %v1184_v49 }
 0x7f9   : > { %v1190_v51 = vpack.c.bf16 %v1189_v50, %v1189_v50 }
 0x7fb   : > { %2669 = vmatmul.mubr.msk.bf16.vlgmr.msra.gmra.mrb[20].mxu1 %vm595_vm3, %v1190_v51 }
 0x7fc   : > { %2696 = vmatprep.mubr.msk.bf16.mxu1 %vm2997_vm1, %v2996_v1  ;;  %2693 = vmatpush3.bf16.msra.mxu1 %v2874_v19 }
 0x7fd   : > { %2694 = vmatprep.subr.bf16.mxu1 %v2996_v1 }
 0x800   : > { %2695 = vmatpush3.bf16.msra.mxu1 %v2875_v21 }
 0x801   : > { %2700 = vmatprep.subr.bf16.mxu1 %v2996_v1 }
 0x8ce   : > { %v1244_v56 = vpop.f32.mrb[20].mxu1 }
 0x8cf   : > { %v1245_v57 = vadd.f32 %v1244_v56, %v1194_v55  ;;  %v2670_v58 = vpop.f32.mrb[21].mxu1 }
 0x8d0   : > { %v1247_v59 = vpop.f32.mrb[22].mxu1 }
 0x8d1   : > { %v1250_v60 = vmax.f32 %v1245_v57, 0.0  ;;  %v2671_v61 = vpop.f32.mrb[23].mxu1 }
 0x8d3   : > { %v1251_v62 = vpack.c.bf16 %v1250_v60, %v1250_v60 }
 0x8d5   : > { %2689 = vmatmul.mubr.bf16.vlgmr.msra.gmra.mrb[24].mxu0 %v1251_v62 }
 0x8d6   : > { %2720 = vmatprep.mubr.msk.bf16.mxu0 %vm2997_vm1, %v2996_v1 }
 0x9a8   : > { %v1338_v2 = vpop.f32.mrb[24].mxu0 }
 0x9a9   : > { %v1339_v3 = vadd.f32 %v1338_v2, %v1255_v0  ;;  %v2690_v4 = vpop.f32.mrb[25].mxu0 }
 0x9aa   : > { %v1341_v5 = vpop.f32.mrb[26].mxu0 }
 0x9ab   : > { %v2691_v6 = vpop.f32.mrb[27].mxu0  ;;  %v1344_v7 = vadd.f32 %v1339_v3, %v1189_v50 }
 0x9ad   : > { %v1345_v11 = vsel %vm595_vm3, %v1344_v7, 0.0 }
 0x9ae   : > { %1346 = vadd.xlane.f32.xlu0 %v1345_v11 }
 0xa3b   : > { %v1347_v12 = vpop.xlane.xlu0 %1346 }
 0xa3c   : > { %v1348_v13 = vmul.f32 0.03125, %v1347_v12 }
 0xa3e   : > { %v1349_v14 = vsub.f32 %v1344_v7, %v1348_v13 }
 0xa40   : > { %v1350_v15 = vmul.f32 %v1349_v14, %v1349_v14 }
 0xa42   : > { %v1351_v16 = vsel %vm595_vm3, %v1350_v15, 0.0 }
 0xa43   : > { %1352 = vadd.xlane.f32.xlu0 %v1351_v16 }
 0xad0   : > { %v1353_v22 = vpop.xlane.xlu0 %1352 }
 0xad1   : > { %v1354_v23 = vmul.f32 0.03125, %v1353_v22 }
 0xad3   : > { %v1355_v24 = vadd.f32 1e-05, %v1354_v23 }
 0xad5   : > { %2910 = vrsqrt.f32 %v1355_v24 }
 0xadf   : > { %v2911_v29 = vpop.eup %2910 }
 0xae0   : > { %v1357_v31 = vmul.f32 %v2911_v29, %v1349_v14 }
 0xae2   : > { %v1362_v32 = vmul.f32 %v1361_v28, %v1357_v31 }
 0xae4   : > { %v3371_v33 = vadd.f32 %v1366_v30, %v1362_v32 }
 0xae6   : > { %v1396_v34 = vpack.c.bf16 %v3371_v33, %v3371_v33 }
 0xae8   : > { %2697 = vmatmul.mubr.msk.bf16.vlgmr.msra.gmra.mrb[24].mxu1 %vm595_vm3, %v1396_v34 }
 0xae9   : > { %2702 = vmatprep.mubr.msk.bf16.mxu1 %vm2997_vm1, %v2996_v1 }
 0xbbb   : > { %v1450_v17 = vpop.f32.mrb[24].mxu1 }
 0xbbc   : > { %v1451_v35 = vadd.f32 %v1450_v17, %v1400_v10  ;;  %v2698_v36 = vpop.f32.mrb[25].mxu1 }
 0xbbd   : > { %v1453_v26 = vpop.f32.mrb[26].mxu1 }
 0xbbe   : > { %v3381_v37 = vpack.c.bf16 %v1451_v35, %v1451_v35  ;;  %v2699_v38 = vpop.f32.mrb[27].mxu1 }
 0xbc0   : > { %1458 = vrot.lane.b32.xlu1 %v3381_v37, %s3656_s4  ;;  %s3664_s4 = smov 56  }
 0xbc4   : > { %1570 = vrot.lane.b32.xlu1 %v3381_v37, %s3657_s27  ;;  %s3665_s27 = smov 40  }
 0xbc8   : > { %1568 = vrot.lane.b32.xlu1 %v3381_v37, %s3658_s26  ;;  %s3666_s26 = smov 48  }
 0xbcc   : > { %1682 = vrot.lane.b32.xlu1 %v3381_v37, %s3659_s30  ;;  %s2513_s30 = sshll.u32 %s3114_s22, 4 }
 0xbd0   : > { %1680 = vrot.lane.b32.xlu1 %v3381_v37, %s3660_s17 }
 0xbd4   : > { %1792 = vrot.lane.b32.xlu1 %v3381_v37, %s3661_s25 }
 0xc32   : > { %v1459_v20 = vpop.permute.xlu1 %1458 }
 0xc33   : > { %v1464_v39 = vsel %vm643_vm4, %v1459_v20, 0 }
 0xc34   : > { %2701 = vmatpush3.bf16.xpose.msra.mxu1 %v1464_v39 }
 0xc35   : > { %2706 = vmatprep.subr.bf16.mxu1 %v2996_v1 }
 0xc36   : > { %v1571_v57 = vpop.permute.xlu1 %1570 }
 0xc37   : > { %v1576_v62 = vsel %vm643_vm4, %v1571_v57, 0 }
 0xc3a   : > { %v1569_v61 = vpop.permute.xlu1 %1568 }
 0xc3b   : > { %2703 = vmatmul.mubr.msk.bf16.vlgmr.msra.gmra.mrb[28].mxu1 %vm643_vm4, %v3381_v37 }
 0xc3c   : > { %2708 = vmatprep.mubr.msk.bf16.mxu1 %vm2997_vm1, %v2996_v1 }
 0xc3e   : > { %v1683_v0 = vpop.permute.xlu1 %1682 }
 0xc3f   : > { %v1688_v2 = vsel %vm643_vm4, %v1683_v0, 0 }
 0xc42   : > { %v1681_v4 = vpop.permute.xlu1 %1680 }
 0xc46   : > { %v1793_v6 = vpop.permute.xlu1 %1792 }
 0xd0e   : > { %v1500_v40 = vpop.f32.mrb[28].mxu1 }
 0xd0f   : > { %v1506_v41 = vmul.f32 0.35355338, %v1500_v40  ;;  %v2704_v42 = vpop.f32.mrb[29].mxu1 }
 0xd10   : > { %v1503_v45 = vpop.f32.mrb[30].mxu1 }
 0xd11   : > { %v2705_v46 = vpop.f32.mrb[31].mxu1  ;;  %v1507_v47 = vsel %vm643_vm4, %v1506_v41, -inf }
 0xd12   : > { %1508 = vmax.xlane.f32.xlu0 %v1507_v47 }
 0xd9f   : > { %v1509_v48 = vpop.xlane.xlu0 %1508 }
 0xda0   : > { %v1510_v49 = vsub.f32 %v1506_v41, %v1509_v48 }
 0xda2   : > { %v1511_v50 = vmul.f32 1.442695, %v1510_v49 }
 0xda4   : > { %2912 = vpow2.f32 %v1511_v50 }
 0xdae   : > { %v2913_v51 = vpop.eup %2912 }
 0xdaf   : > { %v1513_v52 = vsel %vm643_vm4, %v2913_v51, 0.0 }
 0xdb0   : > { %1514 = vadd.xlane.f32.xlu0 %v1513_v52 }
 0xdc6   : > { %1519 = vrot.lane.b32.xlu0 %v3381_v37, %s3662_s16  ;;  %s2938_s16 = scalar_lea.vmem %s2937_s1, 32 }
 0xdca   : > { %1794 = vrot.lane.b32.xlu0 %v3381_v37, %s3663_s23  ;;  %s3667_s23 = smov 8  }
 0xe3d   : > { %v1515_v53 = vpop.xlane.xlu0 %1514 }
 0xe3e   : > { %2914 = vrcp.f32 %v1515_v53 }
 0xe41   : > { %v1520_v55 = vpop.permute.xlu0 %1519 }
 0xe42   : > { %v1525_v56 = vsel %vm708_vm5, %v1520_v55, 0 }
 0xe43   : > { %2707 = vmatpush3.bf16.msra.mxu1 %v1525_v56 }
 0xe44   : > { %2712 = vmatprep.subr.bf16.mxu1 %v2996_v1 }
 0xe45   : > { %v1795_v3 = vpop.permute.xlu0 %1794 }
 0xe46   : > { %v1800_v5 = vsel %vm643_vm4, %v1795_v3, 0 }
 0xe48   : > { %v2915_v58 = vpop.eup %2914 }
 0xe49   : > { %v1517_v59 = vmul.f32 %v2915_v58, %v2913_v51 }
 0xe4b   : > { %v1518_v60 = vpack.c.bf16 %v1517_v59, %v1517_v59 }
 0xe4d   : > { %2709 = vmatmul.mubr.msk.bf16.vlgmr.msra.gmra.mrb[32].mxu1 %vm643_vm4, %v1518_v60 }
 0xe4e   : > { %2713 = vmatpush3.bf16.xpose.msra.mxu1 %v1576_v62  ;;  %2714 = vmatprep.mubr.msk.bf16.mxu1 %vm2997_vm1, %v2996_v1 }
 0xe4f   : > { %2724 = vmatprep.subr.bf16.mxu1 %v2996_v1 }
 0xe55   : > { %2715 = vmatmul.mubr.msk.bf16.vlgmr.msra.gmra.mrb[36].mxu1 %vm643_vm4, %v1569_v61 }
 0xe56   : > { %2725 = vmatpush3.bf16.xpose.msra.mxu1 %v1688_v2  ;;  %2726 = vmatprep.mubr.msk.bf16.mxu1 %vm2997_vm1, %v2996_v1 }
 0xe57   : > { %2736 = vmatprep.subr.bf16.mxu1 %v2996_v1 }
 0xe5d   : > { %2727 = vmatmul.mubr.msk.bf16.vlgmr.msra.gmra.mrb[40].mxu1 %vm643_vm4, %v1681_v4 }
 0xe5e   : > { %2737 = vmatpush3.bf16.xpose.msra.mxu1 %v1800_v5  ;;  %2738 = vmatprep.mubr.msk.bf16.mxu1 %vm2997_vm1, %v2996_v1 }
 0xe5f   : > { %2748 = vmatprep.subr.bf16.mxu1 %v2996_v1 }
 0xe65   : > { %2739 = vmatmul.mubr.msk.bf16.vlgmr.msra.gmra.mrb[44].mxu1 %vm643_vm4, %v1793_v6 }
 0xe66   : > { %2752 = vmatprep.mubr.msk.bf16.mxu1 %vm2997_vm1, %v2996_v1 }
 0xf20   : > { %v3427_v7 = vpop.f32.mrb[32].mxu1 }
 0xf21   : > { %v2710_v11 = vpop.f32.mrb[33].mxu1 }
 0xf22   : > { %v1564_v12 = vpop.f32.mrb[34].mxu1 }
 0xf23   : > { %v2711_v13 = vpop.f32.mrb[35].mxu1 }
 0xf24   : > { %v2876_v13 = vld [vmem:[%s3627_s10] sm:$0xff]  }
 0xf25   : > { %2749 = vmatpush3.bf16.msra.mxu1 %v2876_v13  ;;  %v2886_v13 = vld [vmem:[%s3629_s12 + $0x30] sm:$0xff]  }
 0xf26   : > { %2750 = vmatprep.subr.bf16.mxu1 %v2996_v1 }
 0xf28   : > { %v1612_v14 = vpop.f32.mrb[36].mxu1 }
 0xf29   : > { %v1618_v15 = vmul.f32 0.35355338, %v1612_v14  ;;  %v2716_v16 = vpop.f32.mrb[37].mxu1 }
 0xf2a   : > { %v1615_v19 = vpop.f32.mrb[38].mxu1 }
 0xf2b   : > { %v2717_v21 = vpop.f32.mrb[39].mxu1  ;;  %v1619_v22 = vsel %vm643_vm4, %v1618_v15, -inf  ;;  %v2877_v19 = vld [vmem:[%s3627_s10 + $0x8] sm:$0xff]  }
 0xf2c   : > { %1620 = vmax.xlane.f32.xlu0 %v1619_v22  ;;  %2751 = vmatpush3.bf16.msra.mxu1 %v2877_v19 }
 0xf2d   : > { %2764 = vmatprep.subr.bf16.mxu1 %v2996_v1 }
 0xf30   : > { %v1724_v23 = vpop.f32.mrb[40].mxu1 }
 0xf31   : > { %v1730_v24 = vmul.f32 0.35355338, %v1724_v23  ;;  %v2728_v28 = vpop.f32.mrb[41].mxu1 }
 0xf32   : > { %v1727_v29 = vpop.f32.mrb[42].mxu1 }
 0xf33   : > { %v2729_v30 = vpop.f32.mrb[43].mxu1  ;;  %v1731_v31 = vsel %vm643_vm4, %v1730_v24, -inf }
 0xf34   : > { %1732 = vmax.xlane.f32.xlu1 %v1731_v31 }
 0xf38   : > { %v1836_v32 = vpop.f32.mrb[44].mxu1 }
 0xf39   : > { %v1842_v34 = vmul.f32 0.35355338, %v1836_v32  ;;  %v2740_v10 = vpop.f32.mrb[45].mxu1 }
 0xf3a   : > { %v1839_v17 = vpop.f32.mrb[46].mxu1 }
 0xf3b   : > { %v2741_v35 = vpop.f32.mrb[47].mxu1  ;;  %v1843_v36 = vsel %vm643_vm4, %v1842_v34, -inf }
 0xf3c   : > { %1844 = vmax.xlane.f32.xlu0 %v1843_v36  ;;  %v1567_v36 = vpack.c.bf16 %v3427_v7, %v3427_v7 }
 0xf45   : > { %1631 = vrot.lane.b32.xlu1 %v3381_v37, %s3664_s4  ;;  %s3668_s4 = smov 16  }
 0xfb9   : > { %v1621_v26 = vpop.xlane.xlu0 %1620 }
 0xfba   : > { %v1622_v38 = vsub.f32 %v1618_v15, %v1621_v26 }
 0xfbc   : > { %v1623_v20 = vmul.f32 1.442695, %v1622_v38 }
 0xfbe   : > { %2916 = vpow2.f32 %v1623_v20 }
 0xfc1   : > { %v1733_v39 = vpop.xlane.xlu1 %1732 }
 0xfc2   : > { %v1734_v40 = vsub.f32 %v1730_v24, %v1733_v39 }
 0xfc4   : > { %v1735_v41 = vmul.f32 1.442695, %v1734_v40 }
 0xfc5   : > { %v1632_v42 = vpop.permute.xlu1 %1631 }
 0xfc6   : > { %2918 = vpow2.f32 %v1735_v41  ;;  %v1637_v45 = vsel %vm708_vm5, %v1632_v42, 0  ;;  %v1923_v41 = vrot.slane %v3364_v27, %v1109_v18  ;;  %v2878_v18 = vld [vmem:[%s3628_s11] sm:$0xff]  }
 0xfc7   : > { %2719 = vmatpush3.bf16.msra.mxu0 %v1637_v45 }
 0xfc8   : > { %v2917_v46 = vpop.eup %2916  ;;  %2730 = vmatprep.subr.bf16.mxu0 %v2996_v1 }
 0xfc9   : > { %v1845_v47 = vpop.xlane.xlu0 %1844  ;;  %v1625_v48 = vsel %vm643_vm4, %v2917_v46, 0.0 }
 0xfca   : > { %v1846_v49 = vsub.f32 %v1842_v34, %v1845_v47  ;;  %1626 = vadd.xlane.f32.xlu0 %v1625_v48 }
 0xfcc   : > { %v1847_v50 = vmul.f32 1.442695, %v1846_v49 }
 0xfce   : > { %2920 = vpow2.f32 %v1847_v50 }
 0xfd0   : > { %v2919_v51 = vpop.eup %2918 }
 0xfd1   : > { %v1737_v52 = vsel %vm643_vm4, %v2919_v51, 0.0 }
 0xfd2   : > { %1738 = vadd.xlane.f32.xlu1 %v1737_v52 }
 0xfd8   : > { %v2921_v53 = vpop.eup %2920 }
 0xfd9   : > { %v1849_v55 = vsel %vm643_vm4, %v2921_v53, 0.0 }
 0xfda   : > { %1850 = vadd.xlane.f32.xlu0 %v1849_v55 }
 0xfe3   : > { %1855 = vrot.lane.b32.xlu1 %v3381_v37, %s3665_s27  ;;  %s3669_s27 = smov 24  }
 0xff0   : > { %1743 = vrot.lane.b32.xlu0 %v3381_v37, %s3666_s26  ;;  %s483_s26 = sand.u32 1, %s2986_s19  }
 0xff1   : > { %s484_s17 = scalar_lea.vmem [#allocation2], %s483_s26  ;;  %s2383_s22 = scalar_lea.sflag [#allocation3], %s483_s26 }
 0xff2   : > { %s2395_s25 = sshll.u32 %s484_s17, 4  ;;  %s3577_s25 = int_to_ptr.vmem [resolvable:$true] %s2395_s25 }
 0xff3   : > { %p2939_p0 = scmp.lt.s32.totalorder %s3577_s25, %s2937_s1 }
0x1057   : > { %v1627_v56 = vpop.xlane.xlu0 %1626 }
0x1058   : > { %2922 = vrcp.f32 %v1627_v56  ;;  %v2879_v56 = vld [vmem:[%s3628_s11 + $0x8] sm:$0xff]  }
0x105f   : > { %v1739_v57 = vpop.xlane.xlu1 %1738 }
0x1060   : > { %2924 = vrcp.f32 %v1739_v57  ;;  %v2881_v57 = vld [vmem:[%s3629_s12 + $0x8] sm:$0xff]  }
0x1062   : > { %v2923_v58 = vpop.eup %2922 }
0x1063   : > { %v1629_v59 = vmul.f32 %v2923_v58, %v2917_v46  ;;  %v1856_v37 = vpop.permute.xlu1 %1855  ;;  %v2882_v58 = vld [vmem:[%s3629_s12 + $0x10] sm:$0xff]  }
0x1064   : > { %v1861_v5 = vsel %vm708_vm5, %v1856_v37, 0 }
0x1065   : > { %v1630_v60 = vpack.c.bf16 %v1629_v59, %v1629_v59  ;;  %v2883_v59 = vld [vmem:[%s3629_s12 + $0x18] sm:$0xff]  }
0x1067   : > { %2721 = vmatmul.mubr.msk.bf16.vlgmr.msra.gmra.mrb[28].mxu0 %vm643_vm4, %v1630_v60  ;;  %v1851_v61 = vpop.xlane.xlu0 %1850  ;;  %v2884_v60 = vld [vmem:[%s3629_s12 + $0x20] sm:$0xff]  }
0x1068   : > { %2926 = vrcp.f32 %v1851_v61  ;;  %2732 = vmatprep.mubr.msk.bf16.mxu0 %vm2997_vm1, %v2996_v1  ;;  %v2885_v61 = vld [vmem:[%s3629_s12 + $0x28] sm:$0xff]  }
0x106a   : > { %v2925_v62 = vpop.eup %2924 }
0x106b   : > { %v1741_v0 = vmul.f32 %v2925_v62, %v2919_v51  ;;  %v1744_v2 = vpop.permute.xlu0 %1743 }
0x106c   : > { %v1749_v3 = vsel %vm708_vm5, %v1744_v2, 0 }
0x106d   : > { %2731 = vmatpush3.bf16.msra.mxu0 %v1749_v3  ;;  %v1742_v4 = vpack.c.bf16 %v1741_v0, %v1741_v0  ;;  %v1995_v3 = vrot.slane %v3364_v27, %v1182_v43  ;;  %v2887_v43 = vld [vmem:[%s3629_s12 + $0x38] sm:$0xff]  }
0x106e   : > { %2742 = vmatprep.subr.bf16.mxu0 %v2996_v1 }
0x1070   : > { %2733 = vmatmul.mubr.msk.bf16.vlgmr.msra.gmra.mrb[32].mxu0 %vm643_vm4, %v1742_v4 }
0x1071   : > { %2743 = vmatpush3.bf16.msra.mxu0 %v1861_v5  ;;  %2744 = vmatprep.mubr.msk.bf16.mxu0 %vm2997_vm1, %v2996_v1  ;;  %v2000_v5 = vrot.slane %v3364_v27, %v1187_v44  ;;  %v2006_v44 = vrot.slane %v3364_v27, %v1193_v54 }
0x1072   : > { %v2927_v6 = vpop.eup %2926  ;;  %2756 = vmatprep.subr.bf16.mxu0 %v2996_v1 }
0x1073   : > { %v1853_v11 = vmul.f32 %v2927_v6, %v2921_v53 }
0x1075   : > { %v1854_v12 = vpack.c.bf16 %v1853_v11, %v1853_v11 }
0x1078   : > { %2745 = vmatmul.mubr.msk.bf16.vlgmr.msra.gmra.mrb[36].mxu0 %vm643_vm4, %v1854_v12 }
0x1079   : > { %2760 = vmatprep.mubr.msk.bf16.mxu0 %vm2997_vm1, %v2996_v1  ;;  %2757 = vmatpush3.bf16.msra.mxu0 %v2878_v18 }
0x107a   : > { %2758 = vmatprep.subr.bf16.mxu0 %v2996_v1 }
0x107d   : > { %2759 = vmatpush3.bf16.msra.mxu0 %v2879_v56 }
0x107e   : > { %2784 = vmatprep.subr.mxu0 %v2996_v1 }
0x113a   : > { %v1673_v14 = vpop.f32.mrb[28].mxu0 }
0x113b   : > { %v1679_v15 = vpack.c.bf16 %v1673_v14, %v1673_v14  ;;  %v2722_v16 = vpop.f32.mrb[29].mxu0 }
0x113c   : > { %v1676_v21 = vpop.f32.mrb[30].mxu0 }
0x113d   : > { %1905 = vrot.lane.b32.xlu1 %v1679_v15, %s3667_s23  ;;  %v2723_v22 = vpop.f32.mrb[31].mxu0 }
0x1143   : > { %v1785_v23 = vpop.f32.mrb[32].mxu0 }
0x1144   : > { %v1791_v24 = vpack.c.bf16 %v1785_v23, %v1785_v23  ;;  %v2734_v28 = vpop.f32.mrb[33].mxu0 }
0x1145   : > { %v1788_v29 = vpop.f32.mrb[34].mxu0 }
0x1146   : > { %1908 = vrot.lane.b32.xlu0 %v1791_v24, %s3668_s4  ;;  %v2735_v30 = vpop.f32.mrb[35].mxu0  ;;  %v2067_v24 = vrot.slane %v3364_v27, %v1254_v63  ;;  %v492_v63 = vld [vmem:[%s3620_s3 + $0x10] sm:$0x7]  ;;  %s3575_s4 = scalar_lea.hbm %s3632_s15, %s2513_s30 }
0x114b   : > { %v1897_v31 = vpop.f32.mrb[36].mxu0 }
0x114c   : > { %v1903_v32 = vpack.c.bf16 %v1897_v31, %v1897_v31  ;;  %v2746_v34 = vpop.f32.mrb[37].mxu0 }
0x114d   : > { %v1900_v10 = vpop.f32.mrb[38].mxu0 }
0x114e   : > { %1911 = vrot.lane.b32.xlu1 %v1903_v32, %s3669_s27  ;;  %v2747_v17 = vpop.f32.mrb[39].mxu0  ;;  %s2932_s27 = scalar_lea.vmem %s3577_s25, 16 }
0x114f   : > { %p2933_p11 = scmp.ne.s32.totalorder %s3577_s25, %s2932_s27  ;;  %p2940_p1 = scmp.lt.s32.totalorder %s2938_s16, %s2932_s27 }
0x1151   : > { %p2934_p12 = pnand %p2933_p11, %p3131_p5  ;;  %p2941_p2 = por %p2940_p1, %p2939_p0 }
0x1153   : > { %p2935_p13 = pneg %p2934_p12 }
0x1155   : > { %p2942_p3 = pnand %p2941_p2, %p2935_p13 }
0x11af   : > { %v1906_v35 = vpop.permute.xlu1 %1905 }
0x11b0   : > { %v1915_v38 = vsel %vm643_vm4, %v1567_v36, %v1906_v35 }
0x11b8   : > { %v1909_v26 = vpop.permute.xlu0 %1908 }
0x11b9   : > { %v1917_v20 = vsel %vm1101_vm6, %v1915_v38, %v1909_v26 }
0x11c0   : > { %v1912_v39 = vpop.permute.xlu1 %1911 }
0x11c1   : > { %v1919_v40 = vsel %vm1104_vm7, %v1917_v20, %v1912_v39 }
0x11c2   : > { %2753 = vmatmul.mubr.msk.bf16.vlgmr.msra.gmra.mrb[48].mxu1 %vm595_vm3, %v1919_v40  ;;  %v2173_v40 = vrot.slane %v3364_v27, %v1360_v25 }
0x11c3   : > { %2780 = vmatprep.mubr.msk.bf16.mxu1 %vm2997_vm1, %v2996_v1 }
0x1295   : > { %v1972_v42 = vpop.f32.mrb[48].mxu1 }
0x1296   : > { %v1973_v45 = vadd.f32 %v1972_v42, %v1923_v41  ;;  %v2754_v7 = vpop.f32.mrb[49].mxu1 }
0x1297   : > { %v1975_v46 = vpop.f32.mrb[50].mxu1 }
0x1298   : > { %v2755_v47 = vpop.f32.mrb[51].mxu1  ;;  %v1978_v48 = vadd.f32 %v1973_v45, %v3371_v33  ;;  %v2880_v33 = vld [vmem:[%s3629_s12] sm:$0xff]   ;;  %v2178_v45 = vrot.slane %v492_v63, %v3169_v9 }
0x1299   : > { %2765 = vmatpush3.bf16.msra.mxu1 %v2880_v33  ;;  %v2180_v47 = vld [vmem:[%s3619_s2] sm:$0x1] }
0x129a   : > { %v1979_v49 = vsel %vm595_vm3, %v1978_v48, 0.0  ;;  %2766 = vmatprep.subr.bf16.mxu1 %v2996_v1 }
0x129b   : > { %1980 = vadd.xlane.f32.xlu0 %v1979_v49  ;;  %v2890_v49 = vld [vmem:[%s3631_s14] sm:$0xff]  }
0x129d   : > { %2767 = vmatpush3.bf16.msra.mxu1 %v2881_v57 }
0x129e   : > { %2768 = vmatprep.subr.bf16.mxu1 %v2996_v1 }
0x12a1   : > { %2769 = vmatpush3.bf16.msra.mxu1 %v2882_v58  ;;  %v2335_v58 = vrot.slane %v492_v63, 2 }
0x12a2   : > { %2770 = vmatprep.subr.bf16.mxu1 %v2996_v1 }
0x12a5   : > { %2771 = vmatpush3.bf16.msra.mxu1 %v2883_v59 }
0x12a6   : > { %2772 = vmatprep.subr.bf16.mxu1 %v2996_v1 }
0x12a9   : > { %2773 = vmatpush3.bf16.msra.mxu1 %v2884_v60 }
0x12aa   : > { %2774 = vmatprep.subr.bf16.mxu1 %v2996_v1 }
0x12ad   : > { %2775 = vmatpush3.bf16.msra.mxu1 %v2885_v61 }
0x12ae   : > { %2776 = vmatprep.subr.bf16.mxu1 %v2996_v1 }
0x12b1   : > { %2777 = vmatpush3.bf16.msra.mxu1 %v2886_v13 }
0x12b2   : > { %2778 = vmatprep.subr.bf16.mxu1 %v2996_v1 }
0x12b5   : > { %2779 = vmatpush3.bf16.msra.mxu1 %v2887_v43 }
0x1328   : > { %v1981_v50 = vpop.xlane.xlu0 %1980 }
0x1329   : > { %v1982_v51 = vmul.f32 0.03125, %v1981_v50  ;;  %v2891_v50 = vld [vmem:[%s3631_s14 + $0x8] sm:$0xff]  }
0x132b   : > { %v1983_v52 = vsub.f32 %v1978_v48, %v1982_v51  ;;  %v2888_v48 = vld [vmem:[%s3630_s13] sm:$0xff]   ;;  %v2272_v51 = vrot.slane %v492_v63, 1 }
0x132d   : > { %v1984_v53 = vmul.f32 %v1983_v52, %v1983_v52 }
0x132f   : > { %v1985_v55 = vsel %vm595_vm3, %v1984_v53, 0.0 }
0x1330   : > { %1986 = vadd.xlane.f32.xlu1 %v1985_v55 }
0x13bd   : > { %v1987_v62 = vpop.xlane.xlu1 %1986 }
0x13be   : > { %v1988_v0 = vmul.f32 0.03125, %v1987_v62 }
0x13c0   : > { %v1989_v2 = vadd.f32 1e-05, %v1988_v0 }
0x13c2   : > { %2928 = vrsqrt.f32 %v1989_v2 }
0x13cc   : > { %v2929_v37 = vpop.eup %2928 }
0x13cd   : > { %v1991_v4 = vmul.f32 %v2929_v37, %v1983_v52 }
0x13cf   : > { %v1996_v6 = vmul.f32 %v1995_v3, %v1991_v4 }
0x13d1   : > { %v2001_v11 = vadd.f32 %v2000_v5, %v1996_v6 }
0x13d3   : > { %v2002_v12 = vpack.c.bf16 %v2001_v11, %v2001_v11 }
0x13d5   : > { %2761 = vmatmul.mubr.msk.bf16.vlgmr.msra.gmra.mrb[40].mxu0 %vm595_vm3, %v2002_v12 }
0x13d6   : > { %2786 = vmatprep.mubr.msk.f32.mxu0 %vm2997_vm1, %v2996_v1 }
0x14a8   : > { %v2056_v14 = vpop.f32.mrb[40].mxu0 }
0x14a9   : > { %v2057_v15 = vadd.f32 %v2056_v14, %v2006_v44  ;;  %v2762_v16 = vpop.f32.mrb[41].mxu0 }
0x14aa   : > { %v2059_v19 = vpop.f32.mrb[42].mxu0 }
0x14ab   : > { %v2062_v21 = vmax.f32 %v2057_v15, 0.0  ;;  %v2763_v22 = vpop.f32.mrb[43].mxu0 }
0x14ad   : > { %v2063_v23 = vpack.c.bf16 %v2062_v21, %v2062_v21 }
0x14af   : > { %2781 = vmatmul.mubr.bf16.vlgmr.msra.gmra.mrb[52].mxu1 %v2063_v23 }
0x1582   : > { %v2150_v28 = vpop.f32.mrb[52].mxu1 }
0x1583   : > { %v2151_v29 = vadd.f32 %v2150_v28, %v2067_v24  ;;  %v2782_v30 = vpop.f32.mrb[53].mxu1 }
0x1584   : > { %v2153_v31 = vpop.f32.mrb[54].mxu1 }
0x1585   : > { %v2783_v32 = vpop.f32.mrb[55].mxu1  ;;  %v2156_v34 = vadd.f32 %v2151_v29, %v2001_v11 }
0x1587   : > { %v2157_v54 = vsel %vm595_vm3, %v2156_v34, 0.0 }
0x1588   : > { %2158 = vadd.xlane.f32.xlu0 %v2157_v54 }
0x1615   : > { %v2159_v10 = vpop.xlane.xlu0 %2158 }
0x1616   : > { %v2160_v17 = vmul.f32 0.03125, %v2159_v10 }
0x1618   : > { %v2161_v35 = vsub.f32 %v2156_v34, %v2160_v17 }
0x161a   : > { %v2162_v36 = vmul.f32 %v2161_v35, %v2161_v35 }
0x161c   : > { %v2163_v26 = vsel %vm595_vm3, %v2162_v36, 0.0 }
0x161d   : > { %2164 = vadd.xlane.f32.xlu0 %v2163_v26 }
0x16aa   : > { %v2165_v38 = vpop.xlane.xlu0 %2164 }
0x16ab   : > { %v2166_v20 = vmul.f32 0.03125, %v2165_v38 }
0x16ad   : > { %v2167_v39 = vadd.f32 1e-05, %v2166_v20 }
0x16af   : > { %2930 = vrsqrt.f32 %v2167_v39 }
0x16b9   : > { %v2931_v41 = vpop.eup %2930 }
0x16ba   : > { %v2169_v42 = vmul.f32 %v2931_v41, %v2161_v35 }
0x16bc   : > { %v2174_v7 = vmul.f32 %v2173_v40, %v2169_v42 }
0x16be   : > { %v2179_v46 = vadd.f32 %v2178_v45, %v2174_v7 }
0x16c0   : > { %2785 = vmatpush3.msra.mxu0 %v2179_v46 }
0x16c1   : > { %2787 = vmatmul.mubr.msk.f32.vlgmr.msra.gmra.mrb[44].mxu0 %vm643_vm4, %v2180_v47  ;;  %2789 = vmatprep.subr.bf16.mxu0 %v2996_v1 }
0x16c2   : > { %2790 = vmatpush3.bf16.msra.mxu0 %v2888_v48  ;;  %2793 = vmatprep.mubr.msk.bf16.mxu0 %vm2997_vm1, %v2996_v1 }
0x16c3   : > { %2791 = vmatprep.subr.bf16.mxu0 %v2996_v1 }
0x16c6   : > { %2792 = vmatpush3.bf16.msra.mxu0 %v2889_v8 }
0x16c7   : > { %2797 = vmatprep.subr.bf16.mxu0 %v2996_v1 }
0x1794   : > { %v2250_v9 = vpop.f32.mrb[44].mxu0 }
0x1795   : > { %v2254_v25 = vpack.c.bf16 %v2250_v9, %v2250_v9  ;;  %v2788_v27 = vpop.f32.mrb[45].mxu0 }
0x1797   : > { %2794 = vmatmul.mubr.msk.bf16.vlgmr.msra.gmra.mrb[48].mxu0 %vm595_vm3, %v2254_v25 }
0x1798   : > { %2801 = vmatprep.mubr.msk.bf16.mxu0 %vm2997_vm1, %v2996_v1  ;;  %2798 = vmatpush3.bf16.msra.mxu0 %v2890_v49 }
0x1799   : > { %2799 = vmatprep.subr.bf16.mxu0 %v2996_v1 }
0x179c   : > { %2800 = vmatpush3.bf16.msra.mxu0 %v2891_v50 }
0x186a   : > { %v2311_v52 = vpop.f32.mrb[48].mxu0 }
0x186b   : > { %v2312_v53 = vadd.f32 %v2311_v52, %v2272_v51  ;;  %v2795_v55 = vpop.f32.mrb[49].mxu0 }
0x186c   : > { %v2314_v18 = vpop.f32.mrb[50].mxu0 }
0x186d   : > { %v2317_v56 = vmax.f32 %v2312_v53, 0.0  ;;  %v2796_v33 = vpop.f32.mrb[51].mxu0 }
0x186f   : > { %v2318_v57 = vpack.c.bf16 %v2317_v56, %v2317_v56 }
0x1871   : > { %2802 = vmatmul.mubr.msk.bf16.vlgmr.msra.gmra.mrb[52].mxu0 %vm595_vm3, %v2318_v57 }
0x1944   : > { %v2374_v1 = vpop.f32.mrb[52].mxu0 }
0x1945   : > { %v2375_v59 = vadd.f32 %v2374_v1, %v2335_v58  ;;  %v2803_v60 = vpop.f32.mrb[53].mxu0 }
0x1946   : > { %v2377_v61 = vpop.f32.mrb[54].mxu0 }
0x1947   : > { %v2804_v62 = vpop.f32.mrb[55].mxu0  ;;  %2381 = vst.msk [vmem:[%s484_s17] sm:$0x1] %vm2380_vm8, %v2375_v59 }
0x1948   : > { %2945 = shalt.err (!%p2942_p3)
}
0x1949   : > { %s2946_s26 = scalar_lea.hbm %s3575_s4, 16  ;;  %s2950_s0 = scalar_lea.hbm %s3632_s15, 32 }
0x194a   : > { %p2947_p4 = scmp.ne.s32.totalorder %s3575_s4, %s2946_s26  ;;  %p2951_p9 = scmp.lt.u32.totalorder %s3575_s4, %s3632_s15 }
0x194b   : > { %p2952_p10 = scmp.lt.u32.totalorder %s2950_s0, %s2946_s26  ;;  %p2954_p12 = scmp.lt.u32.totalorder %s2946_s26, %s3575_s4 }
0x194c   : > { %p2948_p7 = pnand %p2947_p4, %p3131_p5 }
0x194d   : > { %p2953_p11 = por %p2952_p10, %p2951_p9 }
0x194e   : > { %p2949_p8 = pneg %p2948_p7 }
0x194f   : > { %p2955_p13 = por %p2954_p12, %p2953_p11 }
0x1951   : > { %p2956_p0 = pnand %p2955_p13, %p2949_p8 }
0x1953   : > { %2959 = shalt.err (!%p2956_p0)
}
0x1954   : > { %2805 = dma.vmem_to_hbm [thread:$0]  (%p3131_p5), %s3577_s25, 16, %s3575_s4, %s2383_s22  }
0x1955 PF: > { %p2811_p1 = scmp.ge.s32.totalorder %s2994_s21, 2  ;;  %s2407_s27 = sand.u32 1, %s2982_s18  }
0x1956   : > { %s2408_s16 = scalar_lea.sflag [#allocation3], %s2407_s27 }
0x1957   : > { %p2808_p2 = pnand %p2811_p1, %p3135_p6 }
0x1959   : > { %2977 = dma.done.wait (!%p2808_p2), %s2408_s16, 16  }
0x195a   : > { %2979 = vsyncadd (!%p2808_p2), %s2408_s16, 4294967280  ;;  %s3670_s26 = sld [smem:[#allocation5_spill]]  ;;  %p25_p3 = scmp.ge.s32.totalorder %s3118_s24, 4  }
0x195b   : > { %s3671_s18 = smov %s2986_s19  ;;  %s3672_s19 = smov %s2990_s20 }
0x195c   : > { %s3674_s21 = smov %s3118_s24  ;;  %27 = sbr.rel (!%p25_p3) target bundleno = 7 (0x7), region = 115 }
0x1960   : > { %s3673_s20 = smov %s3670_s26 }
0x1963   :  { %2412 = vsyncpa [#allocation3], 1 }
0x1964   :  { %2414 = vsyncpa [#allocation3 + $0x1], 1 }

</bundles_post_ra>
